<compile_context>
chip_gen: v7x
topology: tpu7x:2x2x1
jax: 0.10.0
libtpu: 0.0.40
codegen_flags: <defaults>
</compile_context>

<pallas_src>
import numpy as np
import jax
import jax.numpy as jnp
from jax import lax
from jax.experimental import pallas as pl
from jax.experimental.pallas import tpu as pltpu


# ----------------------------------------------------------------------------
# Fused kernel.
# Grid: (batch tiles [parallel], fc1-column tiles [arbitrary / reduction]).
# ----------------------------------------------------------------------------
def _fused_aux_kernel(x_ref, p_ref, wc_ref, scale_ref, shift_ref,
                      w1_ref, b1_ref, w2_ref, b2_ref, o_ref,
                      h_scr, acc_scr):
    # x_ref:     (tb, HW, Cin)       spatially-flattened NHWC input tile
    # p_ref:     (n_sp, HW)          avg-pool matrix (1/25 at window positions)
    # wc_ref:    (Cin, 128)          1x1 conv weight, channels-last
    # scale_ref: (1, 128)            gamma / sqrt(var + eps)
    # shift_ref: (1, 128)            (conv_b - mean) * scale + beta
    # w1_ref:    (n_sp, 128, th1)    fc1 weight tile, pre-permuted to (s, c, n)
    # b1_ref:    (1, th1)
    # w2_ref:    (th1, NCp)          fc2 weight tile (output padded to NCp lanes)
    # b2_ref:    (1, NCp)
    # o_ref:     (tb, NCp)
    # h_scr:     (tb, n_sp, 128)     stage-1 activations (compute dtype)
    # acc_scr:   (tb, NCp) f32       fc2 accumulator across fc1-column tiles
    j = pl.program_id(1)
    tb = x_ref.shape[0]
    n_sp = w1_ref.shape[0]

    # Stage 1 (pool + 1x1 conv + BN + ReLU) runs once per batch tile; it is tiny
    # compared to the fc1 weight stream.
    @pl.when(j == 0)
    def _init():
        for b in range(tb):
            pooled = jnp.dot(p_ref[...], x_ref[b],
                             preferred_element_type=jnp.float32)           # (n_sp, Cin)
            y = jnp.dot(pooled, wc_ref[...],
                        preferred_element_type=jnp.float32)                # (n_sp, 128)
            y = jnp.maximum(y * scale_ref[...] + shift_ref[...], 0.0)
            h_scr[b] = y.astype(h_scr.dtype)
        acc_scr[...] = jnp.zeros_like(acc_scr)

    # fc1 tile: contract the (spatial, channel) activation against the pre-permuted
    # weight tile — feature order already matches PyTorch's NCHW flatten, so no
    # transpose/reshape is needed here.
    h = h_scr[...]                                                          # (tb,n_sp,128)
    h1 = jnp.dot(h[:, 0, :], w1_ref[0], preferred_element_type=jnp.float32)
    for s in range(1, n_sp):
        h1 = h1 + jnp.dot(h[:, s, :], w1_ref[s],
                          preferred_element_type=jnp.float32)
    h1 = jnp.maximum(h1 + b1_ref[...], 0.0)                                 # (tb, th1)

    # Dropout(p=0.7) is the identity in eval mode.
    acc_scr[...] += jnp.dot(h1.astype(w2_ref.dtype), w2_ref[...],
                            preferred_element_type=jnp.float32)

    @pl.when(j == pl.num_programs(1) - 1)
    def _finalize():
        o_ref[...] = acc_scr[...] + b2_ref[...]


def _pick_batch_tile(B):
    # Whole batch per block for small B; 8-row tiles (parallel axis) for bigger B.
    return 8 if (B > 8 and B % 8 == 0) else B


def fused_inception_aux(x_flat, prep, *, tile_h1=256):
    B, HW, Cin = x_flat.shape
    w1b = prep["fc1_w_blocks"]
    w2p = prep["fc2_w_pad"]
    n_sp, cc, H1 = w1b.shape
    NCp = w2p.shape[1]
    th1 = tile_h1 if H1 % tile_h1 == 0 else H1
    tb = _pick_batch_tile(B)

    return pl.pallas_call(
        _fused_aux_kernel,
        out_shape=jax.ShapeDtypeStruct((B, NCp), jnp.float32),
        grid_spec=pltpu.PrefetchScalarGridSpec(
            num_scalar_prefetch=0,
            grid=(B // tb, H1 // th1),
            in_specs=[
                pl.BlockSpec((tb, HW, Cin),   lambda bi, j: (bi, 0, 0)),
                pl.BlockSpec((n_sp, HW),      lambda bi, j: (0, 0)),
                pl.BlockSpec((Cin, cc),       lambda bi, j: (0, 0)),
                pl.BlockSpec((1, cc),         lambda bi, j: (0, 0)),
                pl.BlockSpec((1, cc),         lambda bi, j: (0, 0)),
                pl.BlockSpec((n_sp, cc, th1), lambda bi, j: (0, 0, j)),   # streamed
                pl.BlockSpec((1, th1),        lambda bi, j: (0, j)),
                pl.BlockSpec((th1, NCp),      lambda bi, j: (j, 0)),      # streamed
                pl.BlockSpec((1, NCp),        lambda bi, j: (0, 0)),
            ],
            out_specs=pl.BlockSpec((tb, NCp), lambda bi, j: (bi, 0)),
            scratch_shapes=[
                pltpu.VMEM((tb, n_sp, cc), w1b.dtype),    # stage-1 activations
                pltpu.VMEM((tb, NCp), jnp.float32),       # fc2 accumulator
            ],
        ),
        compiler_params=pltpu.CompilerParams(
            dimension_semantics=("parallel", "arbitrary")),
    )(x_flat, prep["pool_mat"], prep["conv_w_cl"], prep["bn_scale"],
      prep["bn_shift"], w1b, prep["fc1_b"], w2p, prep["fc2_b_pad"])


# ----------------------------------------------------------------------------
# One-time parameter preparation (layout plumbing hoisted out of the forward path).
# ----------------------------------------------------------------------------
def build_pool_matrix(H, W, k=5, s=3):
    oh = (H - k) // s + 1
    ow = (W - k) // s + 1
    P = np.zeros((oh * ow, H * W), dtype=np.float32)
    for i in range(oh):
        for j in range(ow):
            for kh in range(k):
                for kw in range(k):
                    P[i * ow + j, (i * s + kh) * W + (j * s + kw)] = 1.0 / (k * k)
    return jnp.asarray(P)


def prepare_params(raw, *, H, W, compute_dtype=jnp.float32, eps=1e-5):
    conv_w = raw["conv_w"][:, :, 0, 0]                       # (128, Cin)
    n_conv = conv_w.shape[0]
    scale = raw["bn_gamma"] / jnp.sqrt(raw["bn_var"] + eps)
    shift = (raw["conv_b"] - raw["bn_mean"]) * scale + raw["bn_beta"]

    pool_mat = build_pool_matrix(H, W, 5, 3)
    n_sp = pool_mat.shape[0]

    H1, D = raw["fc1_w"].shape                               # (1024, 2048)
    assert D == n_conv * n_sp, (
        f"fc1 expects {D} in-features but pool/conv produce {n_conv}*{n_sp}")

    # PyTorch NCHW flatten order is f = c*n_sp + s; kernel activations are (s, c)-major.
    # Permute fc1 weight rows ONCE so no transpose is needed inside the kernel.
    w1_blocks = jnp.transpose(raw["fc1_w"].reshape(H1, n_conv, n_sp),
                              (2, 1, 0)).astype(compute_dtype)   # (n_sp, 128, H1)

    NC = int(raw["fc2_w"].shape[0])
    NCp = ((NC + 127) // 128) * 128                          # lane-dense padded output
    w2p = jnp.zeros((H1, NCp), compute_dtype).at[:, :NC].set(
        raw["fc2_w"].T.astype(compute_dtype))
    b2p = jnp.zeros((1, NCp), jnp.float32).at[:, :NC].set(raw["fc2_b"])

    return {
        "pool_mat": pool_mat,
        "conv_w_cl": jnp.transpose(conv_w, (1, 0)),          # (Cin, 128)
        "bn_scale": scale.reshape(1, n_conv),
        "bn_shift": shift.reshape(1, n_conv),
        "fc1_w_blocks": w1_blocks,
        "fc1_b": raw["fc1_b"].reshape(1, H1),
        "fc2_w_pad": w2p,
        "fc2_b_pad": b2p,
        "num_classes": NC,
    }


def inception_aux_forward(x_nchw, prep, *, tile_h1=256):
    B, C, H, W = x_nchw.shape
    # NCHW -> (B, H*W, C): channels on the lane dim (tiny activation transpose).
    x_flat = jnp.transpose(x_nchw, (0, 2, 3, 1)).reshape(B, H * W, C)
    out_padded = fused_inception_aux(x_flat, prep, tile_h1=tile_h1)
    return out_padded[:, :prep["num_classes"]]


# ----------------------------------------------------------------------------
# Pure-JAX reference (mirrors the PyTorch forward, eval mode).
# ----------------------------------------------------------------------------
def reference_forward(x_nchw, params):
    eps = 1e-5
    pooled = lax.reduce_window(x_nchw, 0.0, lax.add,
                               (1, 1, 5, 5), (1, 1, 3, 3), "VALID") / 25.0
    z = jnp.einsum("bchw,oc->bohw", pooled, params["conv_w"][:, :, 0, 0])
    z = z + params["conv_b"][None, :, None, None]
    z = (z - params["bn_mean"][None, :, None, None]) / jnp.sqrt(
        params["bn_var"][None, :, None, None] + eps)
    z = z * params["bn_gamma"][None, :, None, None] + params["bn_beta"][None, :, None, None]
    z = jnp.maximum(z, 0.0)
    h = z.reshape(z.shape[0], -1)
    h1 = jnp.maximum(h @ params["fc1_w"].T + params["fc1_b"], 0.0)
    # Dropout(p=0.7) is identity in eval.
    return h1 @ params["fc2_w"].T + params["fc2_b"]


if __name__ == "__main__":
    B, IN_CH, H, W = 2, 8, 14, 14        # 14x14 -> AvgPool(5,3) -> 4x4; 128*16 = 2048
    NUM_CLASSES = 16

    key = jax.random.PRNGKey(0)
    keys = jax.random.split(key, 8)

    raw = {
        "conv_w": 0.1 * jax.random.normal(keys[0], (128, IN_CH, 1, 1), jnp.float32),
        "conv_b": 0.1 * jax.random.normal(keys[1], (128,), jnp.float32),
        "bn_gamma": jnp.ones((128,), jnp.float32),
        "bn_beta": jnp.zeros((128,), jnp.float32),
        "bn_mean": jnp.zeros((128,), jnp.float32),
        "bn_var": jnp.ones((128,), jnp.float32),
        "fc1_w": 0.02 * jax.random.normal(keys[2], (1024, 2048), jnp.float32),
        "fc1_b": 0.02 * jax.random.normal(keys[3], (1024,), jnp.float32),
        "fc2_w": 0.02 * jax.random.normal(keys[4], (NUM_CLASSES, 1024), jnp.float32),
        "fc2_b": 0.02 * jax.random.normal(keys[5], (NUM_CLASSES,), jnp.float32),
    }
    x = jax.random.normal(keys[6], (B, IN_CH, H, W), jnp.float32)

    ref = jax.block_until_ready(reference_forward(x, raw))

    # fp32 path: exact semantics check.
    prep_f32 = prepare_params(raw, H=H, W=W, compute_dtype=jnp.float32)
    out_f32 = jax.block_until_ready(inception_aux_forward(x, prep_f32))
    assert out_f32.shape == (B, NUM_CLASSES), out_f32.shape
    np.testing.assert_allclose(np.asarray(out_f32), np.asarray(ref),
                               rtol=1e-4, atol=1e-4)

    # bf16 weight path (halves the fc1 HBM stream on v6e/v7x); fp32 MXU accumulation.
    prep_bf16 = prepare_params(raw, H=H, W=W, compute_dtype=jnp.bfloat16)
    out_bf16 = jax.block_until_ready(inception_aux_forward(x, prep_bf16))
    np.testing.assert_allclose(np.asarray(out_bf16), np.asarray(ref),
                               rtol=2e-2, atol=2e-2)

    # TODO(synk): training-mode Dropout(p=0.7) / BatchNorm batch statistics are not
    # implemented; this kernel matches the module in eval/inference mode.
    print("KERNEL_OK")
</pallas_src>

<mosaic_0001>
module attributes {stable_mosaic.version = 11 : i64} {
  func.func @_fused_aux_kernel(%arg0: i32, %arg1: i32, %arg2: memref<2x196x8xf32, #tpu.memory_space<vmem>>, %arg3: memref<16x196xf32, #tpu.memory_space<vmem>>, %arg4: memref<8x128xf32, #tpu.memory_space<vmem>>, %arg5: memref<1x128xf32, #tpu.memory_space<vmem>>, %arg6: memref<1x128xf32, #tpu.memory_space<vmem>>, %arg7: memref<16x128x256xf32, #tpu.memory_space<vmem>>, %arg8: memref<1x256xf32, #tpu.memory_space<vmem>>, %arg9: memref<256x128xf32, #tpu.memory_space<vmem>>, %arg10: memref<1x128xf32, #tpu.memory_space<vmem>>, %arg11: memref<2x128xf32, #tpu.memory_space<vmem>>, %arg12: memref<2x16x128xf32, #tpu.memory_space<vmem>>, %arg13: memref<2x128xf32, #tpu.memory_space<vmem>>) attributes {dimension_semantics = [#tpu.dimension_semantics<parallel>, #tpu.dimension_semantics<arbitrary>], iteration_bounds = array<i64: 1, 4>, scalar_prefetch = 0 : i64, scratch_operands = 2 : i64, tpu.core_type = #tpu.core_type<tc>, window_params = [{transform_indices = @transform_0, window_bounds = array<i64: 2, 196, 8>}, {pipeline_mode = #tpu.pipeline_mode<synchronous>, transform_indices = @transform_1, window_bounds = array<i64: 16, 196>}, {pipeline_mode = #tpu.pipeline_mode<synchronous>, transform_indices = @transform_2, window_bounds = array<i64: 8, 128>}, {pipeline_mode = #tpu.pipeline_mode<synchronous>, transform_indices = @transform_3, window_bounds = array<i64: 1, 128>}, {pipeline_mode = #tpu.pipeline_mode<synchronous>, transform_indices = @transform_4, window_bounds = array<i64: 1, 128>}, {transform_indices = @transform_5, window_bounds = array<i64: 16, 128, 256>}, {transform_indices = @transform_6, window_bounds = array<i64: 1, 256>}, {transform_indices = @transform_7, window_bounds = array<i64: 256, 128>}, {pipeline_mode = #tpu.pipeline_mode<synchronous>, transform_indices = @transform_8, window_bounds = array<i64: 1, 128>}, {transform_indices = @transform_9, window_bounds = array<i64: 2, 128>}]} {
    %c0_i32 = arith.constant 0 : i32
    %0 = arith.cmpi eq, %arg1, %c0_i32 : i32
    %1 = arith.extui %0 : i1 to i32
    %c0_i32_0 = arith.constant 0 : i32
    %2 = arith.cmpi ne, %1, %c0_i32_0 : i32
    scf.if %2 {
      %c0_62 = arith.constant 0 : index
      %c0_63 = arith.constant 0 : index
      %112 = vector.load %arg3[%c0_62, %c0_63] : memref<16x196xf32, #tpu.memory_space<vmem>>, vector<16x196xf32>
      %c0_64 = arith.constant 0 : index
      %c0_65 = arith.constant 0 : index
      %c0_66 = arith.constant 0 : index
      %113 = vector.load %arg2[%c0_64, %c0_65, %c0_66] : memref<2x196x8xf32, #tpu.memory_space<vmem>>, vector<1x196x8xf32>
      %114 = vector.shape_cast %113 : vector<1x196x8xf32> to vector<196x8xf32>
      %cst_67 = arith.constant dense<0.000000e+00> : vector<16x8xf32>
      %115 = tpu.matmul %112, %114, %cst_67 {dimension_numbers = #tpu.dot_dimension_numbers<[1], [0], [0], [1], [0, 0, 1, 1], [], []>} : vector<16x196xf32>, vector<196x8xf32>, vector<16x8xf32> -> vector<16x8xf32>
      %c0_68 = arith.constant 0 : index
      %c0_69 = arith.constant 0 : index
      %116 = vector.load %arg4[%c0_68, %c0_69] : memref<8x128xf32, #tpu.memory_space<vmem>>, vector<8x128xf32>
      %cst_70 = arith.constant dense<0.000000e+00> : vector<16x128xf32>
      %117 = tpu.matmul %115, %116, %cst_70 {dimension_numbers = #tpu.dot_dimension_numbers<[1], [0], [0], [1], [0, 0, 1, 1], [], []>} : vector<16x8xf32>, vector<8x128xf32>, vector<16x128xf32> -> vector<16x128xf32>
      %c0_71 = arith.constant 0 : index
      %c0_72 = arith.constant 0 : index
      %118 = vector.load %arg5[%c0_71, %c0_72] : memref<1x128xf32, #tpu.memory_space<vmem>>, vector<1x128xf32>
      %119 = vector.broadcast %118 : vector<1x128xf32> to vector<16x128xf32>
      %120 = arith.mulf %117, %119 : vector<16x128xf32>
      %c0_73 = arith.constant 0 : index
      %c0_74 = arith.constant 0 : index
      %121 = vector.load %arg6[%c0_73, %c0_74] : memref<1x128xf32, #tpu.memory_space<vmem>>, vector<1x128xf32>
      %122 = vector.broadcast %121 : vector<1x128xf32> to vector<16x128xf32>
      %123 = arith.addf %120, %122 : vector<16x128xf32>
      %cst_75 = arith.constant 0.000000e+00 : f32
      %124 = vector.broadcast %cst_75 : f32 to vector<16x128xf32>
      %125 = arith.maximumf %123, %124 : vector<16x128xf32>
      %c0_76 = arith.constant 0 : index
      %c0_77 = arith.constant 0 : index
      %c0_78 = arith.constant 0 : index
      %126 = vector.load %arg12[%c0_76, %c0_77, %c0_78] : memref<2x16x128xf32, #tpu.memory_space<vmem>>, vector<1x16x128xf32>
      %127 = vector.shape_cast %126 : vector<1x16x128xf32> to vector<16x128xf32>
      %128 = vector.shape_cast %125 : vector<16x128xf32> to vector<1x16x128xf32>
      tpu.vector_store %arg12[%c0_76, %c0_77, %c0_78], %128 {strides = array<i32>} : memref<2x16x128xf32, #tpu.memory_space<vmem>>, vector<1x16x128xf32>,
      %c0_79 = arith.constant 0 : index
      %c0_80 = arith.constant 0 : index
      %129 = vector.load %arg3[%c0_79, %c0_80] : memref<16x196xf32, #tpu.memory_space<vmem>>, vector<16x196xf32>
      %c1_81 = arith.constant 1 : index
      %c0_82 = arith.constant 0 : index
      %c0_83 = arith.constant 0 : index
      %130 = vector.load %arg2[%c1_81, %c0_82, %c0_83] : memref<2x196x8xf32, #tpu.memory_space<vmem>>, vector<1x196x8xf32>
      %131 = vector.shape_cast %130 : vector<1x196x8xf32> to vector<196x8xf32>
      %cst_84 = arith.constant dense<0.000000e+00> : vector<16x8xf32>
      %132 = tpu.matmul %129, %131, %cst_84 {dimension_numbers = #tpu.dot_dimension_numbers<[1], [0], [0], [1], [0, 0, 1, 1], [], []>} : vector<16x196xf32>, vector<196x8xf32>, vector<16x8xf32> -> vector<16x8xf32>
      %c0_85 = arith.constant 0 : index
      %c0_86 = arith.constant 0 : index
      %133 = vector.load %arg4[%c0_85, %c0_86] : memref<8x128xf32, #tpu.memory_space<vmem>>, vector<8x128xf32>
      %cst_87 = arith.constant dense<0.000000e+00> : vector<16x128xf32>
      %134 = tpu.matmul %132, %133, %cst_87 {dimension_numbers = #tpu.dot_dimension_numbers<[1], [0], [0], [1], [0, 0, 1, 1], [], []>} : vector<16x8xf32>, vector<8x128xf32>, vector<16x128xf32> -> vector<16x128xf32>
      %c0_88 = arith.constant 0 : index
      %c0_89 = arith.constant 0 : index
      %135 = vector.load %arg5[%c0_88, %c0_89] : memref<1x128xf32, #tpu.memory_space<vmem>>, vector<1x128xf32>
      %136 = vector.broadcast %135 : vector<1x128xf32> to vector<16x128xf32>
      %137 = arith.mulf %134, %136 : vector<16x128xf32>
      %c0_90 = arith.constant 0 : index
      %c0_91 = arith.constant 0 : index
      %138 = vector.load %arg6[%c0_90, %c0_91] : memref<1x128xf32, #tpu.memory_space<vmem>>, vector<1x128xf32>
      %139 = vector.broadcast %138 : vector<1x128xf32> to vector<16x128xf32>
      %140 = arith.addf %137, %139 : vector<16x128xf32>
      %cst_92 = arith.constant 0.000000e+00 : f32
      %141 = vector.broadcast %cst_92 : f32 to vector<16x128xf32>
      %142 = arith.maximumf %140, %141 : vector<16x128xf32>
      %c1_93 = arith.constant 1 : index
      %c0_94 = arith.constant 0 : index
      %c0_95 = arith.constant 0 : index
      %143 = vector.load %arg12[%c1_93, %c0_94, %c0_95] : memref<2x16x128xf32, #tpu.memory_space<vmem>>, vector<1x16x128xf32>
      %144 = vector.shape_cast %143 : vector<1x16x128xf32> to vector<16x128xf32>
      %145 = vector.shape_cast %142 : vector<16x128xf32> to vector<1x16x128xf32>
      tpu.vector_store %arg12[%c1_93, %c0_94, %c0_95], %145 {strides = array<i32>} : memref<2x16x128xf32, #tpu.memory_space<vmem>>, vector<1x16x128xf32>,
      %cst_96 = arith.constant 0.000000e+00 : f32
      %146 = vector.broadcast %cst_96 : f32 to vector<2x128xf32>
      %c0_97 = arith.constant 0 : index
      %c0_98 = arith.constant 0 : index
      %147 = vector.load %arg13[%c0_97, %c0_98] : memref<2x128xf32, #tpu.memory_space<vmem>>, vector<2x128xf32>
      tpu.vector_store %arg13[%c0_97, %c0_98], %146 {strides = array<i32>} : memref<2x128xf32, #tpu.memory_space<vmem>>, vector<2x128xf32>,
    } else {
    }
    %c0 = arith.constant 0 : index
    %c0_1 = arith.constant 0 : index
    %c0_2 = arith.constant 0 : index
    %3 = vector.load %arg12[%c0, %c0_1, %c0_2] : memref<2x16x128xf32, #tpu.memory_space<vmem>>, vector<2x16x128xf32>
    %4 = vector.extract_strided_slice %3 {offsets = [0, 0, 0], sizes = [2, 1, 128], strides = [1, 1, 1]} : vector<2x16x128xf32> to vector<2x1x128xf32>
    %5 = vector.shape_cast %4 : vector<2x1x128xf32> to vector<2x128xf32>
    %c0_3 = arith.constant 0 : index
    %c0_4 = arith.constant 0 : index
    %c0_5 = arith.constant 0 : index
    %6 = vector.load %arg7[%c0_3, %c0_4, %c0_5] : memref<16x128x256xf32, #tpu.memory_space<vmem>>, vector<1x128x256xf32>
    %7 = vector.shape_cast %6 : vector<1x128x256xf32> to vector<128x256xf32>
    %cst = arith.constant dense<0.000000e+00> : vector<2x256xf32>
    %8 = tpu.matmul %5, %7, %cst {dimension_numbers = #tpu.dot_dimension_numbers<[1], [0], [0], [1], [0, 0, 1, 1], [], []>} : vector<2x128xf32>, vector<128x256xf32>, vector<2x256xf32> -> vector<2x256xf32>
    %9 = vector.extract_strided_slice %3 {offsets = [0, 1, 0], sizes = [2, 1, 128], strides = [1, 1, 1]} : vector<2x16x128xf32> to vector<2x1x128xf32>
    %10 = vector.shape_cast %9 : vector<2x1x128xf32> to vector<2x128xf32>
    %c1 = arith.constant 1 : index
    %c0_6 = arith.constant 0 : index
    %c0_7 = arith.constant 0 : index
    %11 = vector.load %arg7[%c1, %c0_6, %c0_7] : memref<16x128x256xf32, #tpu.memory_space<vmem>>, vector<1x128x256xf32>
    %12 = vector.shape_cast %11 : vector<1x128x256xf32> to vector<128x256xf32>
    %cst_8 = arith.constant dense<0.000000e+00> : vector<2x256xf32>
    %13 = tpu.matmul %10, %12, %cst_8 {dimension_numbers = #tpu.dot_dimension_numbers<[1], [0], [0], [1], [0, 0, 1, 1], [], []>} : vector<2x128xf32>, vector<128x256xf32>, vector<2x256xf32> -> vector<2x256xf32>
    %14 = arith.addf %8, %13 : vector<2x256xf32>
    %15 = vector.extract_strided_slice %3 {offsets = [0, 2, 0], sizes = [2, 1, 128], strides = [1, 1, 1]} : vector<2x16x128xf32> to vector<2x1x128xf32>
    %16 = vector.shape_cast %15 : vector<2x1x128xf32> to vector<2x128xf32>
    %c2 = arith.constant 2 : index
    %c0_9 = arith.constant 0 : index
    %c0_10 = arith.constant 0 : index
    %17 = vector.load %arg7[%c2, %c0_9, %c0_10] : memref<16x128x256xf32, #tpu.memory_space<vmem>>, vector<1x128x256xf32>
    %18 = vector.shape_cast %17 : vector<1x128x256xf32> to vector<128x256xf32>
    %cst_11 = arith.constant dense<0.000000e+00> : vector<2x256xf32>
    %19 = tpu.matmul %16, %18, %cst_11 {dimension_numbers = #tpu.dot_dimension_numbers<[1], [0], [0], [1], [0, 0, 1, 1], [], []>} : vector<2x128xf32>, vector<128x256xf32>, vector<2x256xf32> -> vector<2x256xf32>
    %20 = arith.addf %14, %19 : vector<2x256xf32>
    %21 = vector.extract_strided_slice %3 {offsets = [0, 3, 0], sizes = [2, 1, 128], strides = [1, 1, 1]} : vector<2x16x128xf32> to vector<2x1x128xf32>
    %22 = vector.shape_cast %21 : vector<2x1x128xf32> to vector<2x128xf32>
    %c3 = arith.constant 3 : index
    %c0_12 = arith.constant 0 : index
    %c0_13 = arith.constant 0 : index
    %23 = vector.load %arg7[%c3, %c0_12, %c0_13] : memref<16x128x256xf32, #tpu.memory_space<vmem>>, vector<1x128x256xf32>
    %24 = vector.shape_cast %23 : vector<1x128x256xf32> to vector<128x256xf32>
    %cst_14 = arith.constant dense<0.000000e+00> : vector<2x256xf32>
    %25 = tpu.matmul %22, %24, %cst_14 {dimension_numbers = #tpu.dot_dimension_numbers<[1], [0], [0], [1], [0, 0, 1, 1], [], []>} : vector<2x128xf32>, vector<128x256xf32>, vector<2x256xf32> -> vector<2x256xf32>
    %26 = arith.addf %20, %25 : vector<2x256xf32>
    %27 = vector.extract_strided_slice %3 {offsets = [0, 4, 0], sizes = [2, 1, 128], strides = [1, 1, 1]} : vector<2x16x128xf32> to vector<2x1x128xf32>
    %28 = vector.shape_cast %27 : vector<2x1x128xf32> to vector<2x128xf32>
    %c4 = arith.constant 4 : index
    %c0_15 = arith.constant 0 : index
    %c0_16 = arith.constant 0 : index
    %29 = vector.load %arg7[%c4, %c0_15, %c0_16] : memref<16x128x256xf32, #tpu.memory_space<vmem>>, vector<1x128x256xf32>
    %30 = vector.shape_cast %29 : vector<1x128x256xf32> to vector<128x256xf32>
    %cst_17 = arith.constant dense<0.000000e+00> : vector<2x256xf32>
    %31 = tpu.matmul %28, %30, %cst_17 {dimension_numbers = #tpu.dot_dimension_numbers<[1], [0], [0], [1], [0, 0, 1, 1], [], []>} : vector<2x128xf32>, vector<128x256xf32>, vector<2x256xf32> -> vector<2x256xf32>
    %32 = arith.addf %26, %31 : vector<2x256xf32>
    %33 = vector.extract_strided_slice %3 {offsets = [0, 5, 0], sizes = [2, 1, 128], strides = [1, 1, 1]} : vector<2x16x128xf32> to vector<2x1x128xf32>
    %34 = vector.shape_cast %33 : vector<2x1x128xf32> to vector<2x128xf32>
    %c5 = arith.constant 5 : index
    %c0_18 = arith.constant 0 : index
    %c0_19 = arith.constant 0 : index
    %35 = vector.load %arg7[%c5, %c0_18, %c0_19] : memref<16x128x256xf32, #tpu.memory_space<vmem>>, vector<1x128x256xf32>
    %36 = vector.shape_cast %35 : vector<1x128x256xf32> to vector<128x256xf32>
    %cst_20 = arith.constant dense<0.000000e+00> : vector<2x256xf32>
    %37 = tpu.matmul %34, %36, %cst_20 {dimension_numbers = #tpu.dot_dimension_numbers<[1], [0], [0], [1], [0, 0, 1, 1], [], []>} : vector<2x128xf32>, vector<128x256xf32>, vector<2x256xf32> -> vector<2x256xf32>
    %38 = arith.addf %32, %37 : vector<2x256xf32>
    %39 = vector.extract_strided_slice %3 {offsets = [0, 6, 0], sizes = [2, 1, 128], strides = [1, 1, 1]} : vector<2x16x128xf32> to vector<2x1x128xf32>
    %40 = vector.shape_cast %39 : vector<2x1x128xf32> to vector<2x128xf32>
    %c6 = arith.constant 6 : index
    %c0_21 = arith.constant 0 : index
    %c0_22 = arith.constant 0 : index
    %41 = vector.load %arg7[%c6, %c0_21, %c0_22] : memref<16x128x256xf32, #tpu.memory_space<vmem>>, vector<1x128x256xf32>
    %42 = vector.shape_cast %41 : vector<1x128x256xf32> to vector<128x256xf32>
    %cst_23 = arith.constant dense<0.000000e+00> : vector<2x256xf32>
    %43 = tpu.matmul %40, %42, %cst_23 {dimension_numbers = #tpu.dot_dimension_numbers<[1], [0], [0], [1], [0, 0, 1, 1], [], []>} : vector<2x128xf32>, vector<128x256xf32>, vector<2x256xf32> -> vector<2x256xf32>
    %44 = arith.addf %38, %43 : vector<2x256xf32>
    %45 = vector.extract_strided_slice %3 {offsets = [0, 7, 0], sizes = [2, 1, 128], strides = [1, 1, 1]} : vector<2x16x128xf32> to vector<2x1x128xf32>
    %46 = vector.shape_cast %45 : vector<2x1x128xf32> to vector<2x128xf32>
    %c7 = arith.constant 7 : index
    %c0_24 = arith.constant 0 : index
    %c0_25 = arith.constant 0 : index
    %47 = vector.load %arg7[%c7, %c0_24, %c0_25] : memref<16x128x256xf32, #tpu.memory_space<vmem>>, vector<1x128x256xf32>
    %48 = vector.shape_cast %47 : vector<1x128x256xf32> to vector<128x256xf32>
    %cst_26 = arith.constant dense<0.000000e+00> : vector<2x256xf32>
    %49 = tpu.matmul %46, %48, %cst_26 {dimension_numbers = #tpu.dot_dimension_numbers<[1], [0], [0], [1], [0, 0, 1, 1], [], []>} : vector<2x128xf32>, vector<128x256xf32>, vector<2x256xf32> -> vector<2x256xf32>
    %50 = arith.addf %44, %49 : vector<2x256xf32>
    %51 = vector.extract_strided_slice %3 {offsets = [0, 8, 0], sizes = [2, 1, 128], strides = [1, 1, 1]} : vector<2x16x128xf32> to vector<2x1x128xf32>
    %52 = vector.shape_cast %51 : vector<2x1x128xf32> to vector<2x128xf32>
    %c8 = arith.constant 8 : index
    %c0_27 = arith.constant 0 : index
    %c0_28 = arith.constant 0 : index
    %53 = vector.load %arg7[%c8, %c0_27, %c0_28] : memref<16x128x256xf32, #tpu.memory_space<vmem>>, vector<1x128x256xf32>
    %54 = vector.shape_cast %53 : vector<1x128x256xf32> to vector<128x256xf32>
    %cst_29 = arith.constant dense<0.000000e+00> : vector<2x256xf32>
    %55 = tpu.matmul %52, %54, %cst_29 {dimension_numbers = #tpu.dot_dimension_numbers<[1], [0], [0], [1], [0, 0, 1, 1], [], []>} : vector<2x128xf32>, vector<128x256xf32>, vector<2x256xf32> -> vector<2x256xf32>
    %56 = arith.addf %50, %55 : vector<2x256xf32>
    %57 = vector.extract_strided_slice %3 {offsets = [0, 9, 0], sizes = [2, 1, 128], strides = [1, 1, 1]} : vector<2x16x128xf32> to vector<2x1x128xf32>
    %58 = vector.shape_cast %57 : vector<2x1x128xf32> to vector<2x128xf32>
    %c9 = arith.constant 9 : index
    %c0_30 = arith.constant 0 : index
    %c0_31 = arith.constant 0 : index
    %59 = vector.load %arg7[%c9, %c0_30, %c0_31] : memref<16x128x256xf32, #tpu.memory_space<vmem>>, vector<1x128x256xf32>
    %60 = vector.shape_cast %59 : vector<1x128x256xf32> to vector<128x256xf32>
    %cst_32 = arith.constant dense<0.000000e+00> : vector<2x256xf32>
    %61 = tpu.matmul %58, %60, %cst_32 {dimension_numbers = #tpu.dot_dimension_numbers<[1], [0], [0], [1], [0, 0, 1, 1], [], []>} : vector<2x128xf32>, vector<128x256xf32>, vector<2x256xf32> -> vector<2x256xf32>
    %62 = arith.addf %56, %61 : vector<2x256xf32>
    %63 = vector.extract_strided_slice %3 {offsets = [0, 10, 0], sizes = [2, 1, 128], strides = [1, 1, 1]} : vector<2x16x128xf32> to vector<2x1x128xf32>
    %64 = vector.shape_cast %63 : vector<2x1x128xf32> to vector<2x128xf32>
    %c10 = arith.constant 10 : index
    %c0_33 = arith.constant 0 : index
    %c0_34 = arith.constant 0 : index
    %65 = vector.load %arg7[%c10, %c0_33, %c0_34] : memref<16x128x256xf32, #tpu.memory_space<vmem>>, vector<1x128x256xf32>
    %66 = vector.shape_cast %65 : vector<1x128x256xf32> to vector<128x256xf32>
    %cst_35 = arith.constant dense<0.000000e+00> : vector<2x256xf32>
    %67 = tpu.matmul %64, %66, %cst_35 {dimension_numbers = #tpu.dot_dimension_numbers<[1], [0], [0], [1], [0, 0, 1, 1], [], []>} : vector<2x128xf32>, vector<128x256xf32>, vector<2x256xf32> -> vector<2x256xf32>
    %68 = arith.addf %62, %67 : vector<2x256xf32>
    %69 = vector.extract_strided_slice %3 {offsets = [0, 11, 0], sizes = [2, 1, 128], strides = [1, 1, 1]} : vector<2x16x128xf32> to vector<2x1x128xf32>
    %70 = vector.shape_cast %69 : vector<2x1x128xf32> to vector<2x128xf32>
    %c11 = arith.constant 11 : index
    %c0_36 = arith.constant 0 : index
    %c0_37 = arith.constant 0 : index
    %71 = vector.load %arg7[%c11, %c0_36, %c0_37] : memref<16x128x256xf32, #tpu.memory_space<vmem>>, vector<1x128x256xf32>
    %72 = vector.shape_cast %71 : vector<1x128x256xf32> to vector<128x256xf32>
    %cst_38 = arith.constant dense<0.000000e+00> : vector<2x256xf32>
    %73 = tpu.matmul %70, %72, %cst_38 {dimension_numbers = #tpu.dot_dimension_numbers<[1], [0], [0], [1], [0, 0, 1, 1], [], []>} : vector<2x128xf32>, vector<128x256xf32>, vector<2x256xf32> -> vector<2x256xf32>
    %74 = arith.addf %68, %73 : vector<2x256xf32>
    %75 = vector.extract_strided_slice %3 {offsets = [0, 12, 0], sizes = [2, 1, 128], strides = [1, 1, 1]} : vector<2x16x128xf32> to vector<2x1x128xf32>
    %76 = vector.shape_cast %75 : vector<2x1x128xf32> to vector<2x128xf32>
    %c12 = arith.constant 12 : index
    %c0_39 = arith.constant 0 : index
    %c0_40 = arith.constant 0 : index
    %77 = vector.load %arg7[%c12, %c0_39, %c0_40] : memref<16x128x256xf32, #tpu.memory_space<vmem>>, vector<1x128x256xf32>
    %78 = vector.shape_cast %77 : vector<1x128x256xf32> to vector<128x256xf32>
    %cst_41 = arith.constant dense<0.000000e+00> : vector<2x256xf32>
    %79 = tpu.matmul %76, %78, %cst_41 {dimension_numbers = #tpu.dot_dimension_numbers<[1], [0], [0], [1], [0, 0, 1, 1], [], []>} : vector<2x128xf32>, vector<128x256xf32>, vector<2x256xf32> -> vector<2x256xf32>
    %80 = arith.addf %74, %79 : vector<2x256xf32>
    %81 = vector.extract_strided_slice %3 {offsets = [0, 13, 0], sizes = [2, 1, 128], strides = [1, 1, 1]} : vector<2x16x128xf32> to vector<2x1x128xf32>
    %82 = vector.shape_cast %81 : vector<2x1x128xf32> to vector<2x128xf32>
    %c13 = arith.constant 13 : index
    %c0_42 = arith.constant 0 : index
    %c0_43 = arith.constant 0 : index
    %83 = vector.load %arg7[%c13, %c0_42, %c0_43] : memref<16x128x256xf32, #tpu.memory_space<vmem>>, vector<1x128x256xf32>
    %84 = vector.shape_cast %83 : vector<1x128x256xf32> to vector<128x256xf32>
    %cst_44 = arith.constant dense<0.000000e+00> : vector<2x256xf32>
    %85 = tpu.matmul %82, %84, %cst_44 {dimension_numbers = #tpu.dot_dimension_numbers<[1], [0], [0], [1], [0, 0, 1, 1], [], []>} : vector<2x128xf32>, vector<128x256xf32>, vector<2x256xf32> -> vector<2x256xf32>
    %86 = arith.addf %80, %85 : vector<2x256xf32>
    %87 = vector.extract_strided_slice %3 {offsets = [0, 14, 0], sizes = [2, 1, 128], strides = [1, 1, 1]} : vector<2x16x128xf32> to vector<2x1x128xf32>
    %88 = vector.shape_cast %87 : vector<2x1x128xf32> to vector<2x128xf32>
    %c14 = arith.constant 14 : index
    %c0_45 = arith.constant 0 : index
    %c0_46 = arith.constant 0 : index
    %89 = vector.load %arg7[%c14, %c0_45, %c0_46] : memref<16x128x256xf32, #tpu.memory_space<vmem>>, vector<1x128x256xf32>
    %90 = vector.shape_cast %89 : vector<1x128x256xf32> to vector<128x256xf32>
    %cst_47 = arith.constant dense<0.000000e+00> : vector<2x256xf32>
    %91 = tpu.matmul %88, %90, %cst_47 {dimension_numbers = #tpu.dot_dimension_numbers<[1], [0], [0], [1], [0, 0, 1, 1], [], []>} : vector<2x128xf32>, vector<128x256xf32>, vector<2x256xf32> -> vector<2x256xf32>
    %92 = arith.addf %86, %91 : vector<2x256xf32>
    %93 = vector.extract_strided_slice %3 {offsets = [0, 15, 0], sizes = [2, 1, 128], strides = [1, 1, 1]} : vector<2x16x128xf32> to vector<2x1x128xf32>
    %94 = vector.shape_cast %93 : vector<2x1x128xf32> to vector<2x128xf32>
    %c15 = arith.constant 15 : index
    %c0_48 = arith.constant 0 : index
    %c0_49 = arith.constant 0 : index
    %95 = vector.load %arg7[%c15, %c0_48, %c0_49] : memref<16x128x256xf32, #tpu.memory_space<vmem>>, vector<1x128x256xf32>
    %96 = vector.shape_cast %95 : vector<1x128x256xf32> to vector<128x256xf32>
    %cst_50 = arith.constant dense<0.000000e+00> : vector<2x256xf32>
    %97 = tpu.matmul %94, %96, %cst_50 {dimension_numbers = #tpu.dot_dimension_numbers<[1], [0], [0], [1], [0, 0, 1, 1], [], []>} : vector<2x128xf32>, vector<128x256xf32>, vector<2x256xf32> -> vector<2x256xf32>
    %98 = arith.addf %92, %97 : vector<2x256xf32>
    %c0_51 = arith.constant 0 : index
    %c0_52 = arith.constant 0 : index
    %99 = vector.load %arg8[%c0_51, %c0_52] : memref<1x256xf32, #tpu.memory_space<vmem>>, vector<1x256xf32>
    %100 = vector.broadcast %99 : vector<1x256xf32> to vector<2x256xf32>
    %101 = arith.addf %98, %100 : vector<2x256xf32>
    %cst_53 = arith.constant 0.000000e+00 : f32
    %102 = vector.broadcast %cst_53 : f32 to vector<2x256xf32>
    %103 = arith.maximumf %101, %102 : vector<2x256xf32>
    %c0_54 = arith.constant 0 : index
    %c0_55 = arith.constant 0 : index
    %104 = vector.load %arg13[%c0_54, %c0_55] : memref<2x128xf32, #tpu.memory_space<vmem>>, vector<2x128xf32>
    %c0_56 = arith.constant 0 : index
    %c0_57 = arith.constant 0 : index
    %105 = vector.load %arg9[%c0_56, %c0_57] : memref<256x128xf32, #tpu.memory_space<vmem>>, vector<256x128xf32>
    %cst_58 = arith.constant dense<0.000000e+00> : vector<2x128xf32>
    %106 = tpu.matmul %103, %105, %cst_58 {dimension_numbers = #tpu.dot_dimension_numbers<[1], [0], [0], [1], [0, 0, 1, 1], [], []>} : vector<2x256xf32>, vector<256x128xf32>, vector<2x128xf32> -> vector<2x128xf32>
    %107 = arith.addf %104, %106 : vector<2x128xf32>
    %c0_59 = arith.constant 0 : index
    %c0_60 = arith.constant 0 : index
    %108 = vector.load %arg13[%c0_59, %c0_60] : memref<2x128xf32, #tpu.memory_space<vmem>>, vector<2x128xf32>
    tpu.vector_store %arg13[%c0_59, %c0_60], %107 {strides = array<i32>} : memref<2x128xf32, #tpu.memory_space<vmem>>, vector<2x128xf32>,
    %c3_i32 = arith.constant 3 : i32
    %109 = arith.cmpi eq, %arg1, %c3_i32 : i32
    %110 = arith.extui %109 : i1 to i32
    %c0_i32_61 = arith.constant 0 : i32
    %111 = arith.cmpi ne, %110, %c0_i32_61 : i32
    scf.if %111 {
      %c0_62 = arith.constant 0 : index
      %c0_63 = arith.constant 0 : index
      %112 = vector.load %arg13[%c0_62, %c0_63] : memref<2x128xf32, #tpu.memory_space<vmem>>, vector<2x128xf32>
      %c0_64 = arith.constant 0 : index
      %c0_65 = arith.constant 0 : index
      %113 = vector.load %arg10[%c0_64, %c0_65] : memref<1x128xf32, #tpu.memory_space<vmem>>, vector<1x128xf32>
      %114 = vector.broadcast %113 : vector<1x128xf32> to vector<2x128xf32>
      %115 = arith.addf %112, %114 : vector<2x128xf32>
      %c0_66 = arith.constant 0 : index
      %c0_67 = arith.constant 0 : index
      %116 = vector.load %arg11[%c0_66, %c0_67] : memref<2x128xf32, #tpu.memory_space<vmem>>, vector<2x128xf32>
      tpu.vector_store %arg11[%c0_66, %c0_67], %115 {strides = array<i32>} : memref<2x128xf32, #tpu.memory_space<vmem>>, vector<2x128xf32>,
    } else {
    }
    return
  }
  func.func @transform_0(%arg0: i32, %arg1: i32) -> (i32, i32, i32) {
    %c0_i32 = arith.constant 0 : i32
    %c0_i32_0 = arith.constant 0 : i32
    %c0_i32_1 = arith.constant 0 : i32
    return %arg0, %c0_i32, %c0_i32_0 : i32, i32, i32
  }
  func.func @transform_1(%arg0: i32, %arg1: i32) -> (i32, i32) {
    %c0_i32 = arith.constant 0 : i32
    %c0_i32_0 = arith.constant 0 : i32
    %c0_i32_1 = arith.constant 0 : i32
    return %c0_i32, %c0_i32_0 : i32, i32
  }
  func.func @transform_2(%arg0: i32, %arg1: i32) -> (i32, i32) {
    %c0_i32 = arith.constant 0 : i32
    %c0_i32_0 = arith.constant 0 : i32
    %c0_i32_1 = arith.constant 0 : i32
    return %c0_i32, %c0_i32_0 : i32, i32
  }
  func.func @transform_3(%arg0: i32, %arg1: i32) -> (i32, i32) {
    %c0_i32 = arith.constant 0 : i32
    %c0_i32_0 = arith.constant 0 : i32
    %c0_i32_1 = arith.constant 0 : i32
    return %c0_i32, %c0_i32_0 : i32, i32
  }
  func.func @transform_4(%arg0: i32, %arg1: i32) -> (i32, i32) {
    %c0_i32 = arith.constant 0 : i32
    %c0_i32_0 = arith.constant 0 : i32
    %c0_i32_1 = arith.constant 0 : i32
    return %c0_i32, %c0_i32_0 : i32, i32
  }
  func.func @transform_5(%arg0: i32, %arg1: i32) -> (i32, i32, i32) {
    %c0_i32 = arith.constant 0 : i32
    %c0_i32_0 = arith.constant 0 : i32
    %c0_i32_1 = arith.constant 0 : i32
    return %c0_i32, %c0_i32_0, %arg1 : i32, i32, i32
  }
  func.func @transform_6(%arg0: i32, %arg1: i32) -> (i32, i32) {
    %c0_i32 = arith.constant 0 : i32
    %c0_i32_0 = arith.constant 0 : i32
    return %c0_i32, %arg1 : i32, i32
  }
  func.func @transform_7(%arg0: i32, %arg1: i32) -> (i32, i32) {
    %c0_i32 = arith.constant 0 : i32
    %c0_i32_0 = arith.constant 0 : i32
    return %arg1, %c0_i32 : i32, i32
  }
  func.func @transform_8(%arg0: i32, %arg1: i32) -> (i32, i32) {
    %c0_i32 = arith.constant 0 : i32
    %c0_i32_0 = arith.constant 0 : i32
    %c0_i32_1 = arith.constant 0 : i32
    return %c0_i32, %c0_i32_0 : i32, i32
  }
  func.func @transform_9(%arg0: i32, %arg1: i32) -> (i32, i32) {
    %c0_i32 = arith.constant 0 : i32
    %c0_i32_0 = arith.constant 0 : i32
    return %arg0, %c0_i32 : i32, i32
  }
}

</mosaic_0001>

<bundles_post_ra>
// kernel: tpu_custom_call.1
= control target key start
LH: loop header
LB: loop body
LE: loop exit
PB: predicated region body
PF: predicated region fallthrough
CT: control target
= control target key end

     0   :  { %s5993_s0 = inlined_call_operand.vmem [shape: f32[2,196,8], index: 0, kind: input, shape index: {}]   ;;  %s5994_s1 = inlined_call_operand.hbm [shape: f32[16,196], index: 1, kind: input, shape index: {}]   ;;  %s5995_s2 = inlined_call_operand.hbm [shape: f32[8,128], index: 2, kind: input, shape index: {}]   ;;  %s5996_s3 = inlined_call_operand.hbm [shape: f32[1,128], index: 3, kind: input, shape index: {}]   ;;  %s5997_s4 = inlined_call_operand.hbm [shape: f32[1,128], index: 4, kind: input, shape index: {}]   ;;  %s5998_s5 = inlined_call_operand.hbm [shape: f32[16,128,1024], index: 5, kind: input, shape index: {}]   ;;  %s5999_s6 = inlined_call_operand.hbm [shape: f32[1,1024], index: 6, kind: input, shape index: {}]   ;;  %s6000_s7 = inlined_call_operand.hbm [shape: f32[1024,128], index: 7, kind: input, shape index: {}]   ;;  %s6001_s8 = inlined_call_operand.hbm [shape: f32[1,128], index: 8, kind: input, shape index: {}]   ;;  %s6002_s9 = inlined_call_operand.hbm [shape: f32[2,128], index: 9, kind: output, shape index: {}]  }
   0x1   :  { %6020 = sst [smem:[#allocation28_spill]] %s5993_s0 }
   0x2   :  { %6021 = sst [smem:[#allocation29_spill]] %s5994_s1 }
   0x3   :  { %6022 = sst [smem:[#allocation30_spill]] %s5995_s2 }
   0x4   :  { %6023 = sst [smem:[#allocation31_spill]] %s5998_s5 }
   0x5   :  { %6024 = sst [smem:[#allocation32_spill]] %s6002_s9 }
   0x6   :  { %14 = vsyncpa [#allocation5], 0 }
   0x7   :  { %15 = vsyncpa [#allocation8], 0 }
   0x8   :  { %16 = vsyncpa [#allocation11], 0 }
   0x9   :  { %17 = vsyncpa [#allocation6], 0  ;;  %s4812_s30 = smov 0   ;;  %s4814_s10 = smov 0  }
   0xa   :  { %s4816_s11 = smov 0   ;;  %s4818_s12 = smov 0  }
   0xb   :  { %s4820_s13 = smov 0   ;;  %s4822_s14 = smov 0  }
   0xc LB: > { %6025 = sst [smem:[#allocation23_spill]] %s4731_s11  ;;  %s4841_s15 = sadd.s32 4294967295, %s4743_s14   ;;  %s4743_s14 = sphi %s4822_s14, %s23_s14   ;;  %s4739_s13 = sphi %s4820_s13, %s6069_s13   ;;  %s4735_s12 = sphi %s4818_s12, %s6068_s12   ;;  %s4731_s11 = sphi %s4816_s11, %s6064_s11   ;;  %s4727_s10 = sphi %s4814_s10, %s6067_s10   ;;  %s4723_s30 = sphi %s4812_s30, %s6066_s30  }
   0xd   : > { %6026 = sst [smem:[#allocation24_spill]] %s4735_s12  ;;  %p165_p0 = scmp.ne.s32.totalorder %s4727_s10, %s4723_s30 }
   0xe   : > { %6027 = sst [smem:[#allocation25_spill]] %s4743_s14  ;;  %p6003_p1 = scmp.eq.s32.totalorder %s4841_s15, 0 }
   0xf   : > { %p3030_p2 = scmp.ge.s32.totalorder %s4743_s14, 1  ;;  %p275_p3 = scmp.lt.s32.totalorder %s4743_s14, 5 }
  0x10   : > { %p4849_p4 = por %p6003_p1, %p165_p0  ;;  %s4745_s18 = smov [#allocation4]  }
  0x11   : > { %p4853_p5 = pnand %p3030_p2, %p275_p3  ;;  %s297_s19 = sshll.u32 %s4745_s18, 4  ;;  %s298_s19 = int_to_ptr.vmem [resolvable:$true] %s297_s19 }
  0x12   : > { %s6028_s16 = scalar_select %p4849_p4, 1, 0 }
  0x13   : > { %s6029_s17 = scalar_select %p4853_p5, 1, 0 }
  0x14   : > { %p4312_p6 = pneg %p4853_p5  ;;  %s4746_s21 = smov [#allocation7]  }
  0x15   : > { %s311_s22 = sshll.u32 %s4746_s21, 4  ;;  %s6031_s1 = sld [smem:[#allocation29_spill]]  ;;  %s4865_s22 = int_to_ptr.vmem [resolvable:$true] %s311_s22 }
  0x16   : > { %p4861_p7 = pnand %p4312_p6, %p6003_p1 }
  0x18   : > { %s6030_s20 = scalar_select %p4861_p7, 1, 0 }
  0x19   : > { %p4875_p9 = pneg %p4861_p7 }
  0x1b   : > { %s4417_s25 = scalar_lea.hbm %s6031_s1, 512 }
  0x1c   : > { %p4418_p8 = scmp.ne.s32.totalorder %s6031_s1, %s4417_s25  ;;  %p4424_p12 = scmp.lt.u32.totalorder %s4417_s25, %s6031_s1 }
  0x1d   : > { %s6032_s28 = scalar_select %p4875_p9, 1, 0 }
  0x1e   : > { %p4420_p10 = pnand %p4875_p9, %p4418_p8 }
  0x20   : > { %p4421_p11 = pneg %p4420_p10 }
  0x22   : > { %p4426_p13 = pnand %p4424_p12, %p4421_p11 }
  0x24   : > { %4429 = shalt.err (!%p4426_p13)
}
  0x25   : > { %s4430_s18 = scalar_lea.vmem %s298_s19, 512  ;;  %p4438_p6 = scmp.lt.s32.totalorder %s298_s19, %s298_s19 }
  0x26   : > { %p4431_p0 = scmp.ne.s32.totalorder %s298_s19, %s4430_s18  ;;  %p4439_p1 = scmp.lt.s32.totalorder %s4430_s18, %s4430_s18 }
  0x28   : > { %p4433_p2 = pnand %p4431_p0, %p4875_p9  ;;  %p4440_p4 = por %p4439_p1, %p4438_p6 }
  0x2a   : > { %p4434_p3 = pneg %p4433_p2 }
  0x2c   : > { %p4441_p5 = pnand %p4440_p4, %p4434_p3 }
  0x2e   : > { %4444 = shalt.err (!%p4441_p5)
}
  0x2f   : > { %s6008_s21 = smov 256   ;;  %s6009_s23 = smov 16  }
  0x30   : > { %4315 = dma.hbm_to_vmem [thread:$0]  (!%p4861_p7), %s6031_s1, 512, %s298_s19, [#allocation5], %s6008_s21, %s6008_s21, %s6009_s23  }
  0x31   : > { %s6033_s2 = sld [smem:[#allocation30_spill]] }
  0x37   : > { %s4445_s29 = scalar_lea.hbm %s6033_s2, 128 }
  0x38   : > { %p4446_p1 = scmp.ne.s32.totalorder %s6033_s2, %s4445_s29  ;;  %p4452_p8 = scmp.lt.u32.totalorder %s4445_s29, %s6033_s2 }
  0x3a   : > { %p4448_p4 = pnand %p4446_p1, %p4875_p9 }
  0x3c   : > { %p4449_p5 = pneg %p4448_p4 }
  0x3e   : > { %p4454_p10 = pnand %p4452_p8, %p4449_p5 }
  0x40   : > { %4457 = shalt.err (!%p4454_p10)
}
  0x41   : > { %s4458_s19 = scalar_lea.vmem %s4865_s22, 128  ;;  %p4466_p0 = scmp.lt.s32.totalorder %s4865_s22, %s4865_s22 }
  0x42   : > { %p4459_p11 = scmp.ne.s32.totalorder %s4865_s22, %s4458_s19  ;;  %p4467_p2 = scmp.lt.s32.totalorder %s4458_s19, %s4458_s19 }
  0x44   : > { %p4461_p12 = pnand %p4459_p11, %p4875_p9  ;;  %p4468_p3 = por %p4467_p2, %p4466_p0 }
  0x46   : > { %p4462_p13 = pneg %p4461_p12 }
  0x48   : > { %p4469_p6 = pnand %p4468_p3, %p4462_p13 }
  0x4a   : > { %4472 = shalt.err (!%p4469_p6)
}
  0x4b   : > { %4318 = dma.hbm_to_vmem [thread:$0]  (!%p4861_p7), %s6033_s2, 128, %s4865_s22, [#allocation8]  }
  0x4c   : > { %s32_s24 = sadd.s32 1, %s4739_s13  ;;  %s152_s25 = sadd.s32 1, %s4731_s11 }
  0x4d   : > { %p33_p1 = scmp.ge.s32.totalorder %s32_s24, 4  ;;  %p159_p4 = scmp.ne.s32.totalorder %s4731_s11, %s4727_s10 }
  0x4e   : > { %p160_p5 = scmp.eq.s32.totalorder %s4743_s14, 0  ;;  %p4343_p8 = scmp.lt.s32.totalorder %s4743_s14, 4 }
  0x4f   : > { %s6071_s24 = smov (%p33_p1, %s32_s24), 0  ;;  %s355_s26 = sand.u32 1, %s4743_s14  }
  0x50   : > { %6034 = sst [smem:[#allocation26_spill]] %s6071_s24  ;;  %p161_p10 = por %p160_p5, %p159_p4 }
  0x51   : > { %s149_s27 = ssub.s32 %s4739_s13, %s6071_s24  ;;  %s4929_s29 = sand.u32 1, %s4731_s11  }
  0x52   : > { %p150_p11 = scmp.eq.s32.totalorder %s149_s27, 0  ;;  %s3038_s30 = sshll.u32 %s4929_s29, 12 }
  0x53   : > { %s3582_s18 = sshll.u32 %s4739_s13, 8  ;;  %s6036_s5 = sld [smem:[#allocation31_spill]] }
  0x54   : > { %s4934_s22 = scalar_select %p150_p11, %s4731_s11, %s152_s25  }
  0x55   : > { %s359_s21 = scalar_lea.vmem [#allocation12], %s3038_s30  ;;  %p4943_p12 = pnand %p4343_p8, %p161_p10 }
  0x56   : > { %6035 = sst [smem:[#allocation27_spill]] %s4934_s22  ;;  %s366_s23 = sshll.u32 %s359_s21, 4  ;;  %s4947_s23 = int_to_ptr.vmem [resolvable:$true] %s366_s23 }
  0x57   : > { %s6037_s27 = scalar_select %p4943_p12, 1, 0 }
  0x58   : > { %s4949_s25 = scalar_lea.sflag [#allocation5], %s355_s26  ;;  %p4955_p0 = pneg %p4943_p12 }
  0x59   : > { %s4939_s9 = scalar_lea.hbm %s6036_s5, %s3582_s18  ;;  %s4478_s19 = scalar_lea.hbm %s6036_s5, 262144 }
  0x5a   : > { %s4473_s1 = scalar_lea.hbm %s4939_s9, 65536  ;;  %p4479_p6 = scmp.lt.u32.totalorder %s4939_s9, %s6036_s5 }
  0x5b   : > { %p4474_p13 = scmp.ne.s32.totalorder %s4939_s9, %s4473_s1  ;;  %p4480_p1 = scmp.lt.u32.totalorder %s4478_s19, %s4473_s1 }
  0x5c   : > { %p4482_p5 = scmp.lt.u32.totalorder %s4473_s1, %s4939_s9 }
  0x5d   : > { %p4476_p2 = pnand %p4955_p0, %p4474_p13  ;;  %p4481_p4 = por %p4480_p1, %p4479_p6 }
  0x5f   : > { %p4477_p3 = pneg %p4476_p2  ;;  %p4483_p8 = por %p4482_p5, %p4481_p4 }
  0x61   : > { %p4484_p10 = pnand %p4483_p8, %p4477_p3 }
  0x63   : > { %4487 = shalt.err (!%p4484_p10)
}
  0x64   : > { %s4488_s26 = scalar_lea.vmem %s4947_s23, 65536  ;;  %s4749_s21 = smov [#allocation12]  }
  0x65   : > { %p4489_p11 = scmp.ne.s32.totalorder %s4947_s23, %s4488_s26  ;;  %s4493_s30 = sshll.u32 %s4749_s21, 4  ;;  %s4494_s30 = int_to_ptr.vmem [resolvable:$false] %s4493_s30 }
  0x66   : > { %s4495_s2 = scalar_lea.vmem %s4494_s30, 131072  ;;  %p4496_p7 = scmp.lt.s32.totalorder %s4947_s23, %s4494_s30 }
  0x67   : > { %p4491_p13 = pnand %p4489_p11, %p4955_p0  ;;  %p4497_p9 = scmp.lt.s32.totalorder %s4495_s2, %s4488_s26 }
  0x69   : > { %p4492_p2 = pneg %p4491_p13  ;;  %p4498_p6 = por %p4497_p9, %p4496_p7 }
  0x6b   : > { %p4499_p1 = pnand %p4498_p6, %p4492_p2 }
  0x6d   : > { %4502 = shalt.err (!%p4499_p1)
}
  0x6e   : > { %s4750_s1 = smov 1024   ;;  %s6039_s19 = smov 16  }
  0x6f   : > { %s6040_s0 = smov 256   ;;  %s4751_s5 = smov [#allocation9]  }
  0x70   : > { %4331 = dma.hbm_to_vmem [thread:$0]  (!%p4943_p12), %s4939_s9, 65536, %s4947_s23, %s4949_s25, %s4750_s1, %s6040_s0, %s6039_s19  }
  0x71   : > { %s322_s21 = sshll.u32 %s4751_s5, 4  ;;  %s3041_s24 = sshll.u32 %s4929_s29, 1  ;;  %s323_s21 = int_to_ptr.vmem [resolvable:$true] %s322_s21 }
  0x72   : > { %s4503_s2 = scalar_lea.hbm %s5996_s3, 16  ;;  %p6041_p9 = scmp.ne.s32.totalorder %s6032_s28, 0 }
  0x73   : > { %p4504_p7 = scmp.ne.s32.totalorder %s5996_s3, %s4503_s2  ;;  %p4510_p5 = scmp.lt.u32.totalorder %s4503_s2, %s5996_s3 }
  0x75   : > { %p4506_p3 = pnand %p4504_p7, %p6041_p9 }
  0x77   : > { %p4507_p4 = pneg %p4506_p3 }
  0x79   : > { %p4512_p8 = pnand %p4510_p5, %p4507_p4 }
  0x7b   : > { %4515 = shalt.err (!%p4512_p8)
}
  0x7c   : > { %s4516_s5 = scalar_lea.vmem %s323_s21, 16  ;;  %s4523_s23 = scalar_lea.vmem %s323_s21, 32 }
  0x7d   : > { %p4517_p10 = scmp.ne.s32.totalorder %s323_s21, %s4516_s5  ;;  %p4524_p2 = scmp.lt.s32.totalorder %s323_s21, %s323_s21 }
  0x7e   : > { %p4525_p6 = scmp.lt.s32.totalorder %s4523_s23, %s4516_s5 }
  0x7f   : > { %p4519_p11 = pnand %p4517_p10, %p6041_p9 }
  0x80   : > { %p4526_p1 = por %p4525_p6, %p4524_p2 }
  0x81   : > { %p4520_p13 = pneg %p4519_p11 }
  0x83   : > { %p4527_p12 = pnand %p4526_p1, %p4520_p13 }
  0x85   : > { %4530 = shalt.err (!%p4527_p12)
}
  0x86   : > { %p6042_p7 = scmp.ne.s32.totalorder %s6030_s20, 0  ;;  %s3583_s12 = sshll.u32 %s4739_s13, 5 }
  0x87   : > { %s380_s14 = scalar_lea.vmem [#allocation13], %s3041_s24  ;;  %s386_s0 = scalar_lea.hbm %s5999_s6, %s3583_s12 }
  0x88   : > { %4321 = dma.hbm_to_vmem [thread:$0]  (!%p6042_p7), %s5996_s3, 16, %s323_s21, [#allocation8]  }
  0x89   : > { %s388_s9 = sshll.u32 %s380_s14, 4  ;;  %s4531_s30 = scalar_lea.hbm %s386_s0, 32  ;;  %s389_s9 = int_to_ptr.vmem [resolvable:$true] %s388_s9 }
  0x8a   : > { %p4532_p3 = scmp.ne.s32.totalorder %s386_s0, %s4531_s30  ;;  %s4536_s5 = scalar_lea.hbm %s5999_s6, 128 }
  0x8b   : > { %p4537_p5 = scmp.lt.u32.totalorder %s386_s0, %s5999_s6  ;;  %p4538_p8 = scmp.lt.u32.totalorder %s4536_s5, %s4531_s30 }
  0x8c   : > { %p4534_p12 = pnand %p4532_p3, %p4955_p0  ;;  %p4540_p11 = scmp.lt.u32.totalorder %s4531_s30, %s386_s0 }
  0x8d   : > { %p4539_p10 = por %p4538_p8, %p4537_p5 }
  0x8e   : > { %p4535_p4 = pneg %p4534_p12 }
  0x8f   : > { %p4541_p13 = por %p4540_p11, %p4539_p10 }
  0x91   : > { %p4542_p2 = pnand %p4541_p13, %p4535_p4 }
  0x93   : > { %4545 = shalt.err (!%p4542_p2)
}
  0x94   : > { %s4546_s24 = scalar_lea.vmem %s389_s9, 32  ;;  %s4752_s21 = smov [#allocation13]  }
  0x95   : > { %p4547_p6 = scmp.ne.s32.totalorder %s389_s9, %s4546_s24  ;;  %s4551_s22 = sshll.u32 %s4752_s21, 4  ;;  %s4552_s22 = int_to_ptr.vmem [resolvable:$false] %s4551_s22 }
  0x96   : > { %s4553_s12 = scalar_lea.vmem %s4552_s22, 64  ;;  %p4554_p12 = scmp.lt.s32.totalorder %s389_s9, %s4552_s22 }
  0x97   : > { %p4549_p1 = pnand %p4547_p6, %p4955_p0  ;;  %p4555_p7 = scmp.lt.s32.totalorder %s4553_s12, %s4546_s24 }
  0x99   : > { %p4550_p3 = pneg %p4549_p1  ;;  %p4556_p9 = por %p4555_p7, %p4554_p12 }
  0x9b   : > { %p4557_p5 = pnand %p4556_p9, %p4550_p3 }
  0x9d   : > { %4560 = shalt.err (!%p4557_p5)
}
  0x9e   : > { %p6043_p8 = scmp.ne.s32.totalorder %s6037_s27, 0  ;;  %s4753_s14 = smov [#allocation10]  }
  0x9f   : > { %s333_s1 = sshll.u32 %s4753_s14, 4  ;;  %s4754_s19 = smov [#allocation15]   ;;  %s334_s1 = int_to_ptr.vmem [resolvable:$true] %s333_s1 }
  0xa0   : > { %4334 = dma.hbm_to_vmem [thread:$0]  (!%p6043_p8), %s386_s0, 32, %s389_s9, %s4949_s25  }
  0xa1   : > { %s344_s30 = sshll.u32 %s4754_s19, 4  ;;  %s4561_s5 = scalar_lea.hbm %s5997_s4, 16  ;;  %s5017_s30 = int_to_ptr.vmem [resolvable:$true] %s344_s30 }
  0xa2   : > { %p4562_p9 = scmp.ne.s32.totalorder %s5997_s4, %s4561_s5  ;;  %p6044_p7 = scmp.ne.s32.totalorder %s6032_s28, 0 }
  0xa3   : > { %p4568_p11 = scmp.lt.u32.totalorder %s4561_s5, %s5997_s4 }
  0xa4   : > { %p4564_p4 = pnand %p4562_p9, %p6044_p7 }
  0xa6   : > { %p4565_p10 = pneg %p4564_p4 }
  0xa8   : > { %p4570_p13 = pnand %p4568_p11, %p4565_p10 }
  0xaa   : > { %4573 = shalt.err (!%p4570_p13)
}
  0xab   : > { %s4574_s0 = scalar_lea.vmem %s334_s1, 16  ;;  %s4581_s21 = scalar_lea.vmem %s334_s1, 32 }
  0xac   : > { %p4575_p2 = scmp.ne.s32.totalorder %s334_s1, %s4574_s0  ;;  %p4582_p3 = scmp.lt.s32.totalorder %s334_s1, %s334_s1 }
  0xad   : > { %p4583_p12 = scmp.lt.s32.totalorder %s4581_s21, %s4574_s0 }
  0xae   : > { %p4577_p6 = pnand %p4575_p2, %p6044_p7 }
  0xaf   : > { %p4584_p5 = por %p4583_p12, %p4582_p3 }
  0xb0   : > { %p4578_p1 = pneg %p4577_p6 }
  0xb2   : > { %p4585_p8 = pnand %p4584_p5, %p4578_p1 }
  0xb4   : > { %4588 = shalt.err (!%p4585_p8)
}
  0xb5   : > { %p6045_p9 = scmp.ne.s32.totalorder %s6030_s20, 0  ;;  %s4589_s26 = scalar_lea.hbm %s6001_s8, 16 }
  0xb6   : > { %p4590_p4 = scmp.ne.s32.totalorder %s6001_s8, %s4589_s26  ;;  %p4596_p8 = scmp.lt.u32.totalorder %s4589_s26, %s6001_s8 }
  0xb7   : > { %4324 = dma.hbm_to_vmem [thread:$0]  (!%p6045_p9), %s5997_s4, 16, %s334_s1, [#allocation11]  }
  0xb8   : > { %p4592_p10 = pnand %p4590_p4, %p6044_p7 }
  0xba   : > { %p4593_p11 = pneg %p4592_p10 }
  0xbc   : > { %p4598_p13 = pnand %p4596_p8, %p4593_p11 }
  0xbe   : > { %4601 = shalt.err (!%p4598_p13)
}
  0xbf   : > { %s4602_s1 = scalar_lea.vmem %s5017_s30, 16  ;;  %s4609_s24 = scalar_lea.vmem %s5017_s30, 32 }
  0xc0   : > { %p4603_p2 = scmp.ne.s32.totalorder %s5017_s30, %s4602_s1  ;;  %p4610_p3 = scmp.lt.s32.totalorder %s5017_s30, %s5017_s30 }
  0xc1   : > { %p4611_p12 = scmp.lt.s32.totalorder %s4609_s24, %s4602_s1 }
  0xc2   : > { %p4605_p6 = pnand %p4603_p2, %p6044_p7 }
  0xc3   : > { %p4612_p5 = por %p4611_p12, %p4610_p3 }
  0xc4   : > { %p4606_p1 = pneg %p4605_p6 }
  0xc6   : > { %p4613_p4 = pnand %p4612_p5, %p4606_p1 }
  0xc8   : > { %4616 = shalt.err (!%p4613_p4)
}
  0xc9   : > { %4327 = dma.hbm_to_vmem [thread:$0]  (!%p6045_p9), %s6001_s8, 16, %s5017_s30, [#allocation8]  }
  0xca   : > { %s3044_s28 = sshll.u32 %s4929_s29, 8  ;;  %s3584_s21 = sshll.u32 %s4739_s13, 12 }
  0xcb   : > { %s5066_s14 = scalar_lea.hbm %s6000_s7, %s3584_s21  ;;  %s399_s20 = scalar_lea.vmem [#allocation14], %s3044_s28 }
  0xcc   : > { %s406_s19 = sshll.u32 %s399_s20, 4  ;;  %s4617_s26 = scalar_lea.hbm %s5066_s14, 4096  ;;  %s5068_s19 = int_to_ptr.vmem [resolvable:$true] %s406_s19 }
  0xcd   : > { %p4618_p7 = scmp.ne.s32.totalorder %s5066_s14, %s4617_s26  ;;  %s4622_s2 = scalar_lea.hbm %s6000_s7, 16384 }
  0xce   : > { %p4623_p11 = scmp.lt.u32.totalorder %s5066_s14, %s6000_s7  ;;  %p4624_p8 = scmp.lt.u32.totalorder %s4622_s2, %s4617_s26 }
  0xcf   : > { %p4620_p10 = pnand %p4618_p7, %p4955_p0  ;;  %p4626_p2 = scmp.lt.u32.totalorder %s4617_s26, %s5066_s14 }
  0xd0   : > { %p4625_p13 = por %p4624_p8, %p4623_p11 }
  0xd1   : > { %p4621_p9 = pneg %p4620_p10 }
  0xd2   : > { %p4627_p6 = por %p4626_p2, %p4625_p13 }
  0xd4   : > { %p4628_p1 = pnand %p4627_p6, %p4621_p9 }
  0xd6   : > { %4631 = shalt.err (!%p4628_p1)
}
  0xd7   : > { %s4632_s11 = scalar_lea.vmem %s5068_s19, 4096  ;;  %s4755_s1 = smov [#allocation14]  }
  0xd8   : > { %p4633_p3 = scmp.ne.s32.totalorder %s5068_s19, %s4632_s11  ;;  %s4637_s24 = sshll.u32 %s4755_s1, 4  ;;  %s4638_s24 = int_to_ptr.vmem [resolvable:$false] %s4637_s24 }
  0xd9   : > { %s4639_s9 = scalar_lea.vmem %s4638_s24, 8192  ;;  %p4640_p4 = scmp.lt.s32.totalorder %s5068_s19, %s4638_s24 }
  0xda   : > { %p4635_p12 = pnand %p4633_p3, %p4955_p0  ;;  %p4641_p7 = scmp.lt.s32.totalorder %s4639_s9, %s4632_s11 }
  0xdc   : > { %p4636_p5 = pneg %p4635_p12  ;;  %p4642_p10 = por %p4641_p7, %p4640_p4 }
  0xde   : > { %p4643_p11 = pnand %p4642_p10, %p4636_p5 }
  0xe0   : > { %4646 = shalt.err (!%p4643_p11)
}
  0xe1   : > { %s4756_s0 = smov 128   ;;  %s4757_s28 = smov 8  }
  0xe2   : > { %p6046_p9 = scmp.ne.s32.totalorder %s6037_s27, 0  ;;  %p6047_p0 = scmp.ne.s32.totalorder %s6029_s17, 0 }
  0xe3   : > { %p6048_p8 = scmp.eq.s32.totalorder (!%p6047_p0), %s4841_s15, 0 }
  0xe4   : > { %4337 = dma.hbm_to_vmem [thread:$0]  (!%p6046_p9), %s5066_s14, 4096, %s5068_s19, %s4949_s25, %s4756_s0, %s4756_s0, %s4757_s28  }
  0xe5   : > { %418 = sbr.rel (%p6047_p0) target bundleno = 1792 (0x700), region = 56 }
  0xec   : > { %4698 = dma.done.wait (%p6048_p8), [#allocation5], 512   ;;  %p6049_p13 = pmov %p6048_p8 }
  0xed   : > { %p6050_p2 = pmov %p6048_p8 }
  0xee   : > { %4700 = vsyncadd (%p6049_p13), [#allocation5], 4294966784 }
  0xef   : > { %4702 = dma.done.wait (%p6050_p2), [#allocation8], 144   ;;  %p6051_p6 = pmov %p6050_p2 }
  0xf0   : > { %p6052_p1 = pmov %p6050_p2 }
  0xf1   : > { %4704 = vsyncadd (%p6051_p6), [#allocation8], 4294967152 }
  0xf2   : > { %4706 = dma.done.wait (%p6052_p1), [#allocation11], 16   ;;  %p6053_p3 = pmov %p6052_p1 }
  0xf3   : > { %s436_s17 = sand.u32 1, %s4841_s15   ;;  %s438_s27 = sand.u32 1, %s4727_s10  }
  0xf4   : > { %4708 = vsyncadd (%p6053_p3), [#allocation11], 4294967280  ;;  %s3052_s25 = sshll.u32 %s438_s27, 12  ;;  %s437_s18 = scalar_lea.sflag [#allocation5], %s436_s17 }
  0xf5   : > { %s5108_s21 = scalar_lea.vmem [#allocation12], %s3052_s25  ;;  %p6054_p12 = scmp.ne.s32.totalorder %s6028_s16, 0 }
  0xf7   : > { %4710 = dma.done.wait (%p6054_p12), %s437_s18, 69664  }
  0xf8   : > { %4712 = vsyncadd (%p6054_p12), %s437_s18, 4294897632  ;;  %s3053_s22 = sshll.u32 %s438_s27, 1  ;;  %s3054_s12 = sshll.u32 %s438_s27, 8 }
  0xf9   : > { %s5114_s14 = scalar_lea.vmem [#allocation13], %s3053_s22  ;;  %s5116_s20 = scalar_lea.vmem [#allocation14], %s3054_s12 }
  0xfa   : > { %p6055_p5 = pmov %p6052_p1 }
  0xfb   : > { %p6056_p4 = pmov %p6052_p1 }
  0xfc   : > { %4714 = dma.done.wait (%p6055_p5), [#allocation8], 16  }
  0xfd   : > { %4716 = vsyncadd (%p6056_p4), [#allocation8], 4294967280  ;;  %s6057_s19 = sld [smem:[#allocation24_spill]] }
 0x103   : > { %p3056_p7 = scmp.ne.s32.totalorder %s6057_s19, 0 }
 0x104   : > { %s6058_s30 = sld [smem:[#allocation28_spill]] (!%p3056_p7)  ;;  %v4758_v3 = vmov (!%p3056_p7), 0.0|0.0   ;;  %v4759_v6 = vmov (!%p3056_p7), 0.0   ;;  %vm551_vm0 = vcmask (!%p3056_p7), 556032   ;;  %v5151_v13 = vld [vmem:[#allocation4 + $0x8] sm:$0xff] (!%p3056_p7)  ;;  %vm558_vm1 = vcmask (!%p3056_p7), 1043456  }
 0x105   : > { %521 = sbr.rel (%p3056_p7) target bundleno = 1021 (0x3fd), region = 92  ;;  %3636 = vmatprep.subr.bf16.mxu0 (!%p3056_p7), %v4758_v3  ;;  %961 = vst [vmem:[#allocation3] sm:$0x3] (!%p3056_p7), %v4759_v6  ;;  %3058 = vmatprep.mubr.msk.f32.mxu0 (!%p3056_p7), %vm551_vm0, %v5151_v13  ;;  %v5216_v40 = vld [vmem:[#allocation4] sm:$0xff] (!%p3056_p7)  ;;  %v5218_v41 = vld [vmem:[#allocation4 + $0x18] sm:$0xff] (!%p3056_p7)  ;;  %v5224_v42 = vld [vmem:[#allocation4 + $0x10] sm:$0xff] (!%p3056_p7) }
 0x106   : > { %v637_v43 = vld [vmem:[#allocation7] sm:$0xff] (!%p3056_p7)  ;;  %vm638_vm2 = vcmask (!%p3056_p7), 64512  }
 0x107   : > { %3626 = vmatprep.subr.mxu1 (!%p3056_p7), %v637_v43 }
 0x108   : > { %3627 = vmatpush3.msra.mxu1 (!%p3056_p7), %v637_v43 }
 0x109   : > { %3672 = vmatprep.subr.bf16.mxu1 (!%p3056_p7), %v4758_v3 }
 0x10a   : > { %s6059_s2 = smov (!%p3056_p7), %s6058_s30  ;;  %v526_v0 = vld [vmem:[%s6058_s30] sm:$0xff] (!%p3056_p7) }
 0x10b   : > { %v527_v1 = vld [vmem:[%s6059_s2 + $0x8] sm:$0xff] (!%p3056_p7)  ;;  %v528_v2 = vld [vmem:[%s6059_s2 + $0x10] sm:$0xff] (!%p3056_p7)  ;;  %v529_v5 = vld [vmem:[%s6059_s2 + $0x18] sm:$0xff] (!%p3056_p7) }
 0x10c   : > { %v3637_v4 = vpack.c.bf16 %v527_v1, %v526_v0  ;;  %v3640_v7 = vpack.c.bf16 %v529_v5, %v528_v2  ;;  %v530_v8 = vld [vmem:[%s6059_s2 + $0x20] sm:$0xff]  ;;  %v531_v9 = vld [vmem:[%s6059_s2 + $0x28] sm:$0xff]  ;;  %v532_v11 = vld [vmem:[%s6059_s2 + $0x30] sm:$0xff] }
 0x10d   : > { %v3643_v10 = vpack.c.bf16 %v531_v9, %v530_v8  ;;  %v533_v12 = vld [vmem:[%s6059_s2 + $0x38] sm:$0xff]  ;;  %v534_v15 = vld [vmem:[%s6059_s2 + $0x40] sm:$0xff]  ;;  %v535_v16 = vld [vmem:[%s6059_s2 + $0x48] sm:$0xff] }
 0x10e   : > { %3638 = vmatpush1.bf16.msra.mxu0 %v3637_v4  ;;  %v3646_v14 = vpack.c.bf16 %v533_v12, %v532_v11  ;;  %v3649_v17 = vpack.c.bf16 %v535_v16, %v534_v15  ;;  %v536_v18 = vld [vmem:[%s6059_s2 + $0x50] sm:$0xff]  ;;  %v537_v19 = vld [vmem:[%s6059_s2 + $0x58] sm:$0xff]  ;;  %v538_v21 = vld [vmem:[%s6059_s2 + $0x60] sm:$0xff] }
 0x10f   : > { %3639 = vmatprep.subr.bf16.mxu0 %v4758_v3  ;;  %v3652_v20 = vpack.c.bf16 %v537_v19, %v536_v18  ;;  %v539_v22 = vld [vmem:[%s6059_s2 + $0x68] sm:$0xff]  ;;  %v540_v24 = vld [vmem:[%s6059_s2 + $0x70] sm:$0xff]  ;;  %v541_v25 = vld [vmem:[%s6059_s2 + $0x78] sm:$0xff] }
 0x110   : > { %v3655_v23 = vpack.c.bf16 %v539_v22, %v538_v21  ;;  %v3658_v26 = vpack.c.bf16 %v541_v25, %v540_v24  ;;  %v542_v27 = vld [vmem:[%s6059_s2 + $0x80] sm:$0xff]  ;;  %v543_v28 = vld [vmem:[%s6059_s2 + $0x88] sm:$0xff]  ;;  %v544_v30 = vld [vmem:[%s6059_s2 + $0x90] sm:$0xff] }
 0x111   : > { %v3661_v29 = vpack.c.bf16 %v543_v28, %v542_v27  ;;  %v545_v31 = vld [vmem:[%s6059_s2 + $0x98] sm:$0xff]  ;;  %v546_v33 = vld [vmem:[%s6059_s2 + $0xa0] sm:$0xff]  ;;  %v547_v34 = vld [vmem:[%s6059_s2 + $0xa8] sm:$0xff] }
 0x112   : > { %3641 = vmatpush1.bf16.msra.mxu0 %v3640_v7  ;;  %v3664_v32 = vpack.c.bf16 %v545_v31, %v544_v30  ;;  %v3667_v35 = vpack.c.bf16 %v547_v34, %v546_v33  ;;  %v548_v36 = vld [vmem:[%s6059_s2 + $0xb0] sm:$0xff]  ;;  %v549_v37 = vld [vmem:[%s6059_s2 + $0xb8] sm:$0xff]  ;;  %v550_v39 = vld [vmem:[%s6059_s2 + $0xc0] sm:$0xf] }
 0x113   : > { %3642 = vmatprep.subr.bf16.mxu0 %v4758_v3  ;;  %v3670_v38 = vpack.c.bf16 %v549_v37, %v548_v36  ;;  %v3064_v44 = vld [vmem:[%s6059_s2 + $0xc8] sm:$0xff]  ;;  %v3065_v45 = vld [vmem:[%s6059_s2 + $0xd0] sm:$0xff]  ;;  %v3066_v49 = vld [vmem:[%s6059_s2 + $0xd8] sm:$0xff] }
 0x114   : > { %v3673_v48 = vpack.c.bf16 %v3065_v45, %v3064_v44  ;;  %v3067_v50 = vld [vmem:[%s6059_s2 + $0xe0] sm:$0xff]  ;;  %v3068_v54 = vld [vmem:[%s6059_s2 + $0xe8] sm:$0xff]  ;;  %v3069_v55 = vld [vmem:[%s6059_s2 + $0xf0] sm:$0xff] }
 0x115   : > { %v3676_v53 = vpack.c.bf16 %v3067_v50, %v3066_v49  ;;  %v3679_v56 = vpack.c.bf16 %v3069_v55, %v3068_v54  ;;  %v3070_v57 = vld [vmem:[%s6059_s2 + $0xf8] sm:$0xff]  ;;  %v3071_v58 = vld [vmem:[%s6059_s2 + $0x100] sm:$0xff]  ;;  %v3072_v60 = vld [vmem:[%s6059_s2 + $0x108] sm:$0xff] }
 0x116   : > { %3644 = vmatpush1.bf16.msra.mxu0 %v3643_v10  ;;  %v3682_v59 = vpack.c.bf16 %v3071_v58, %v3070_v57  ;;  %v3073_v61 = vld [vmem:[%s6059_s2 + $0x110] sm:$0xff]  ;;  %v3074_v63 = vld [vmem:[%s6059_s2 + $0x118] sm:$0xff]  ;;  %v3075_v0 = vld [vmem:[%s6059_s2 + $0x120] sm:$0xff] }
 0x117   : > { %3645 = vmatprep.subr.bf16.mxu0 %v4758_v3  ;;  %v3685_v62 = vpack.c.bf16 %v3073_v61, %v3072_v60  ;;  %v3688_v1 = vpack.c.bf16 %v3075_v0, %v3074_v63  ;;  %v3076_v2 = vld [vmem:[%s6059_s2 + $0x128] sm:$0xff]  ;;  %v3077_v4 = vld [vmem:[%s6059_s2 + $0x130] sm:$0xff]  ;;  %v3078_v7 = vld [vmem:[%s6059_s2 + $0x138] sm:$0xff] }
 0x118   : > { %v3691_v5 = vpack.c.bf16 %v3077_v4, %v3076_v2  ;;  %v3079_v8 = vld [vmem:[%s6059_s2 + $0x140] sm:$0xff]  ;;  %v3080_v10 = vld [vmem:[%s6059_s2 + $0x148] sm:$0xff]  ;;  %v3081_v11 = vld [vmem:[%s6059_s2 + $0x150] sm:$0xff] }
 0x119   : > { %v3694_v9 = vpack.c.bf16 %v3079_v8, %v3078_v7  ;;  %v3697_v12 = vpack.c.bf16 %v3081_v11, %v3080_v10  ;;  %v3084_v16 = vld [vmem:[%s6059_s2 + $0x168] sm:$0xff]  ;;  %v3086_v19 = vld [vmem:[%s6059_s2 + $0x178] sm:$0xff] }
 0x11a   : > { %3647 = vmatpush1.bf16.msra.mxu0 %v3646_v14  ;;  %v3083_v14 = vld [vmem:[%s6059_s2 + $0x160] sm:$0xff]  ;;  %v3088_v22 = vld [vmem:[%s6059_s2 + $0x188] sm:$0xf]  ;;  %v3063_v25 = vld [vmem:[#allocation10] ss:$0 sm:$0xff] }
 0x11b   : > { %3648 = vmatprep.subr.bf16.mxu0 %v4758_v3 }
 0x11e   : > { %3650 = vmatpush1.bf16.msra.mxu0 %v3649_v17  ;;  %v3085_v17 = vld [vmem:[%s6059_s2 + $0x170] sm:$0xff] }
 0x11f   : > { %3651 = vmatprep.subr.bf16.mxu0 %v4758_v3  ;;  %v3703_v18 = vpack.c.bf16 %v3085_v17, %v3084_v16 }
 0x122   : > { %3653 = vmatpush1.bf16.msra.mxu0 %v3652_v20  ;;  %v3087_v20 = vld [vmem:[%s6059_s2 + $0x180] sm:$0xff] }
 0x123   : > { %3654 = vmatprep.subr.bf16.mxu0 %v4758_v3  ;;  %v3706_v21 = vpack.c.bf16 %v3087_v20, %v3086_v19 }
 0x126   : > { %3656 = vmatpush1.bf16.msra.mxu0 %v3655_v23  ;;  %v3062_v23 = vld [vmem:[#allocation9] ss:$0 sm:$0xff] }
 0x127   : > { %3657 = vmatprep.subr.bf16.mxu0 %v4758_v3 }
 0x12a   : > { %3659 = vmatpush1.bf16.msra.mxu0 %v3658_v26 }
 0x12b   : > { %3660 = vmatprep.subr.bf16.mxu0 %v4758_v3 }
 0x12e   : > { %3662 = vmatpush1.bf16.msra.mxu0 %v3661_v29 }
 0x12f   : > { %3663 = vmatprep.subr.bf16.mxu0 %v4758_v3 }
 0x132   : > { %3665 = vmatpush1.bf16.msra.mxu0 %v3664_v32 }
 0x133   : > { %3666 = vmatprep.subr.bf16.mxu0 %v4758_v3 }
 0x136   : > { %3668 = vmatpush1.bf16.msra.mxu0 %v3667_v35 }
 0x137   : > { %3669 = vmatprep.subr.bf16.mxu0 %v4758_v3 }
 0x13a   : > { %3671 = vmatpush1.bf16.msra.mxu0 %v3670_v38 }
 0x13b   : > { %610 = vmatprep.subr.mxu0 %v4759_v6 }
 0x13e   : > { %3057 = vmatpush1.msk.msra.mxu0 %vm558_vm1, %v550_v39 }
 0x13f   : > { %627 = vmatmul.mubr.f32.vlgmr.msra.gmra.mrb[0].mxu0 %v5216_v40  ;;  %3631 = vmatprep.subr.mxu0 %v637_v43 }
 0x140   : > { %3059 = vmatprep.mubr.msk.f32.mxu0 %vm551_vm0, %v5218_v41  ;;  %3632 = vmatpush3.msra.mxu0 %v637_v43 }
 0x143   : > { %632 = vmatmul.mubr.f32.gmra.mrb[2].mxu0 %v5224_v42 }
 0x212   : > { %v628_v46 = vpop.f32.mrb[0].mxu0 }
 0x213   : > { %v630_v47 = vpop.f32.mrb[1].mxu0  ;;  %3628 = vmatprep.mubr.msk.f32.mxu1 %vm638_vm2, %v628_v46 }
 0x216   : > { %v633_v51 = vpop.f32.mrb[2].mxu0 }
 0x217   : > { %v635_v52 = vpop.f32.mrb[3].mxu0  ;;  %3629 = vmatmul.mubr.msk.f32.vlgmr.msra.gmra.mrb[0].mxu1 %vm638_vm2, %v633_v51 }
 0x218   : > { %3674 = vmatpush1.bf16.msra.mxu1 %v3673_v48  ;;  %3090 = vmatprep.mubr.msk.f32.mxu1 %vm551_vm0, %v5151_v13  ;;  %v3082_v13 = vld [vmem:[%s6059_s2 + $0x158] sm:$0xff] }
 0x219   : > { %3675 = vmatprep.subr.bf16.mxu1 %v4758_v3  ;;  %v3700_v15 = vpack.c.bf16 %v3083_v14, %v3082_v13 }
 0x21c   : > { %3677 = vmatpush1.bf16.msra.mxu1 %v3676_v53 }
 0x21d   : > { %3678 = vmatprep.subr.bf16.mxu1 %v4758_v3 }
 0x220   : > { %3680 = vmatpush1.bf16.msra.mxu1 %v3679_v56 }
 0x221   : > { %3681 = vmatprep.subr.bf16.mxu1 %v4758_v3 }
 0x224   : > { %3683 = vmatpush1.bf16.msra.mxu1 %v3682_v59 }
 0x225   : > { %3684 = vmatprep.subr.bf16.mxu1 %v4758_v3 }
 0x228   : > { %3686 = vmatpush1.bf16.msra.mxu1 %v3685_v62 }
 0x229   : > { %3687 = vmatprep.subr.bf16.mxu1 %v4758_v3 }
 0x22c   : > { %3689 = vmatpush1.bf16.msra.mxu1 %v3688_v1 }
 0x22d   : > { %3690 = vmatprep.subr.bf16.mxu1 %v4758_v3 }
 0x230   : > { %3692 = vmatpush1.bf16.msra.mxu1 %v3691_v5 }
 0x231   : > { %3693 = vmatprep.subr.bf16.mxu1 %v4758_v3 }
 0x234   : > { %3695 = vmatpush1.bf16.msra.mxu1 %v3694_v9 }
 0x235   : > { %3696 = vmatprep.subr.bf16.mxu1 %v4758_v3 }
 0x238   : > { %3698 = vmatpush1.bf16.msra.mxu1 %v3697_v12 }
 0x239   : > { %3699 = vmatprep.subr.bf16.mxu1 %v4758_v3 }
 0x23c   : > { %3701 = vmatpush1.bf16.msra.mxu1 %v3700_v15 }
 0x23d   : > { %3702 = vmatprep.subr.bf16.mxu1 %v4758_v3 }
 0x240   : > { %3704 = vmatpush1.bf16.msra.mxu1 %v3703_v18 }
 0x241   : > { %3705 = vmatprep.subr.bf16.mxu1 %v4758_v3 }
 0x244   : > { %3707 = vmatpush1.bf16.msra.mxu1 %v3706_v21 }
 0x245   : > { %829 = vmatprep.subr.mxu1 %v4759_v6 }
 0x248   : > { %3089 = vmatpush1.msk.msra.mxu1 %vm558_vm1, %v3088_v22 }
 0x249   : > { %846 = vmatmul.mubr.f32.vlgmr.msra.gmra.mrb[2].mxu1 %v5216_v40 }
 0x24a   : > { %3091 = vmatprep.mubr.msk.f32.mxu1 %vm551_vm0, %v5218_v41 }
 0x24d   : > { %851 = vmatmul.mubr.f32.gmra.mrb[4].mxu1 %v5224_v42 }
 0x2ea   : > { %v3630_v24 = vpop.f32.mrb[0].mxu1 }
 0x2eb   : > { %v728_v3 = vmul.f32 %v3630_v24, %v3062_v23  ;;  %v711_v26 = vpop.f32.mrb[1].mxu1 }
 0x2ec   : > { %v727_v27 = vmul.f32 %v3062_v23, %v711_v26 }
 0x2ed   : > { %v737_v6 = vadd.f32 %v3063_v25, %v728_v3 }
 0x2ee   : > { %v736_v28 = vadd.f32 %v3063_v25, %v727_v27 }
 0x2ef   : > { %v739_v29 = vmax.f32 %v737_v6, 0.0 }
 0x2f0   : > { %v738_v30 = vmax.f32 %v736_v28, 0.0 }
 0x2f1   : > { %741 = vst [vmem:[#allocation2 + $0x8] sm:$0xff] %v739_v29 }
 0x2f2   : > { %740 = vst [vmem:[#allocation2] sm:$0xff] %v738_v30 }
 0x31c   : > { %v847_v31 = vpop.f32.mrb[2].mxu1 }
 0x31d   : > { %v849_v32 = vpop.f32.mrb[3].mxu1  ;;  %3633 = vmatprep.mubr.msk.f32.mxu0 %vm638_vm2, %v847_v31 }
 0x320   : > { %v852_v33 = vpop.f32.mrb[4].mxu1 }
 0x321   : > { %v854_v34 = vpop.f32.mrb[5].mxu1  ;;  %3634 = vmatmul.mubr.msk.f32.vlgmr.msra.gmra.mrb[4].mxu0 %vm638_vm2, %v852_v33 }
 0x3f4   : > { %v3635_v35 = vpop.f32.mrb[4].mxu0 }
 0x3f5   : > { %v946_v36 = vmul.f32 %v3635_v35, %v3062_v23  ;;  %v929_v37 = vpop.f32.mrb[5].mxu0 }
 0x3f6   : > { %v945_v38 = vmul.f32 %v3062_v23, %v929_v37 }
 0x3f7   : > { %v955_v39 = vadd.f32 %v3063_v25, %v946_v36 }
 0x3f8   : > { %v954_v40 = vadd.f32 %v3063_v25, %v945_v38 }
 0x3f9   : > { %v957_v41 = vmax.f32 %v955_v39, 0.0 }
 0x3fa   : > { %v956_v42 = vmax.f32 %v954_v40, 0.0 }
 0x3fb   : > { %960 = vst [vmem:[#allocation2 + $0x18] sm:$0xff] %v957_v41 }
 0x3fc   : > { %959 = vst [vmem:[#allocation2 + $0x10] sm:$0xff] %v956_v42 }
 0x3fd PF: > { %v3097_v43 = vld [vmem:[%s5108_s21 + $0x108] sm:$0xff]  ;;  %v3099_v44 = vld [vmem:[%s5108_s21 + $0x118] sm:$0xff]  ;;  %v3096_v48 = vld [vmem:[%s5108_s21 + $0x100] sm:$0xff]  ;;  %v4760_v50 = vmov 0.0   ;;  %vm1034_vm3 = vcmask 1041409  }
 0x3fe   : > { %v3289_v45 = vld [vmem:[%s5108_s21 + $0x708] sm:$0xff]  ;;  %v3708_v46 = vpack.c.bf16 %v3099_v44, %v3097_v43  ;;  %v3291_v47 = vld [vmem:[%s5108_s21 + $0x718] sm:$0xff]  ;;  %v3098_v49 = vld [vmem:[%s5108_s21 + $0x110] sm:$0xff]  ;;  %1101 = vmatprep.mubr.f32.mxu1 %v4760_v50  ;;  %1833 = vmatprep.mubr.f32.mxu0 %v4760_v50 }
 0x3ff   : > { %v3932_v51 = vpack.c.bf16 %v3291_v47, %v3289_v45  ;;  %v3710_v52 = vpack.c.bf16 %v3098_v49, %v3096_v48  ;;  %v3288_v53 = vld [vmem:[%s5108_s21 + $0x700] sm:$0xff]  ;;  %v3290_v54 = vld [vmem:[%s5108_s21 + $0x710] sm:$0xff]  ;;  %v3101_v55 = vld [vmem:[%s5108_s21 + $0x128] sm:$0xff] }
 0x400   : > { %3709 = vmatprep.subr.bf16.mxu1 %v3708_v46  ;;  %v3934_v56 = vpack.c.bf16 %v3290_v54, %v3288_v53  ;;  %v3103_v57 = vld [vmem:[%s5108_s21 + $0x138] sm:$0xff]  ;;  %v3293_v58 = vld [vmem:[%s5108_s21 + $0x728] sm:$0xff]  ;;  %v3100_v62 = vld [vmem:[%s5108_s21 + $0x120] sm:$0xff] }
 0x401   : > { %v3295_v59 = vld [vmem:[%s5108_s21 + $0x738] sm:$0xff]  ;;  %3933 = vmatprep.subr.bf16.mxu0 %v3932_v51  ;;  %3711 = vmatpush1.bf16.msra.mxu1 %v3710_v52  ;;  %v3712_v60 = vpack.c.bf16 %v3103_v57, %v3101_v55  ;;  %v3102_v63 = vld [vmem:[%s5108_s21 + $0x130] sm:$0xff]  ;;  %v3292_v0 = vld [vmem:[%s5108_s21 + $0x720] sm:$0xff] }
 0x402   : > { %v3936_v61 = vpack.c.bf16 %v3295_v59, %v3293_v58  ;;  %3935 = vmatpush1.bf16.msra.mxu0 %v3934_v56  ;;  %v3714_v1 = vpack.c.bf16 %v3102_v63, %v3100_v62  ;;  %v3294_v2 = vld [vmem:[%s5108_s21 + $0x730] sm:$0xff]  ;;  %v3105_v4 = vld [vmem:[%s5108_s21 + $0x148] sm:$0xff]  ;;  %v3107_v5 = vld [vmem:[%s5108_s21 + $0x158] sm:$0xff] }
 0x403   : > { %3713 = vmatprep.subr.bf16.mxu1 %v3712_v60  ;;  %v3938_v7 = vpack.c.bf16 %v3294_v2, %v3292_v0  ;;  %v3716_v8 = vpack.c.bf16 %v3107_v5, %v3105_v4  ;;  %v3297_v9 = vld [vmem:[%s5108_s21 + $0x748] sm:$0xff]  ;;  %v3299_v10 = vld [vmem:[%s5108_s21 + $0x758] sm:$0xff]  ;;  %v3104_v11 = vld [vmem:[%s5108_s21 + $0x140] sm:$0xff] }
 0x404   : > { %3937 = vmatprep.subr.bf16.mxu0 %v3936_v61  ;;  %v3940_v12 = vpack.c.bf16 %v3299_v10, %v3297_v9  ;;  %v3106_v13 = vld [vmem:[%s5108_s21 + $0x150] sm:$0xff]  ;;  %v3296_v14 = vld [vmem:[%s5108_s21 + $0x740] sm:$0xff]  ;;  %v3109_v17 = vld [vmem:[%s5108_s21 + $0x168] sm:$0xff] }
 0x405   : > { %v3298_v15 = vld [vmem:[%s5108_s21 + $0x750] sm:$0xff]  ;;  %3715 = vmatpush1.bf16.msra.mxu1 %v3714_v1  ;;  %v3718_v16 = vpack.c.bf16 %v3106_v13, %v3104_v11  ;;  %v3111_v18 = vld [vmem:[%s5108_s21 + $0x178] sm:$0xff]  ;;  %v3301_v19 = vld [vmem:[%s5108_s21 + $0x768] sm:$0xff] }
 0x406   : > { %3939 = vmatpush1.bf16.msra.mxu0 %v3938_v7  ;;  %3717 = vmatprep.subr.bf16.mxu1 %v3716_v8  ;;  %v3942_v20 = vpack.c.bf16 %v3298_v15, %v3296_v14  ;;  %v3720_v21 = vpack.c.bf16 %v3111_v18, %v3109_v17  ;;  %v3303_v22 = vld [vmem:[%s5108_s21 + $0x778] sm:$0xff]  ;;  %v3108_v23 = vld [vmem:[%s5108_s21 + $0x160] sm:$0xff]  ;;  %v3110_v24 = vld [vmem:[%s5108_s21 + $0x170] sm:$0xff] }
 0x407   : > { %3941 = vmatprep.subr.bf16.mxu0 %v3940_v12  ;;  %v3944_v25 = vpack.c.bf16 %v3303_v22, %v3301_v19  ;;  %v3300_v3 = vld [vmem:[%s5108_s21 + $0x760] sm:$0xff]  ;;  %v3302_v26 = vld [vmem:[%s5108_s21 + $0x770] sm:$0xff]  ;;  %v3113_v27 = vld [vmem:[%s5108_s21 + $0x188] sm:$0xff]  ;;  %v3722_v30 = vpack.c.bf16 %v3110_v24, %v3108_v23 }
 0x408   : > { %v3115_v6 = vld [vmem:[%s5108_s21 + $0x198] sm:$0xff]  ;;  %v3305_v28 = vld [vmem:[%s5108_s21 + $0x788] sm:$0xff]  ;;  %v3946_v31 = vpack.c.bf16 %v3302_v26, %v3300_v3  ;;  %v3112_v33 = vld [vmem:[%s5108_s21 + $0x180] sm:$0xff] }
 0x409   : > { %v3307_v29 = vld [vmem:[%s5108_s21 + $0x798] sm:$0xff]  ;;  %3719 = vmatpush1.bf16.msra.mxu1 %v3718_v16  ;;  %v3724_v32 = vpack.c.bf16 %v3115_v6, %v3113_v27  ;;  %v3114_v34 = vld [vmem:[%s5108_s21 + $0x190] sm:$0xff]  ;;  %v3304_v35 = vld [vmem:[%s5108_s21 + $0x780] sm:$0xff] }
 0x40a   : > { %3943 = vmatpush1.bf16.msra.mxu0 %v3942_v20  ;;  %3721 = vmatprep.subr.bf16.mxu1 %v3720_v21  ;;  %v3948_v36 = vpack.c.bf16 %v3307_v29, %v3305_v28  ;;  %v3306_v37 = vld [vmem:[%s5108_s21 + $0x790] sm:$0xff]  ;;  %v3117_v38 = vld [vmem:[%s5108_s21 + $0x1a8] sm:$0xff]  ;;  %v3119_v39 = vld [vmem:[%s5108_s21 + $0x1b8] sm:$0xff]  ;;  %v3726_v42 = vpack.c.bf16 %v3114_v34, %v3112_v33 }
 0x40b   : > { %3945 = vmatprep.subr.bf16.mxu0 %v3944_v25  ;;  %v3309_v40 = vld [vmem:[%s5108_s21 + $0x7a8] sm:$0xff]  ;;  %v3311_v41 = vld [vmem:[%s5108_s21 + $0x7b8] sm:$0xff]  ;;  %v3950_v43 = vpack.c.bf16 %v3306_v37, %v3304_v35  ;;  %v3728_v44 = vpack.c.bf16 %v3119_v39, %v3117_v38  ;;  %v3116_v45 = vld [vmem:[%s5108_s21 + $0x1a0] sm:$0xff] }
 0x40c   : > { %v3118_v46 = vld [vmem:[%s5108_s21 + $0x1b0] sm:$0xff]  ;;  %v3308_v47 = vld [vmem:[%s5108_s21 + $0x7a0] sm:$0xff]  ;;  %v3952_v48 = vpack.c.bf16 %v3311_v41, %v3309_v40  ;;  %v3121_v51 = vld [vmem:[%s5108_s21 + $0x1c8] sm:$0xff] }
 0x40d   : > { %3723 = vmatpush1.bf16.msra.mxu1 %v3722_v30  ;;  %v3310_v49 = vld [vmem:[%s5108_s21 + $0x7b0] sm:$0xff]  ;;  %v3123_v52 = vld [vmem:[%s5108_s21 + $0x1d8] sm:$0xff]  ;;  %v3313_v53 = vld [vmem:[%s5108_s21 + $0x7c8] sm:$0xff]  ;;  %v3730_v55 = vpack.c.bf16 %v3118_v46, %v3116_v45 }
 0x40e   : > { %3947 = vmatpush1.bf16.msra.mxu0 %v3946_v31  ;;  %3725 = vmatprep.subr.bf16.mxu1 %v3724_v32  ;;  %v3315_v54 = vld [vmem:[%s5108_s21 + $0x7d8] sm:$0xff]  ;;  %v3954_v56 = vpack.c.bf16 %v3310_v49, %v3308_v47  ;;  %v3732_v57 = vpack.c.bf16 %v3123_v52, %v3121_v51  ;;  %v3120_v58 = vld [vmem:[%s5108_s21 + $0x1c0] sm:$0xff]  ;;  %v3122_v59 = vld [vmem:[%s5108_s21 + $0x1d0] sm:$0xff] }
 0x40f   : > { %3949 = vmatprep.subr.bf16.mxu0 %v3948_v36  ;;  %v3312_v60 = vld [vmem:[%s5108_s21 + $0x7c0] sm:$0xff]  ;;  %v3956_v61 = vpack.c.bf16 %v3315_v54, %v3313_v53  ;;  %v3314_v62 = vld [vmem:[%s5108_s21 + $0x7d0] sm:$0xff]  ;;  %v3125_v63 = vld [vmem:[%s5108_s21 + $0x1e8] sm:$0xff]  ;;  %v3734_v4 = vpack.c.bf16 %v3122_v59, %v3120_v58 }
 0x410   : > { %v3127_v0 = vld [vmem:[%s5108_s21 + $0x1f8] sm:$0xff]  ;;  %v3317_v1 = vld [vmem:[%s5108_s21 + $0x7e8] sm:$0xff]  ;;  %v3124_v5 = vld [vmem:[%s5108_s21 + $0x1e0] sm:$0xff]  ;;  %v3958_v8 = vpack.c.bf16 %v3314_v62, %v3312_v60 }
 0x411   : > { %3727 = vmatpush1.bf16.msra.mxu1 %v3726_v42  ;;  %v3319_v2 = vld [vmem:[%s5108_s21 + $0x7f8] sm:$0xff]  ;;  %v3126_v7 = vld [vmem:[%s5108_s21 + $0x1f0] sm:$0xff]  ;;  %v3736_v9 = vpack.c.bf16 %v3127_v0, %v3125_v63  ;;  %v3316_v10 = vld [vmem:[%s5108_s21 + $0x7e0] sm:$0xff] }
 0x412   : > { %3951 = vmatpush1.bf16.msra.mxu0 %v3950_v43  ;;  %3729 = vmatprep.subr.bf16.mxu1 %v3728_v44  ;;  %v3318_v11 = vld [vmem:[%s5108_s21 + $0x7f0] sm:$0xff]  ;;  %v3960_v13 = vpack.c.bf16 %v3319_v2, %v3317_v1  ;;  %v967_v14 = vld [vmem:[%s5108_s21 + $0x8] sm:$0xff]  ;;  %v969_v15 = vld [vmem:[%s5108_s21 + $0x18] sm:$0xff]  ;;  %v3738_v19 = vpack.c.bf16 %v3126_v7, %v3124_v5 }
 0x413   : > { %3953 = vmatprep.subr.bf16.mxu0 %v3952_v48  ;;  %v5392_v12 = vld [vmem:[#allocation2] sm:$0xff]  ;;  %v5396_v16 = vld [vmem:[#allocation2 + $0x10] sm:$0xff]  ;;  %v3962_v21 = vpack.c.bf16 %v3318_v11, %v3316_v10  ;;  %v3740_v22 = vpack.c.bf16 %v969_v15, %v967_v14 }
 0x414   : > { %v3321_v17 = vld [vmem:[%s5108_s21 + $0x808] sm:$0xff]  ;;  %v3323_v18 = vld [vmem:[%s5108_s21 + $0x818] sm:$0xff]  ;;  %v1033_v20 = vrot.slane %v5392_v12, 1  ;;  %v966_v23 = vld [vmem:[%s5108_s21] sm:$0xff]  ;;  %v1765_v25 = vrot.slane %v5392_v12, 7  ;;  %v1766_v3 = vrot.slane %v5396_v16, 6 }
 0x415   : > { %3731 = vmatpush1.bf16.msra.mxu1 %v3730_v55  ;;  %v968_v24 = vld [vmem:[%s5108_s21 + $0x10] sm:$0xff]  ;;  %v3320_v26 = vld [vmem:[%s5108_s21 + $0x800] sm:$0xff]  ;;  %v3964_v27 = vpack.c.bf16 %v3323_v18, %v3321_v17  ;;  %v971_v28 = vld [vmem:[%s5108_s21 + $0x28] sm:$0xff] }
 0x416   : > { %3955 = vmatpush1.bf16.msra.mxu0 %v3954_v56  ;;  %3733 = vmatprep.subr.bf16.mxu1 %v3732_v57  ;;  %v3322_v6 = vld [vmem:[%s5108_s21 + $0x810] sm:$0xff]  ;;  %v973_v29 = vld [vmem:[%s5108_s21 + $0x38] sm:$0xff]  ;;  %v3325_v30 = vld [vmem:[%s5108_s21 + $0x828] sm:$0xff]  ;;  %v1035_v32 = vsel %vm1034_vm3, %v5396_v16, %v1033_v20  ;;  %v3742_v33 = vpack.c.bf16 %v968_v24, %v966_v23  ;;  %v1767_v34 = vsel %vm1034_vm3, %v1766_v3, %v1765_v25 }
 0x417   : > { %3957 = vmatprep.subr.bf16.mxu0 %v3956_v61  ;;  %v3327_v31 = vld [vmem:[%s5108_s21 + $0x838] sm:$0xff]  ;;  %v3966_v35 = vpack.c.bf16 %v3322_v6, %v3320_v26  ;;  %v3744_v36 = vpack.c.bf16 %v973_v29, %v971_v28  ;;  %v970_v37 = vld [vmem:[%s5108_s21 + $0x20] sm:$0xff]  ;;  %v972_v38 = vld [vmem:[%s5108_s21 + $0x30] sm:$0xff] }
 0x418   : > { %v3324_v39 = vld [vmem:[%s5108_s21 + $0x820] sm:$0xff]  ;;  %v3968_v40 = vpack.c.bf16 %v3327_v31, %v3325_v30  ;;  %v3326_v41 = vld [vmem:[%s5108_s21 + $0x830] sm:$0xff]  ;;  %v975_v42 = vld [vmem:[%s5108_s21 + $0x48] sm:$0xff]  ;;  %v3746_v46 = vpack.c.bf16 %v972_v38, %v970_v37 }
 0x419   : > { %3735 = vmatpush1.bf16.msra.mxu1 %v3734_v4  ;;  %v977_v43 = vld [vmem:[%s5108_s21 + $0x58] sm:$0xff]  ;;  %v3329_v44 = vld [vmem:[%s5108_s21 + $0x848] sm:$0xff]  ;;  %v3970_v47 = vpack.c.bf16 %v3326_v41, %v3324_v39  ;;  %v974_v49 = vld [vmem:[%s5108_s21 + $0x40] sm:$0xff] }
 0x41a   : > { %3959 = vmatpush1.bf16.msra.mxu0 %v3958_v8  ;;  %3737 = vmatprep.subr.bf16.mxu1 %v3736_v9  ;;  %v3331_v45 = vld [vmem:[%s5108_s21 + $0x858] sm:$0xff]  ;;  %v3748_v48 = vpack.c.bf16 %v977_v43, %v975_v42  ;;  %v976_v51 = vld [vmem:[%s5108_s21 + $0x50] sm:$0xff]  ;;  %v3328_v52 = vld [vmem:[%s5108_s21 + $0x840] sm:$0xff] }
 0x41b   : > { %3961 = vmatprep.subr.bf16.mxu0 %v3960_v13  ;;  %v3972_v53 = vpack.c.bf16 %v3331_v45, %v3329_v44  ;;  %v3330_v54 = vld [vmem:[%s5108_s21 + $0x850] sm:$0xff]  ;;  %v979_v55 = vld [vmem:[%s5108_s21 + $0x68] sm:$0xff]  ;;  %v981_v56 = vld [vmem:[%s5108_s21 + $0x78] sm:$0xff]  ;;  %v3750_v59 = vpack.c.bf16 %v976_v51, %v974_v49 }
 0x41c   : > { %v3333_v57 = vld [vmem:[%s5108_s21 + $0x868] sm:$0xff]  ;;  %v3335_v58 = vld [vmem:[%s5108_s21 + $0x878] sm:$0xff]  ;;  %v3974_v60 = vpack.c.bf16 %v3330_v54, %v3328_v52  ;;  %v3752_v61 = vpack.c.bf16 %v981_v56, %v979_v55  ;;  %v978_v62 = vld [vmem:[%s5108_s21 + $0x60] sm:$0xff] }
 0x41d   : > { %3739 = vmatpush1.bf16.msra.mxu1 %v3738_v19  ;;  %v980_v63 = vld [vmem:[%s5108_s21 + $0x70] sm:$0xff]  ;;  %v3332_v0 = vld [vmem:[%s5108_s21 + $0x860] sm:$0xff]  ;;  %v3976_v1 = vpack.c.bf16 %v3335_v58, %v3333_v57  ;;  %v983_v4 = vld [vmem:[%s5108_s21 + $0x88] sm:$0xff] }
 0x41e   : > { %3963 = vmatpush1.bf16.msra.mxu0 %v3962_v21  ;;  %3741 = vmatprep.subr.bf16.mxu1 %v3740_v22  ;;  %v3334_v2 = vld [vmem:[%s5108_s21 + $0x870] sm:$0xff]  ;;  %v985_v5 = vld [vmem:[%s5108_s21 + $0x98] sm:$0xff]  ;;  %v3337_v7 = vld [vmem:[%s5108_s21 + $0x888] sm:$0xff]  ;;  %v3754_v9 = vpack.c.bf16 %v980_v63, %v978_v62 }
 0x41f   : > { %3965 = vmatprep.subr.bf16.mxu0 %v3964_v27  ;;  %v3339_v8 = vld [vmem:[%s5108_s21 + $0x898] sm:$0xff]  ;;  %v3978_v10 = vpack.c.bf16 %v3334_v2, %v3332_v0  ;;  %v3756_v11 = vpack.c.bf16 %v985_v5, %v983_v4  ;;  %v982_v13 = vld [vmem:[%s5108_s21 + $0x80] sm:$0xff]  ;;  %v984_v14 = vld [vmem:[%s5108_s21 + $0x90] sm:$0xff] }
 0x420   : > { %1102 = vmatmul.mubr.f32.vlgmr.msra.gmra.mrb[0].mxu1 %v1035_v32  ;;  %v3336_v15 = vld [vmem:[%s5108_s21 + $0x880] sm:$0xff]  ;;  %v3980_v17 = vpack.c.bf16 %v3339_v8, %v3337_v7  ;;  %v3338_v18 = vld [vmem:[%s5108_s21 + $0x890] sm:$0xff]  ;;  %v987_v19 = vld [vmem:[%s5108_s21 + $0xa8] sm:$0xff]  ;;  %v3758_v23 = vpack.c.bf16 %v984_v14, %v982_v13 }
 0x421   : > { %3743 = vmatpush1.bf16.msra.mxu1 %v3742_v33  ;;  %1834 = vmatmul.mubr.f32.vlgmr.msra.gmra.mrb[0].mxu0 %v1767_v34  ;;  %v989_v20 = vld [vmem:[%s5108_s21 + $0xb8] sm:$0xff]  ;;  %v3341_v21 = vld [vmem:[%s5108_s21 + $0x8a8] sm:$0xff]  ;;  %v3982_v24 = vpack.c.bf16 %v3338_v18, %v3336_v15  ;;  %v986_v3 = vld [vmem:[%s5108_s21 + $0xa0] sm:$0xff] }
 0x422   : > { %3967 = vmatpush1.bf16.msra.mxu0 %v3966_v35  ;;  %3745 = vmatprep.subr.bf16.mxu1 %v3744_v36  ;;  %v3343_v22 = vld [vmem:[%s5108_s21 + $0x8b8] sm:$0xff]  ;;  %v3760_v25 = vpack.c.bf16 %v989_v20, %v987_v19  ;;  %v988_v26 = vld [vmem:[%s5108_s21 + $0xb0] sm:$0xff]  ;;  %v3340_v27 = vld [vmem:[%s5108_s21 + $0x8a0] sm:$0xff] }
 0x423   : > { %3969 = vmatprep.subr.bf16.mxu0 %v3968_v40  ;;  %1175 = vmatprep.mubr.f32.mxu1 %v4760_v50  ;;  %v3984_v6 = vpack.c.bf16 %v3343_v22, %v3341_v21  ;;  %v3342_v28 = vld [vmem:[%s5108_s21 + $0x8b0] sm:$0xff]  ;;  %v991_v29 = vld [vmem:[%s5108_s21 + $0xc8] sm:$0xff]  ;;  %v993_v30 = vld [vmem:[%s5108_s21 + $0xd8] sm:$0xff]  ;;  %v3762_v33 = vpack.c.bf16 %v988_v26, %v986_v3 }
 0x424   : > { %1944 = vmatprep.mubr.f32.mxu0 %v4760_v50  ;;  %v3345_v31 = vld [vmem:[%s5108_s21 + $0x8c8] sm:$0xff]  ;;  %v3347_v32 = vld [vmem:[%s5108_s21 + $0x8d8] sm:$0xff]  ;;  %v3986_v34 = vpack.c.bf16 %v3342_v28, %v3340_v27  ;;  %v3764_v35 = vpack.c.bf16 %v993_v30, %v991_v29  ;;  %v990_v36 = vld [vmem:[%s5108_s21 + $0xc0] sm:$0xff] }
 0x425   : > { %3747 = vmatpush1.bf16.msra.mxu1 %v3746_v46  ;;  %v992_v37 = vld [vmem:[%s5108_s21 + $0xd0] sm:$0xff]  ;;  %v3344_v38 = vld [vmem:[%s5108_s21 + $0x8c0] sm:$0xff]  ;;  %v3988_v39 = vpack.c.bf16 %v3347_v32, %v3345_v31  ;;  %v995_v41 = vld [vmem:[%s5108_s21 + $0xe8] sm:$0xff] }
 0x426   : > { %3971 = vmatpush1.bf16.msra.mxu0 %v3970_v47  ;;  %3749 = vmatprep.subr.bf16.mxu1 %v3748_v48  ;;  %v3346_v40 = vld [vmem:[%s5108_s21 + $0x8d0] sm:$0xff]  ;;  %v997_v42 = vld [vmem:[%s5108_s21 + $0xf8] sm:$0xff]  ;;  %v3349_v43 = vld [vmem:[%s5108_s21 + $0x8e8] sm:$0xff]  ;;  %v3766_v45 = vpack.c.bf16 %v992_v37, %v990_v36 }
 0x427   : > { %3973 = vmatprep.subr.bf16.mxu0 %v3972_v53  ;;  %v3351_v44 = vld [vmem:[%s5108_s21 + $0x8f8] sm:$0xff]  ;;  %v994_v46 = vld [vmem:[%s5108_s21 + $0xe0] sm:$0xff]  ;;  %v3990_v47 = vpack.c.bf16 %v3346_v40, %v3344_v38  ;;  %v3768_v48 = vpack.c.bf16 %v997_v42, %v995_v41  ;;  %v996_v49 = vld [vmem:[%s5108_s21 + $0xf0] sm:$0xff] }
 0x428   : > { %v3348_v51 = vld [vmem:[%s5108_s21 + $0x8e0] sm:$0xff]  ;;  %v3350_v52 = vld [vmem:[%s5108_s21 + $0x8f0] sm:$0xff]  ;;  %v3992_v53 = vpack.c.bf16 %v3351_v44, %v3349_v43  ;;  %v3129_v54 = vld [vmem:[%s5108_s21 + $0x208] sm:$0xff] }
 0x429   : > { %3751 = vmatpush1.bf16.msra.mxu1 %v3750_v59  ;;  %v3131_v55 = vld [vmem:[%s5108_s21 + $0x218] sm:$0xff]  ;;  %v5470_v56 = vld [vmem:[#allocation2 + $0x18] sm:$0xff]  ;;  %v3770_v59 = vpack.c.bf16 %v996_v49, %v994_v46  ;;  %v3994_v62 = vpack.c.bf16 %v3350_v52, %v3348_v51  ;;  %v3352_v4 = vld [vmem:[%s5108_s21 + $0x900] sm:$0xff] }
 0x42a   : > { %3975 = vmatpush1.bf16.msra.mxu0 %v3974_v60  ;;  %3753 = vmatprep.subr.bf16.mxu1 %v3752_v61  ;;  %v3353_v57 = vld [vmem:[%s5108_s21 + $0x908] sm:$0xff]  ;;  %v3355_v58 = vld [vmem:[%s5108_s21 + $0x918] sm:$0xff]  ;;  %v1108_v60 = vrot.slane %v5396_v16, 7  ;;  %v3128_v61 = vld [vmem:[%s5108_s21 + $0x200] sm:$0xff]  ;;  %v3772_v63 = vpack.c.bf16 %v3131_v55, %v3129_v54  ;;  %v1877_v2 = vrot.slane %v5470_v56, 7 }
 0x42b   : > { %3977 = vmatprep.subr.bf16.mxu0 %v3976_v1  ;;  %v3130_v0 = vld [vmem:[%s5108_s21 + $0x210] sm:$0xff]  ;;  %v5477_v1 = vld [vmem:[#allocation2 + $0x8] sm:$0xff]  ;;  %v3996_v5 = vpack.c.bf16 %v3355_v58, %v3353_v57  ;;  %v3133_v8 = vld [vmem:[%s5108_s21 + $0x228] sm:$0xff] }
 0x42c   : > { %v3354_v7 = vld [vmem:[%s5108_s21 + $0x910] sm:$0xff]  ;;  %v1109_v13 = vsel %vm1034_vm3, %v1108_v60, %v5392_v12  ;;  %v3774_v14 = vpack.c.bf16 %v3130_v0, %v3128_v61  ;;  %v1878_v15 = vsel %vm1034_vm3, %v1877_v2, %v5477_v1  ;;  %v3132_v19 = vld [vmem:[%s5108_s21 + $0x220] sm:$0xff]  ;;  %v3361_v3 = vld [vmem:[%s5108_s21 + $0x948] sm:$0xff] }
 0x42d   : > { %3755 = vmatpush1.bf16.msra.mxu1 %v3754_v9  ;;  %v3135_v9 = vld [vmem:[%s5108_s21 + $0x238] sm:$0xff]  ;;  %v3134_v20 = vld [vmem:[%s5108_s21 + $0x230] sm:$0xff]  ;;  %v3356_v21 = vld [vmem:[%s5108_s21 + $0x920] sm:$0xff] }
 0x42e   : > { %3979 = vmatpush1.bf16.msra.mxu0 %v3978_v10  ;;  %3757 = vmatprep.subr.bf16.mxu1 %v3756_v11  ;;  %v3357_v10 = vld [vmem:[%s5108_s21 + $0x928] sm:$0xff]  ;;  %v3359_v11 = vld [vmem:[%s5108_s21 + $0x938] sm:$0xff]  ;;  %v3776_v18 = vpack.c.bf16 %v3135_v9, %v3133_v8  ;;  %v3778_v27 = vpack.c.bf16 %v3134_v20, %v3132_v19  ;;  %v3136_v29 = vld [vmem:[%s5108_s21 + $0x240] sm:$0xff] }
 0x42f   : > { %3981 = vmatprep.subr.bf16.mxu0 %v3980_v17  ;;  %v3998_v17 = vpack.c.bf16 %v3354_v7, %v3352_v4  ;;  %v4000_v22 = vpack.c.bf16 %v3359_v11, %v3357_v10  ;;  %v3363_v26 = vld [vmem:[%s5108_s21 + $0x958] sm:$0xff]  ;;  %v3138_v30 = vld [vmem:[%s5108_s21 + $0x250] sm:$0xff]  ;;  %v3360_v31 = vld [vmem:[%s5108_s21 + $0x940] sm:$0xff] }
 0x430   : > { %v4004_v32 = vpack.c.bf16 %v3363_v26, %v3361_v3  ;;  %v3365_v36 = vld [vmem:[%s5108_s21 + $0x968] sm:$0xff]  ;;  %v3367_v37 = vld [vmem:[%s5108_s21 + $0x978] sm:$0xff]  ;;  %v3782_v38 = vpack.c.bf16 %v3138_v30, %v3136_v29  ;;  %v3140_v41 = vld [vmem:[%s5108_s21 + $0x260] sm:$0xff] }
 0x431   : > { %3759 = vmatpush1.bf16.msra.mxu1 %v3758_v23  ;;  %v3358_v23 = vld [vmem:[%s5108_s21 + $0x930] sm:$0xff]  ;;  %v3364_v43 = vld [vmem:[%s5108_s21 + $0x960] sm:$0xff]  ;;  %v4008_v44 = vpack.c.bf16 %v3367_v37, %v3365_v36  ;;  %v3145_v46 = vld [vmem:[%s5108_s21 + $0x288] sm:$0xff] }
 0x432   : > { %3983 = vmatpush1.bf16.msra.mxu0 %v3982_v24  ;;  %3761 = vmatprep.subr.bf16.mxu1 %v3760_v25  ;;  %v3137_v24 = vld [vmem:[%s5108_s21 + $0x248] sm:$0xff]  ;;  %v3139_v25 = vld [vmem:[%s5108_s21 + $0x258] sm:$0xff]  ;;  %v3142_v42 = vld [vmem:[%s5108_s21 + $0x270] sm:$0xff] }
 0x433   : > { %3985 = vmatprep.subr.bf16.mxu0 %v3984_v6  ;;  %v4002_v6 = vpack.c.bf16 %v3358_v23, %v3356_v21  ;;  %v3780_v28 = vpack.c.bf16 %v3139_v25, %v3137_v24  ;;  %v3371_v49 = vld [vmem:[%s5108_s21 + $0x998] sm:$0xff]  ;;  %v3786_v51 = vpack.c.bf16 %v3142_v42, %v3140_v41  ;;  %v3144_v54 = vld [vmem:[%s5108_s21 + $0x280] sm:$0xff]  ;;  %v3146_v55 = vld [vmem:[%s5108_s21 + $0x290] sm:$0xff]  ;;  %v1216_v41 = vrot.slane %v5396_v16, 1 }
 0x434   : > { %v3368_v57 = vld [vmem:[%s5108_s21 + $0x980] sm:$0xff]  ;;  %v3149_v60 = vld [vmem:[%s5108_s21 + $0x2a8] sm:$0xff]  ;;  %v3151_v61 = vld [vmem:[%s5108_s21 + $0x2b8] sm:$0xff]  ;;  %v3790_v0 = vpack.c.bf16 %v3146_v55, %v3144_v54 }
 0x435   : > { %3763 = vmatpush1.bf16.msra.mxu1 %v3762_v33  ;;  %v3362_v33 = vld [vmem:[%s5108_s21 + $0x950] sm:$0xff]  ;;  %v3792_v4 = vpack.c.bf16 %v3151_v61, %v3149_v60  ;;  %v3372_v8 = vld [vmem:[%s5108_s21 + $0x9a0] sm:$0xff]  ;;  %v3153_v11 = vld [vmem:[%s5108_s21 + $0x2c8] sm:$0xff] }
 0x436   : > { %3987 = vmatpush1.bf16.msra.mxu0 %v3986_v34  ;;  %3765 = vmatprep.subr.bf16.mxu1 %v3764_v35  ;;  %v3141_v34 = vld [vmem:[%s5108_s21 + $0x268] sm:$0xff]  ;;  %v3143_v35 = vld [vmem:[%s5108_s21 + $0x278] sm:$0xff]  ;;  %v3150_v7 = vld [vmem:[%s5108_s21 + $0x2b0] sm:$0xff] }
 0x437   : > { %3989 = vmatprep.subr.bf16.mxu0 %v3988_v39  ;;  %v4006_v39 = vpack.c.bf16 %v3362_v33, %v3360_v31  ;;  %v3784_v40 = vpack.c.bf16 %v3143_v35, %v3141_v34  ;;  %v3374_v10 = vld [vmem:[%s5108_s21 + $0x9b0] sm:$0xff]  ;;  %v3152_v20 = vld [vmem:[%s5108_s21 + $0x2c0] sm:$0xff]  ;;  %v3157_v25 = vld [vmem:[%s5108_s21 + $0x2e8] sm:$0xff] }
 0x438   : > { %v3154_v21 = vld [vmem:[%s5108_s21 + $0x2d0] sm:$0xff]  ;;  %v3159_v3 = vld [vmem:[%s5108_s21 + $0x2f8] sm:$0xff]  ;;  %v3381_v26 = vld [vmem:[%s5108_s21 + $0x9e8] sm:$0xff] }
 0x439   : > { %3767 = vmatpush1.bf16.msra.mxu1 %v3766_v45  ;;  %v3366_v45 = vld [vmem:[%s5108_s21 + $0x970] sm:$0xff]  ;;  %v3800_v29 = vpack.c.bf16 %v3159_v3, %v3157_v25  ;;  %v3156_v30 = vld [vmem:[%s5108_s21 + $0x2e0] sm:$0xff]  ;;  %v3161_v35 = vld [vmem:[%s5108_s21 + $0x308] sm:$0xff] }
 0x43a   : > { %3991 = vmatpush1.bf16.msra.mxu0 %v3990_v47  ;;  %3769 = vmatprep.subr.bf16.mxu1 %v3768_v48  ;;  %v3147_v47 = vld [vmem:[%s5108_s21 + $0x298] sm:$0xff]  ;;  %v3369_v48 = vld [vmem:[%s5108_s21 + $0x988] sm:$0xff]  ;;  %v4010_v52 = vpack.c.bf16 %v3366_v45, %v3364_v43  ;;  %v3378_v24 = vld [vmem:[%s5108_s21 + $0x9d0] sm:$0xff] }
 0x43b   : > { %3993 = vmatprep.subr.bf16.mxu0 %v3992_v53  ;;  %v3788_v53 = vpack.c.bf16 %v3147_v47, %v3145_v46  ;;  %v4012_v58 = vpack.c.bf16 %v3371_v49, %v3369_v48  ;;  %v3158_v31 = vld [vmem:[%s5108_s21 + $0x2f0] sm:$0xff]  ;;  %v3163_v36 = vld [vmem:[%s5108_s21 + $0x318] sm:$0xff]  ;;  %v3385_v37 = vld [vmem:[%s5108_s21 + $0xa08] sm:$0xff]  ;;  %v1986_v46 = vrot.slane %v5477_v1, 1 }
 0x43c   : > { %v3382_v34 = vld [vmem:[%s5108_s21 + $0x9f0] sm:$0xff]  ;;  %v3804_v43 = vpack.c.bf16 %v3163_v36, %v3161_v35  ;;  %v3384_v47 = vld [vmem:[%s5108_s21 + $0xa00] sm:$0xff]  ;;  %v3391_v54 = vld [vmem:[%s5108_s21 + $0xa38] sm:$0xff] }
 0x43d   : > { %3771 = vmatpush1.bf16.msra.mxu1 %v3770_v59  ;;  %v3370_v59 = vld [vmem:[%s5108_s21 + $0x990] sm:$0xff]  ;;  %v3164_v61 = vld [vmem:[%s5108_s21 + $0x320] sm:$0xff] }
 0x43e   : > { %3995 = vmatpush1.bf16.msra.mxu0 %v3994_v62  ;;  %3773 = vmatprep.subr.bf16.mxu1 %v3772_v63  ;;  %v3373_v62 = vld [vmem:[%s5108_s21 + $0x9a8] sm:$0xff]  ;;  %v3375_v63 = vld [vmem:[%s5108_s21 + $0x9b8] sm:$0xff]  ;;  %v4014_v2 = vpack.c.bf16 %v3370_v59, %v3368_v57  ;;  %v3162_v45 = vld [vmem:[%s5108_s21 + $0x310] sm:$0xff] }
 0x43f   : > { %3997 = vmatprep.subr.bf16.mxu0 %v3996_v5  ;;  %v3148_v5 = vld [vmem:[%s5108_s21 + $0x2a0] sm:$0xff]  ;;  %v4016_v9 = vpack.c.bf16 %v3375_v63, %v3373_v62  ;;  %v3386_v49 = vld [vmem:[%s5108_s21 + $0xa10] sm:$0xff] }
 0x440   : > { %1176 = vmatmul.mubr.f32.vlgmr.msra.gmra.mrb[0].mxu1 %v1109_v13  ;;  %v3155_v13 = vld [vmem:[%s5108_s21 + $0x2d8] sm:$0xff]  ;;  %v4030_v59 = vpack.c.bf16 %v3386_v49, %v3384_v47  ;;  %v3166_v62 = vld [vmem:[%s5108_s21 + $0x330] sm:$0xff]  ;;  %v3388_v63 = vld [vmem:[%s5108_s21 + $0xa20] sm:$0xff] }
 0x441   : > { %3775 = vmatpush1.bf16.msra.mxu1 %v3774_v14  ;;  %1945 = vmatmul.mubr.f32.vlgmr.msra.gmra.mrb[0].mxu0 %v1878_v15  ;;  %v3377_v14 = vld [vmem:[%s5108_s21 + $0x9c8] sm:$0xff]  ;;  %v3379_v15 = vld [vmem:[%s5108_s21 + $0x9d8] sm:$0xff]  ;;  %v3796_v19 = vpack.c.bf16 %v3155_v13, %v3153_v11  ;;  %v3168_v13 = vld [vmem:[%s5108_s21 + $0x340] sm:$0xff] }
 0x442   : > { %3999 = vmatpush1.bf16.msra.mxu0 %v3998_v17  ;;  %3777 = vmatprep.subr.bf16.mxu1 %v3776_v18  ;;  %v3794_v17 = vpack.c.bf16 %v3150_v7, %v3148_v5  ;;  %v4018_v18 = vpack.c.bf16 %v3374_v10, %v3372_v8  ;;  %v4020_v23 = vpack.c.bf16 %v3379_v15, %v3377_v14  ;;  %v3171_v5 = vld [vmem:[%s5108_s21 + $0x358] sm:$0xff]  ;;  %v3393_v7 = vld [vmem:[%s5108_s21 + $0xa48] sm:$0xff]  ;;  %v3170_v14 = vld [vmem:[%s5108_s21 + $0x350] sm:$0xff] }
 0x443   : > { %4001 = vmatprep.subr.bf16.mxu0 %v4000_v22  ;;  %1283 = vmatprep.mubr.f32.mxu1 %v4760_v50  ;;  %v3376_v22 = vld [vmem:[%s5108_s21 + $0x9c0] sm:$0xff]  ;;  %v3395_v8 = vld [vmem:[%s5108_s21 + $0xa58] sm:$0xff]  ;;  %v3182_v49 = vld [vmem:[%s5108_s21 + $0x3b0] sm:$0xff] }
 0x444   : > { %2053 = vmatprep.mubr.f32.mxu0 %v4760_v50  ;;  %v3392_v15 = vld [vmem:[%s5108_s21 + $0xa40] sm:$0xff] }
 0x445   : > { %3779 = vmatpush1.bf16.msra.mxu1 %v3778_v27  ;;  %v3383_v27 = vld [vmem:[%s5108_s21 + $0x9f8] sm:$0xff]  ;;  %v3172_v3 = vld [vmem:[%s5108_s21 + $0x360] sm:$0xff] }
 0x446   : > { %4003 = vmatpush1.bf16.msra.mxu0 %v4002_v6  ;;  %3781 = vmatprep.subr.bf16.mxu1 %v3780_v28  ;;  %v3798_v6 = vpack.c.bf16 %v3154_v21, %v3152_v20  ;;  %v4022_v28 = vpack.c.bf16 %v3378_v24, %v3376_v22  ;;  %v4024_v33 = vpack.c.bf16 %v3383_v27, %v3381_v26  ;;  %v3175_v20 = vld [vmem:[%s5108_s21 + $0x378] sm:$0xff]  ;;  %v3397_v21 = vld [vmem:[%s5108_s21 + $0xa68] sm:$0xff]  ;;  %v3174_v26 = vld [vmem:[%s5108_s21 + $0x370] sm:$0xff] }
 0x447   : > { %4005 = vmatprep.subr.bf16.mxu0 %v4004_v32  ;;  %v3380_v32 = vld [vmem:[%s5108_s21 + $0x9e0] sm:$0xff]  ;;  %v3399_v22 = vld [vmem:[%s5108_s21 + $0xa78] sm:$0xff] }
 0x448   : > { %v4026_v42 = vpack.c.bf16 %v3382_v34, %v3380_v32  ;;  %v3396_v27 = vld [vmem:[%s5108_s21 + $0xa60] sm:$0xff]  ;;  %v3403_v32 = vld [vmem:[%s5108_s21 + $0xa98] sm:$0xff] }
 0x449   : > { %3783 = vmatpush1.bf16.msra.mxu1 %v3782_v38  ;;  %v3387_v38 = vld [vmem:[%s5108_s21 + $0xa18] sm:$0xff]  ;;  %v3176_v36 = vld [vmem:[%s5108_s21 + $0x380] sm:$0xff] }
 0x44a   : > { %4007 = vmatpush1.bf16.msra.mxu0 %v4006_v39  ;;  %3785 = vmatprep.subr.bf16.mxu1 %v3784_v40  ;;  %v3802_v39 = vpack.c.bf16 %v3158_v31, %v3156_v30  ;;  %v1215_v40 = vrot.slane %v5392_v12, 2  ;;  %v4028_v48 = vpack.c.bf16 %v3387_v38, %v3385_v37  ;;  %v3179_v30 = vld [vmem:[%s5108_s21 + $0x398] sm:$0xff]  ;;  %v3401_v31 = vld [vmem:[%s5108_s21 + $0xa88] sm:$0xff]  ;;  %v3178_v37 = vld [vmem:[%s5108_s21 + $0x390] sm:$0xff] }
 0x44b   : > { %4009 = vmatprep.subr.bf16.mxu0 %v4008_v44  ;;  %v3160_v44 = vld [vmem:[%s5108_s21 + $0x300] sm:$0xff] }
 0x44c   : > { %v1217_v55 = vsel %vm1034_vm3, %v1216_v41, %v1215_v40  ;;  %v3806_v57 = vpack.c.bf16 %v3162_v45, %v3160_v44  ;;  %v3400_v38 = vld [vmem:[%s5108_s21 + $0xa80] sm:$0xff]  ;;  %v3402_v40 = vld [vmem:[%s5108_s21 + $0xa90] sm:$0xff]  ;;  %v3181_v41 = vld [vmem:[%s5108_s21 + $0x3a8] sm:$0xff]  ;;  %v3822_v45 = vpack.c.bf16 %v3178_v37, %v3176_v36 }
 0x44d   : > { %3787 = vmatpush1.bf16.msra.mxu1 %v3786_v51  ;;  %v3165_v51 = vld [vmem:[%s5108_s21 + $0x328] sm:$0xff]  ;;  %v3407_v44 = vld [vmem:[%s5108_s21 + $0xab8] sm:$0xff] }
 0x44e   : > { %4011 = vmatpush1.bf16.msra.mxu0 %v4010_v52  ;;  %3789 = vmatprep.subr.bf16.mxu1 %v3788_v53  ;;  %v3167_v52 = vld [vmem:[%s5108_s21 + $0x338] sm:$0xff]  ;;  %v3389_v53 = vld [vmem:[%s5108_s21 + $0xa28] sm:$0xff] }
 0x44f   : > { %4013 = vmatprep.subr.bf16.mxu0 %v4012_v58  ;;  %v1987_v58 = vsel %vm1034_vm3, %v5470_v56, %v1986_v46  ;;  %v3808_v60 = vpack.c.bf16 %v3167_v52, %v3165_v51  ;;  %v4046_v46 = vpack.c.bf16 %v3402_v40, %v3400_v38  ;;  %v3404_v51 = vld [vmem:[%s5108_s21 + $0xaa0] sm:$0xff] }
 0x451   : > { %3791 = vmatpush1.bf16.msra.mxu1 %v3790_v0  ;;  %v4032_v0 = vpack.c.bf16 %v3391_v54, %v3389_v53  ;;  %v3406_v53 = vld [vmem:[%s5108_s21 + $0xab0] sm:$0xff]  ;;  %v3185_v54 = vld [vmem:[%s5108_s21 + $0x3c8] sm:$0xff] }
 0x452   : > { %4015 = vmatpush1.bf16.msra.mxu0 %v4014_v2  ;;  %3793 = vmatprep.subr.bf16.mxu1 %v3792_v4  ;;  %v3390_v2 = vld [vmem:[%s5108_s21 + $0xa30] sm:$0xff]  ;;  %v3169_v4 = vld [vmem:[%s5108_s21 + $0x348] sm:$0xff] }
 0x453   : > { %4017 = vmatprep.subr.bf16.mxu0 %v4016_v9  ;;  %v3810_v9 = vpack.c.bf16 %v3166_v62, %v3164_v61  ;;  %v4034_v10 = vpack.c.bf16 %v3390_v2, %v3388_v63  ;;  %v3812_v11 = vpack.c.bf16 %v3171_v5, %v3169_v4  ;;  %v3184_v62 = vld [vmem:[%s5108_s21 + $0x3c0] sm:$0xff]  ;;  %v3186_v63 = vld [vmem:[%s5108_s21 + $0x3d0] sm:$0xff]  ;;  %v3189_v5 = vld [vmem:[%s5108_s21 + $0x3e8] sm:$0xff] }
 0x454   : > { %v3410_v4 = vld [vmem:[%s5108_s21 + $0xad0] sm:$0xff] }
 0x455   : > { %3795 = vmatpush1.bf16.msra.mxu1 %v3794_v17  ;;  %v4036_v17 = vpack.c.bf16 %v3395_v8, %v3393_v7  ;;  %v3191_v7 = vld [vmem:[%s5108_s21 + $0x3f8] sm:$0xff]  ;;  %v3413_v8 = vld [vmem:[%s5108_s21 + $0xae8] sm:$0xff] }
 0x456   : > { %4019 = vmatpush1.bf16.msra.mxu0 %v4018_v18  ;;  %3797 = vmatprep.subr.bf16.mxu1 %v3796_v19  ;;  %v3394_v18 = vld [vmem:[%s5108_s21 + $0xa50] sm:$0xff]  ;;  %v3173_v19 = vld [vmem:[%s5108_s21 + $0x368] sm:$0xff] }
 0x457   : > { %4021 = vmatprep.subr.bf16.mxu0 %v4020_v23  ;;  %v3814_v23 = vpack.c.bf16 %v3170_v14, %v3168_v13  ;;  %v4038_v24 = vpack.c.bf16 %v3394_v18, %v3392_v15  ;;  %v3816_v25 = vpack.c.bf16 %v3175_v20, %v3173_v19  ;;  %v3832_v13 = vpack.c.bf16 %v3191_v7, %v3189_v5  ;;  %v3188_v14 = vld [vmem:[%s5108_s21 + $0x3e0] sm:$0xff]  ;;  %v3190_v15 = vld [vmem:[%s5108_s21 + $0x3f0] sm:$0xff]  ;;  %v3193_v20 = vld [vmem:[%s5108_s21 + $0x408] sm:$0xff] }
 0x458   : > { %v3414_v19 = vld [vmem:[%s5108_s21 + $0xaf0] sm:$0xff]  ;;  %v3204_v5 = vld [vmem:[%s5108_s21 + $0x460] sm:$0xff] }
 0x459   : > { %3799 = vmatpush1.bf16.msra.mxu1 %v3798_v6  ;;  %v4040_v6 = vpack.c.bf16 %v3399_v22, %v3397_v21  ;;  %v3195_v21 = vld [vmem:[%s5108_s21 + $0x418] sm:$0xff]  ;;  %v3417_v22 = vld [vmem:[%s5108_s21 + $0xb08] sm:$0xff]  ;;  %v3206_v7 = vld [vmem:[%s5108_s21 + $0x470] sm:$0xff] }
 0x45a   : > { %4023 = vmatpush1.bf16.msra.mxu0 %v4022_v28  ;;  %3801 = vmatprep.subr.bf16.mxu1 %v3800_v29  ;;  %v3398_v28 = vld [vmem:[%s5108_s21 + $0xa70] sm:$0xff]  ;;  %v3177_v29 = vld [vmem:[%s5108_s21 + $0x388] sm:$0xff] }
 0x45b   : > { %4025 = vmatprep.subr.bf16.mxu0 %v4024_v33  ;;  %v3818_v33 = vpack.c.bf16 %v3174_v26, %v3172_v3  ;;  %v4042_v34 = vpack.c.bf16 %v3398_v28, %v3396_v27  ;;  %v3820_v35 = vpack.c.bf16 %v3179_v30, %v3177_v29  ;;  %v1326_v3 = vrot.slane %v5396_v16, 2  ;;  %v3194_v28 = vld [vmem:[%s5108_s21 + $0x410] sm:$0xff]  ;;  %v3199_v16 = vld [vmem:[%s5108_s21 + $0x438] sm:$0xff] }
 0x45c   : > { %v3836_v27 = vpack.c.bf16 %v3195_v21, %v3193_v20  ;;  %v2095_v29 = vrot.slane %v5477_v1, 2  ;;  %v2096_v30 = vrot.slane %v5470_v56, 1  ;;  %v3208_v20 = vld [vmem:[%s5108_s21 + $0x480] sm:$0xff]  ;;  %v3210_v21 = vld [vmem:[%s5108_s21 + $0x490] sm:$0xff] }
 0x45d   : > { %3803 = vmatpush1.bf16.msra.mxu1 %v3802_v39  ;;  %v4044_v39 = vpack.c.bf16 %v3403_v32, %v3401_v31  ;;  %v3416_v31 = vld [vmem:[%s5108_s21 + $0xb00] sm:$0xff] }
 0x45e   : > { %4027 = vmatpush1.bf16.msra.mxu0 %v4026_v42  ;;  %3805 = vmatprep.subr.bf16.mxu1 %v3804_v43  ;;  %v3183_v42 = vld [vmem:[%s5108_s21 + $0x3b8] sm:$0xff]  ;;  %v3405_v43 = vld [vmem:[%s5108_s21 + $0xaa8] sm:$0xff]  ;;  %v2097_v38 = vsel %vm1034_vm3, %v2096_v30, %v2095_v29  ;;  %v3212_v30 = vld [vmem:[%s5108_s21 + $0x4a0] sm:$0xff] }
 0x45f   : > { %4029 = vmatprep.subr.bf16.mxu0 %v4028_v48  ;;  %v3824_v47 = vpack.c.bf16 %v3183_v42, %v3181_v41  ;;  %v3180_v48 = vld [vmem:[%s5108_s21 + $0x3a0] sm:$0xff]  ;;  %v4048_v52 = vpack.c.bf16 %v3407_v44, %v3405_v43  ;;  %v3198_v42 = vld [vmem:[%s5108_s21 + $0x430] sm:$0xff] }
 0x460   : > { %1284 = vmatmul.mubr.f32.vlgmr.msra.gmra.mrb[0].mxu1 %v1217_v55  ;;  %v3187_v55 = vld [vmem:[%s5108_s21 + $0x3d8] sm:$0xff]  ;;  %v3196_v41 = vld [vmem:[%s5108_s21 + $0x420] sm:$0xff] }
 0x461   : > { %3807 = vmatpush1.bf16.msra.mxu1 %v3806_v57  ;;  %2054 = vmatmul.mubr.f32.vlgmr.msra.gmra.mrb[0].mxu0 %v1987_v58  ;;  %v3409_v57 = vld [vmem:[%s5108_s21 + $0xac8] sm:$0xff]  ;;  %v3411_v58 = vld [vmem:[%s5108_s21 + $0xad8] sm:$0xff]  ;;  %v3828_v61 = vpack.c.bf16 %v3187_v55, %v3185_v54  ;;  %v3420_v43 = vld [vmem:[%s5108_s21 + $0xb20] sm:$0xff] }
 0x462   : > { %4031 = vmatpush1.bf16.msra.mxu0 %v4030_v59  ;;  %3809 = vmatprep.subr.bf16.mxu1 %v3808_v60  ;;  %v3826_v59 = vpack.c.bf16 %v3182_v49, %v3180_v48  ;;  %v4050_v60 = vpack.c.bf16 %v3406_v53, %v3404_v51  ;;  %v4052_v2 = vpack.c.bf16 %v3411_v58, %v3409_v57  ;;  %v3425_v48 = vld [vmem:[%s5108_s21 + $0xb48] sm:$0xff]  ;;  %v3427_v49 = vld [vmem:[%s5108_s21 + $0xb58] sm:$0xff]  ;;  %v3200_v54 = vld [vmem:[%s5108_s21 + $0x440] sm:$0xff] }
 0x463   : > { %4033 = vmatprep.subr.bf16.mxu0 %v4032_v0  ;;  %1393 = vmatprep.mubr.f32.mxu1 %v4760_v50  ;;  %v3408_v0 = vld [vmem:[%s5108_s21 + $0xac0] sm:$0xff]  ;;  %v3842_v51 = vpack.c.bf16 %v3198_v42, %v3196_v41  ;;  %v3202_v55 = vld [vmem:[%s5108_s21 + $0x450] sm:$0xff]  ;;  %v4068_v58 = vpack.c.bf16 %v3427_v49, %v3425_v48  ;;  %v3447_v48 = vld [vmem:[%s5108_s21 + $0xbf8] sm:$0xff] }
 0x464   : > { %2163 = vmatprep.mubr.f32.mxu0 %v4760_v50  ;;  %v3424_v57 = vld [vmem:[%s5108_s21 + $0xb40] sm:$0xff]  ;;  %v3218_v41 = vld [vmem:[%s5108_s21 + $0x4d0] sm:$0xff] }
 0x465   : > { %3811 = vmatpush1.bf16.msra.mxu1 %v3810_v9  ;;  %v3415_v9 = vld [vmem:[%s5108_s21 + $0xaf8] sm:$0xff]  ;;  %v3440_v42 = vld [vmem:[%s5108_s21 + $0xbc0] sm:$0xff] }
 0x466   : > { %4035 = vmatpush1.bf16.msra.mxu0 %v4034_v10  ;;  %3813 = vmatprep.subr.bf16.mxu1 %v3812_v11  ;;  %v3830_v10 = vpack.c.bf16 %v3186_v63, %v3184_v62  ;;  %v4054_v11 = vpack.c.bf16 %v3410_v4, %v3408_v0  ;;  %v4056_v18 = vpack.c.bf16 %v3415_v9, %v3413_v8  ;;  %v3429_v62 = vld [vmem:[%s5108_s21 + $0xb68] sm:$0xff]  ;;  %v3431_v63 = vld [vmem:[%s5108_s21 + $0xb78] sm:$0xff]  ;;  %v3428_v8 = vld [vmem:[%s5108_s21 + $0xb60] sm:$0xff] }
 0x467   : > { %4037 = vmatprep.subr.bf16.mxu0 %v4036_v17  ;;  %v3412_v17 = vld [vmem:[%s5108_s21 + $0xae0] sm:$0xff]  ;;  %v3846_v0 = vpack.c.bf16 %v3202_v55, %v3200_v54  ;;  %v4072_v9 = vpack.c.bf16 %v3431_v63, %v3429_v62  ;;  %v3222_v54 = vld [vmem:[%s5108_s21 + $0x4f0] sm:$0xff]  ;;  %v3451_v62 = vld [vmem:[%s5108_s21 + $0xc18] sm:$0xff] }
 0x468   : > { %v4058_v26 = vpack.c.bf16 %v3414_v19, %v3412_v17  ;;  %v3850_v17 = vpack.c.bf16 %v3206_v7, %v3204_v5  ;;  %v3444_v55 = vld [vmem:[%s5108_s21 + $0xbe0] sm:$0xff] }
 0x469   : > { %3815 = vmatpush1.bf16.msra.mxu1 %v3814_v23  ;;  %v3419_v23 = vld [vmem:[%s5108_s21 + $0xb18] sm:$0xff] }
 0x46a   : > { %4039 = vmatpush1.bf16.msra.mxu0 %v4038_v24  ;;  %3817 = vmatprep.subr.bf16.mxu1 %v3816_v25  ;;  %v3834_v24 = vpack.c.bf16 %v3190_v15, %v3188_v14  ;;  %v1325_v25 = vrot.slane %v5392_v12, 3  ;;  %v4060_v32 = vpack.c.bf16 %v3419_v23, %v3417_v22  ;;  %v3418_v12 = vld [vmem:[%s5108_s21 + $0xb10] sm:$0xff]  ;;  %v3433_v14 = vld [vmem:[%s5108_s21 + $0xb88] sm:$0xff]  ;;  %v3435_v15 = vld [vmem:[%s5108_s21 + $0xb98] sm:$0xff] }
 0x46b   : > { %4041 = vmatprep.subr.bf16.mxu0 %v4040_v6  ;;  %v3192_v6 = vld [vmem:[%s5108_s21 + $0x400] sm:$0xff]  ;;  %v4076_v23 = vpack.c.bf16 %v3435_v15, %v3433_v14 }
 0x46c   : > { %v1327_v36 = vsel %vm1034_vm3, %v1326_v3, %v1325_v25  ;;  %v3838_v37 = vpack.c.bf16 %v3194_v28, %v3192_v6  ;;  %v3432_v22 = vld [vmem:[%s5108_s21 + $0xb80] sm:$0xff]  ;;  %v3213_v25 = vld [vmem:[%s5108_s21 + $0x4a8] sm:$0xff]  ;;  %v3215_v3 = vld [vmem:[%s5108_s21 + $0x4b8] sm:$0xff]  ;;  %v3854_v6 = vpack.c.bf16 %v3210_v21, %v3208_v20 }
 0x46d   : > { %3819 = vmatpush1.bf16.msra.mxu1 %v3818_v33  ;;  %v3197_v33 = vld [vmem:[%s5108_s21 + $0x428] sm:$0xff]  ;;  %v3856_v29 = vpack.c.bf16 %v3215_v3, %v3213_v25  ;;  %v3448_v14 = vld [vmem:[%s5108_s21 + $0xc00] sm:$0xff]  ;;  %v3455_v21 = vld [vmem:[%s5108_s21 + $0xc38] sm:$0xff] }
 0x46e   : > { %4043 = vmatpush1.bf16.msra.mxu0 %v4042_v34  ;;  %3821 = vmatprep.subr.bf16.mxu1 %v3820_v35  ;;  %v3421_v34 = vld [vmem:[%s5108_s21 + $0xb28] sm:$0xff]  ;;  %v3423_v35 = vld [vmem:[%s5108_s21 + $0xb38] sm:$0xff]  ;;  %v3840_v40 = vpack.c.bf16 %v3199_v16, %v3197_v33  ;;  %v3438_v33 = vld [vmem:[%s5108_s21 + $0xbb0] sm:$0xff] }
 0x46f   : > { %4045 = vmatprep.subr.bf16.mxu0 %v4044_v39  ;;  %v4062_v39 = vpack.c.bf16 %v3418_v12, %v3416_v31  ;;  %v4064_v44 = vpack.c.bf16 %v3423_v35, %v3421_v34  ;;  %v3214_v31 = vld [vmem:[%s5108_s21 + $0x4b0] sm:$0xff]  ;;  %v3217_v16 = vld [vmem:[%s5108_s21 + $0x4c8] sm:$0xff]  ;;  %v3219_v34 = vld [vmem:[%s5108_s21 + $0x4d8] sm:$0xff] }
 0x470   : > { %v3441_v35 = vld [vmem:[%s5108_s21 + $0xbc8] sm:$0xff]  ;;  %v3228_v25 = vld [vmem:[%s5108_s21 + $0x520] sm:$0xff]  ;;  %v3230_v3 = vld [vmem:[%s5108_s21 + $0x530] sm:$0xff] }
 0x471   : > { %3823 = vmatpush1.bf16.msra.mxu1 %v3822_v45  ;;  %v3422_v45 = vld [vmem:[%s5108_s21 + $0xb30] sm:$0xff]  ;;  %v3453_v20 = vld [vmem:[%s5108_s21 + $0xc28] sm:$0xff] }
 0x472   : > { %4047 = vmatpush1.bf16.msra.mxu0 %v4046_v46  ;;  %3825 = vmatprep.subr.bf16.mxu1 %v3824_v47  ;;  %v3201_v46 = vld [vmem:[%s5108_s21 + $0x448] sm:$0xff]  ;;  %v3203_v47 = vld [vmem:[%s5108_s21 + $0x458] sm:$0xff] }
 0x473   : > { %4049 = vmatprep.subr.bf16.mxu0 %v4048_v52  ;;  %v4066_v52 = vpack.c.bf16 %v3422_v45, %v3420_v43  ;;  %v3844_v53 = vpack.c.bf16 %v3203_v47, %v3201_v46  ;;  %v3221_v45 = vld [vmem:[%s5108_s21 + $0x4e8] sm:$0xff]  ;;  %v3223_v46 = vld [vmem:[%s5108_s21 + $0x4f8] sm:$0xff] }
 0x474   : > { %v3445_v47 = vld [vmem:[%s5108_s21 + $0xbe8] sm:$0xff] }
 0x475   : > { %3827 = vmatpush1.bf16.msra.mxu1 %v3826_v59  ;;  %v3426_v59 = vld [vmem:[%s5108_s21 + $0xb50] sm:$0xff] }
 0x476   : > { %4051 = vmatpush1.bf16.msra.mxu0 %v4050_v60  ;;  %3829 = vmatprep.subr.bf16.mxu1 %v3828_v61  ;;  %v3205_v60 = vld [vmem:[%s5108_s21 + $0x468] sm:$0xff]  ;;  %v3207_v61 = vld [vmem:[%s5108_s21 + $0x478] sm:$0xff] }
 0x477   : > { %4053 = vmatprep.subr.bf16.mxu0 %v4052_v2  ;;  %v4070_v2 = vpack.c.bf16 %v3426_v59, %v3424_v57  ;;  %v3848_v4 = vpack.c.bf16 %v3207_v61, %v3205_v60  ;;  %v4088_v57 = vpack.c.bf16 %v3447_v48, %v3445_v47  ;;  %v3225_v59 = vld [vmem:[%s5108_s21 + $0x508] sm:$0xff]  ;;  %v3227_v60 = vld [vmem:[%s5108_s21 + $0x518] sm:$0xff]  ;;  %v3460_v47 = vld [vmem:[%s5108_s21 + $0xc60] sm:$0xff] }
 0x478   : > { %v3449_v61 = vld [vmem:[%s5108_s21 + $0xc08] sm:$0xff] }
 0x479   : > { %3831 = vmatpush1.bf16.msra.mxu1 %v3830_v10  ;;  %v3430_v10 = vld [vmem:[%s5108_s21 + $0xb70] sm:$0xff]  ;;  %v4092_v15 = vpack.c.bf16 %v3451_v62, %v3449_v61  ;;  %v3464_v61 = vld [vmem:[%s5108_s21 + $0xc80] sm:$0xff] }
 0x47a   : > { %4055 = vmatpush1.bf16.msra.mxu0 %v4054_v11  ;;  %3833 = vmatprep.subr.bf16.mxu1 %v3832_v13  ;;  %v3209_v11 = vld [vmem:[%s5108_s21 + $0x488] sm:$0xff]  ;;  %v3211_v13 = vld [vmem:[%s5108_s21 + $0x498] sm:$0xff] }
 0x47b   : > { %4057 = vmatprep.subr.bf16.mxu0 %v4056_v18  ;;  %v4074_v18 = vpack.c.bf16 %v3430_v10, %v3428_v8  ;;  %v3852_v19 = vpack.c.bf16 %v3211_v13, %v3209_v11  ;;  %v3868_v8 = vpack.c.bf16 %v3227_v60, %v3225_v59  ;;  %v3226_v10 = vld [vmem:[%s5108_s21 + $0x510] sm:$0xff]  ;;  %v2205_v11 = vrot.slane %v5477_v1, 3  ;;  %v3240_v59 = vld [vmem:[%s5108_s21 + $0x580] sm:$0xff] }
 0x47c   : > { %v2206_v13 = vrot.slane %v5470_v56, 2  ;;  %v3242_v60 = vld [vmem:[%s5108_s21 + $0x590] sm:$0xff] }
 0x47d   : > { %3835 = vmatpush1.bf16.msra.mxu1 %v3834_v24  ;;  %v3434_v24 = vld [vmem:[%s5108_s21 + $0xb90] sm:$0xff] }
 0x47e   : > { %4059 = vmatpush1.bf16.msra.mxu0 %v4058_v26  ;;  %3837 = vmatprep.subr.bf16.mxu1 %v3836_v27  ;;  %v3437_v26 = vld [vmem:[%s5108_s21 + $0xba8] sm:$0xff]  ;;  %v3439_v27 = vld [vmem:[%s5108_s21 + $0xbb8] sm:$0xff]  ;;  %v4078_v28 = vpack.c.bf16 %v3434_v24, %v3432_v22  ;;  %v2207_v56 = vsel %vm1034_vm3, %v2206_v13, %v2205_v11  ;;  %v3244_v13 = vld [vmem:[%s5108_s21 + $0x5a0] sm:$0xff] }
 0x47f   : > { %4061 = vmatprep.subr.bf16.mxu0 %v4060_v32  ;;  %v3436_v32 = vld [vmem:[%s5108_s21 + $0xba0] sm:$0xff]  ;;  %v4080_v12 = vpack.c.bf16 %v3439_v27, %v3437_v26  ;;  %v4096_v27 = vpack.c.bf16 %v3455_v21, %v3453_v20  ;;  %v3251_v20 = vld [vmem:[%s5108_s21 + $0x5d8] sm:$0xff]  ;;  %v3473_v21 = vld [vmem:[%s5108_s21 + $0xcc8] sm:$0xff] }
 0x480   : > { %1394 = vmatmul.mubr.f32.vlgmr.msra.gmra.mrb[0].mxu1 %v1327_v36  ;;  %v3443_v36 = vld [vmem:[%s5108_s21 + $0xbd8] sm:$0xff]  ;;  %v3452_v26 = vld [vmem:[%s5108_s21 + $0xc20] sm:$0xff] }
 0x481   : > { %3839 = vmatpush1.bf16.msra.mxu1 %v3838_v37  ;;  %2164 = vmatmul.mubr.f32.vlgmr.msra.gmra.mrb[0].mxu0 %v2097_v38  ;;  %v3858_v37 = vpack.c.bf16 %v3214_v31, %v3212_v30  ;;  %v4082_v38 = vpack.c.bf16 %v3438_v33, %v3436_v32  ;;  %v4084_v43 = vpack.c.bf16 %v3443_v36, %v3441_v35  ;;  %v3457_v30 = vld [vmem:[%s5108_s21 + $0xc48] sm:$0xff]  ;;  %v3459_v31 = vld [vmem:[%s5108_s21 + $0xc58] sm:$0xff]  ;;  %v3456_v35 = vld [vmem:[%s5108_s21 + $0xc40] sm:$0xff] }
 0x482   : > { %4063 = vmatpush1.bf16.msra.mxu0 %v4062_v39  ;;  %3841 = vmatprep.subr.bf16.mxu1 %v3840_v40  ;;  %v3860_v39 = vpack.c.bf16 %v3219_v34, %v3217_v16  ;;  %v3216_v40 = vld [vmem:[%s5108_s21 + $0x4c0] sm:$0xff]  ;;  %v3874_v32 = vpack.c.bf16 %v3230_v3, %v3228_v25  ;;  %v3234_v34 = vld [vmem:[%s5108_s21 + $0x550] sm:$0xff]  ;;  %v4100_v36 = vpack.c.bf16 %v3459_v31, %v3457_v30  ;;  %v3479_v30 = vld [vmem:[%s5108_s21 + $0xcf8] sm:$0xff] }
 0x483   : > { %4065 = vmatprep.subr.bf16.mxu0 %v4064_v44  ;;  %1503 = vmatprep.mubr.f32.mxu1 %v4760_v50  ;;  %v3442_v44 = vld [vmem:[%s5108_s21 + $0xbd0] sm:$0xff]  ;;  %v3862_v49 = vpack.c.bf16 %v3218_v41, %v3216_v40  ;;  %v3232_v16 = vld [vmem:[%s5108_s21 + $0x540] sm:$0xff]  ;;  %v3461_v40 = vld [vmem:[%s5108_s21 + $0xc68] sm:$0xff] }
 0x484   : > { %2273 = vmatprep.mubr.f32.mxu0 %v4760_v50  ;;  %v3463_v41 = vld [vmem:[%s5108_s21 + $0xc78] sm:$0xff]  ;;  %v3250_v25 = vld [vmem:[%s5108_s21 + $0x5d0] sm:$0xff]  ;;  %v3472_v3 = vld [vmem:[%s5108_s21 + $0xcc0] sm:$0xff] }
 0x485   : > { %3843 = vmatpush1.bf16.msra.mxu1 %v3842_v51  ;;  %v4086_v51 = vpack.c.bf16 %v3442_v44, %v3440_v42  ;;  %v3878_v42 = vpack.c.bf16 %v3234_v34, %v3232_v16  ;;  %v4104_v48 = vpack.c.bf16 %v3463_v41, %v3461_v40  ;;  %v3254_v16 = vld [vmem:[%s5108_s21 + $0x5f0] sm:$0xff]  ;;  %v3476_v34 = vld [vmem:[%s5108_s21 + $0xce0] sm:$0xff]  ;;  %v3483_v40 = vld [vmem:[%s5108_s21 + $0xd18] sm:$0xff] }
 0x486   : > { %4067 = vmatpush1.bf16.msra.mxu0 %v4066_v52  ;;  %3845 = vmatprep.subr.bf16.mxu1 %v3844_v53  ;;  %v3864_v52 = vpack.c.bf16 %v3223_v46, %v3221_v45  ;;  %v3220_v53 = vld [vmem:[%s5108_s21 + $0x4e0] sm:$0xff]  ;;  %v3238_v46 = vld [vmem:[%s5108_s21 + $0x570] sm:$0xff] }
 0x487   : > { %4069 = vmatprep.subr.bf16.mxu0 %v4068_v58  ;;  %v3446_v58 = vld [vmem:[%s5108_s21 + $0xbf0] sm:$0xff]  ;;  %v3866_v63 = vpack.c.bf16 %v3222_v54, %v3220_v53  ;;  %v3236_v45 = vld [vmem:[%s5108_s21 + $0x560] sm:$0xff]  ;;  %v3465_v53 = vld [vmem:[%s5108_s21 + $0xc88] sm:$0xff] }
 0x488   : > { %v4090_v7 = vpack.c.bf16 %v3446_v58, %v3444_v55  ;;  %v3467_v54 = vld [vmem:[%s5108_s21 + $0xc98] sm:$0xff]  ;;  %v3882_v55 = vpack.c.bf16 %v3238_v46, %v3236_v45  ;;  %v3256_v46 = vld [vmem:[%s5108_s21 + $0x600] sm:$0xff] }
 0x489   : > { %3847 = vmatpush1.bf16.msra.mxu1 %v3846_v0  ;;  %v5692_v0 = vld [vmem:[#allocation2] sm:$0xff]  ;;  %v4108_v62 = vpack.c.bf16 %v3467_v54, %v3465_v53  ;;  %v3480_v53 = vld [vmem:[%s5108_s21 + $0xd00] sm:$0xff] }
 0x48a   : > { %4071 = vmatpush1.bf16.msra.mxu0 %v4070_v2  ;;  %3849 = vmatprep.subr.bf16.mxu1 %v3848_v4  ;;  %v1435_v2 = vrot.slane %v5692_v0, 4  ;;  %v5695_v4 = vld [vmem:[#allocation2 + $0x10] sm:$0xff] }
 0x48b   : > { %4073 = vmatprep.subr.bf16.mxu0 %v4072_v9  ;;  %v1436_v5 = vrot.slane %v5695_v4, 3  ;;  %v3224_v9 = vld [vmem:[%s5108_s21 + $0x500] sm:$0xff] }
 0x48c   : > { %v3870_v1 = vpack.c.bf16 %v3226_v10, %v3224_v9  ;;  %v3886_v9 = vpack.c.bf16 %v3242_v60, %v3240_v59  ;;  %v3485_v59 = vld [vmem:[%s5108_s21 + $0xd28] sm:$0xff]  ;;  %v3487_v60 = vld [vmem:[%s5108_s21 + $0xd38] sm:$0xff] }
 0x48d   : > { %3851 = vmatpush1.bf16.msra.mxu1 %v3850_v17  ;;  %v3450_v17 = vld [vmem:[%s5108_s21 + $0xc10] sm:$0xff]  ;;  %v1437_v22 = vsel %vm1034_vm3, %v1436_v5, %v1435_v2  ;;  %v3245_v2 = vld [vmem:[%s5108_s21 + $0x5a8] sm:$0xff]  ;;  %v3247_v5 = vld [vmem:[%s5108_s21 + $0x5b8] sm:$0xff] }
 0x48e   : > { %4075 = vmatpush1.bf16.msra.mxu0 %v4074_v18  ;;  %3853 = vmatprep.subr.bf16.mxu1 %v3852_v19  ;;  %v3229_v18 = vld [vmem:[%s5108_s21 + $0x528] sm:$0xff]  ;;  %v3231_v19 = vld [vmem:[%s5108_s21 + $0x538] sm:$0xff]  ;;  %v3888_v11 = vpack.c.bf16 %v3247_v5, %v3245_v2 }
 0x48f   : > { %4077 = vmatprep.subr.bf16.mxu0 %v4076_v23  ;;  %v4094_v23 = vpack.c.bf16 %v3450_v17, %v3448_v14  ;;  %v3872_v24 = vpack.c.bf16 %v3231_v19, %v3229_v18  ;;  %v3246_v14 = vld [vmem:[%s5108_s21 + $0x5b0] sm:$0xff]  ;;  %v3249_v19 = vld [vmem:[%s5108_s21 + $0x5c8] sm:$0xff] }
 0x490   : > { %v3470_v18 = vld [vmem:[%s5108_s21 + $0xcb0] sm:$0xff] }
 0x491   : > { %3855 = vmatpush1.bf16.msra.mxu1 %v3854_v6  ;;  %v3454_v6 = vld [vmem:[%s5108_s21 + $0xc30] sm:$0xff] }
 0x492   : > { %4079 = vmatpush1.bf16.msra.mxu0 %v4078_v28  ;;  %3857 = vmatprep.subr.bf16.mxu1 %v3856_v29  ;;  %v3233_v28 = vld [vmem:[%s5108_s21 + $0x548] sm:$0xff]  ;;  %v3235_v29 = vld [vmem:[%s5108_s21 + $0x558] sm:$0xff] }
 0x493   : > { %4081 = vmatprep.subr.bf16.mxu0 %v4080_v12  ;;  %v4098_v12 = vpack.c.bf16 %v3454_v6, %v3452_v26  ;;  %v3876_v33 = vpack.c.bf16 %v3235_v29, %v3233_v28  ;;  %v3253_v6 = vld [vmem:[%s5108_s21 + $0x5e8] sm:$0xff]  ;;  %v3255_v28 = vld [vmem:[%s5108_s21 + $0x5f8] sm:$0xff] }
 0x494   : > { %v3477_v29 = vld [vmem:[%s5108_s21 + $0xce8] sm:$0xff] }
 0x495   : > { %3859 = vmatpush1.bf16.msra.mxu1 %v3858_v37  ;;  %v3458_v37 = vld [vmem:[%s5108_s21 + $0xc50] sm:$0xff] }
 0x496   : > { %4083 = vmatpush1.bf16.msra.mxu0 %v4082_v38  ;;  %3861 = vmatprep.subr.bf16.mxu1 %v3860_v39  ;;  %v3237_v38 = vld [vmem:[%s5108_s21 + $0x568] sm:$0xff]  ;;  %v3239_v39 = vld [vmem:[%s5108_s21 + $0x578] sm:$0xff] }
 0x497   : > { %4085 = vmatprep.subr.bf16.mxu0 %v4084_v43  ;;  %v4102_v43 = vpack.c.bf16 %v3458_v37, %v3456_v35  ;;  %v3880_v44 = vpack.c.bf16 %v3239_v39, %v3237_v38  ;;  %v4120_v35 = vpack.c.bf16 %v3479_v30, %v3477_v29  ;;  %v3257_v37 = vld [vmem:[%s5108_s21 + $0x608] sm:$0xff]  ;;  %v3259_v38 = vld [vmem:[%s5108_s21 + $0x618] sm:$0xff]  ;;  %v3268_v29 = vld [vmem:[%s5108_s21 + $0x660] sm:$0xff] }
 0x498   : > { %v3481_v39 = vld [vmem:[%s5108_s21 + $0xd08] sm:$0xff]  ;;  %v3900_v45 = vpack.c.bf16 %v3259_v38, %v3257_v37  ;;  %v3270_v30 = vld [vmem:[%s5108_s21 + $0x670] sm:$0xff] }
 0x499   : > { %3863 = vmatpush1.bf16.msra.mxu1 %v3862_v49  ;;  %v3462_v49 = vld [vmem:[%s5108_s21 + $0xc70] sm:$0xff]  ;;  %v4124_v54 = vpack.c.bf16 %v3483_v40, %v3481_v39  ;;  %v3272_v39 = vld [vmem:[%s5108_s21 + $0x680] sm:$0xff] }
 0x49a   : > { %4087 = vmatpush1.bf16.msra.mxu0 %v4086_v51  ;;  %3865 = vmatprep.subr.bf16.mxu1 %v3864_v52  ;;  %v3241_v51 = vld [vmem:[%s5108_s21 + $0x588] sm:$0xff]  ;;  %v3243_v52 = vld [vmem:[%s5108_s21 + $0x598] sm:$0xff]  ;;  %v3274_v40 = vld [vmem:[%s5108_s21 + $0x690] sm:$0xff] }
 0x49b   : > { %4089 = vmatprep.subr.bf16.mxu0 %v4088_v57  ;;  %v4106_v57 = vpack.c.bf16 %v3462_v49, %v3460_v47  ;;  %v3884_v58 = vpack.c.bf16 %v3243_v52, %v3241_v51  ;;  %v3258_v47 = vld [vmem:[%s5108_s21 + $0x610] sm:$0xff] }
 0x49c   : > { %v5775_v51 = vld [vmem:[#allocation2 + $0x18] sm:$0xff] }
 0x49d   : > { %3867 = vmatpush1.bf16.msra.mxu1 %v3866_v63  ;;  %v3466_v63 = vld [vmem:[%s5108_s21 + $0xc90] sm:$0xff]  ;;  %v2316_v52 = vrot.slane %v5775_v51, 3 }
 0x49e   : > { %4091 = vmatpush1.bf16.msra.mxu0 %v4090_v7  ;;  %3869 = vmatprep.subr.bf16.mxu1 %v3868_v8  ;;  %v3469_v7 = vld [vmem:[%s5108_s21 + $0xca8] sm:$0xff]  ;;  %v3471_v8 = vld [vmem:[%s5108_s21 + $0xcb8] sm:$0xff]  ;;  %v4110_v10 = vpack.c.bf16 %v3466_v63, %v3464_v61 }
 0x49f   : > { %4093 = vmatprep.subr.bf16.mxu0 %v4092_v15  ;;  %v3468_v15 = vld [vmem:[%s5108_s21 + $0xca0] sm:$0xff]  ;;  %v4112_v17 = vpack.c.bf16 %v3471_v8, %v3469_v7  ;;  %v3262_v8 = vld [vmem:[%s5108_s21 + $0x630] sm:$0xff] }
 0x4a0   : > { %1504 = vmatmul.mubr.f32.vlgmr.msra.gmra.mrb[0].mxu1 %v1437_v22  ;;  %v3475_v22 = vld [vmem:[%s5108_s21 + $0xcd8] sm:$0xff]  ;;  %v3260_v7 = vld [vmem:[%s5108_s21 + $0x620] sm:$0xff] }
 0x4a1   : > { %3871 = vmatpush1.bf16.msra.mxu1 %v3870_v1  ;;  %2274 = vmatmul.mubr.f32.vlgmr.msra.gmra.mrb[0].mxu0 %v2207_v56  ;;  %v3890_v1 = vpack.c.bf16 %v3246_v14, %v3244_v13  ;;  %v4114_v56 = vpack.c.bf16 %v3470_v18, %v3468_v15  ;;  %v4116_v26 = vpack.c.bf16 %v3475_v22, %v3473_v21  ;;  %v3265_v13 = vld [vmem:[%s5108_s21 + $0x648] sm:$0xff]  ;;  %v3267_v14 = vld [vmem:[%s5108_s21 + $0x658] sm:$0xff]  ;;  %v3264_v21 = vld [vmem:[%s5108_s21 + $0x640] sm:$0xff] }
 0x4a2   : > { %4095 = vmatpush1.bf16.msra.mxu0 %v4094_v23  ;;  %3873 = vmatprep.subr.bf16.mxu1 %v3872_v24  ;;  %v3892_v23 = vpack.c.bf16 %v3251_v20, %v3249_v19  ;;  %v3248_v24 = vld [vmem:[%s5108_s21 + $0x5c0] sm:$0xff]  ;;  %v3489_v15 = vld [vmem:[%s5108_s21 + $0xd48] sm:$0xff]  ;;  %v3906_v18 = vpack.c.bf16 %v3262_v8, %v3260_v7  ;;  %v3908_v20 = vpack.c.bf16 %v3267_v14, %v3265_v13  ;;  %v3266_v22 = vld [vmem:[%s5108_s21 + $0x650] sm:$0xff] }
 0x4a3   : > { %4097 = vmatprep.subr.bf16.mxu0 %v4096_v27  ;;  %1613 = vmatprep.mubr.f32.mxu1 %v4760_v50  ;;  %v3474_v27 = vld [vmem:[%s5108_s21 + $0xcd0] sm:$0xff]  ;;  %v3894_v31 = vpack.c.bf16 %v3250_v25, %v3248_v24  ;;  %v3269_v24 = vld [vmem:[%s5108_s21 + $0x668] sm:$0xff]  ;;  %v3271_v25 = vld [vmem:[%s5108_s21 + $0x678] sm:$0xff] }
 0x4a4   : > { %2383 = vmatprep.mubr.f32.mxu0 %v4760_v50  ;;  %v3280_v8 = vld [vmem:[%s5108_s21 + $0x6c0] sm:$0xff]  ;;  %v3506_v13 = vld [vmem:[%s5108_s21 + $0xdd0] sm:$0xff]  ;;  %v3285_v14 = vld [vmem:[%s5108_s21 + $0x6e8] sm:$0xff] }
 0x4a5   : > { %3875 = vmatpush1.bf16.msra.mxu1 %v3874_v32  ;;  %v4118_v32 = vpack.c.bf16 %v3474_v27, %v3472_v3  ;;  %v3493_v3 = vld [vmem:[%s5108_s21 + $0xd68] sm:$0xff]  ;;  %v3910_v27 = vpack.c.bf16 %v3266_v22, %v3264_v21  ;;  %v3284_v22 = vld [vmem:[%s5108_s21 + $0x6e0] sm:$0xff] }
 0x4a6   : > { %4099 = vmatpush1.bf16.msra.mxu0 %v4098_v12  ;;  %3877 = vmatprep.subr.bf16.mxu1 %v3876_v33  ;;  %v3896_v12 = vpack.c.bf16 %v3255_v28, %v3253_v6  ;;  %v3252_v33 = vld [vmem:[%s5108_s21 + $0x5e0] sm:$0xff]  ;;  %v3912_v28 = vpack.c.bf16 %v3271_v25, %v3269_v24  ;;  %v3510_v24 = vld [vmem:[%s5108_s21 + $0xdf0] sm:$0xff]  ;;  %v3513_v25 = vld [vmem:[%s5108_s21 + $0xe08] sm:$0xff] }
 0x4a7   : > { %4101 = vmatprep.subr.bf16.mxu0 %v4100_v36  ;;  %v3478_v36 = vld [vmem:[%s5108_s21 + $0xcf0] sm:$0xff]  ;;  %v3898_v41 = vpack.c.bf16 %v3254_v16, %v3252_v33  ;;  %v3273_v33 = vld [vmem:[%s5108_s21 + $0x688] sm:$0xff]  ;;  %v3275_v16 = vld [vmem:[%s5108_s21 + $0x698] sm:$0xff] }
 0x4a8   : > { %v3916_v38 = vpack.c.bf16 %v3275_v16, %v3273_v33  ;;  %v3517_v33 = vld [vmem:[%s5108_s21 + $0xe28] sm:$0xff]  ;;  %v3519_v16 = vld [vmem:[%s5108_s21 + $0xe38] sm:$0xff] }
 0x4a9   : > { %3879 = vmatpush1.bf16.msra.mxu1 %v3878_v42  ;;  %v1545_v42 = vrot.slane %v5692_v0, 5 }
 0x4aa   : > { %4103 = vmatpush1.bf16.msra.mxu0 %v4102_v43  ;;  %3881 = vmatprep.subr.bf16.mxu1 %v3880_v44  ;;  %v1546_v43 = vrot.slane %v5695_v4, 4  ;;  %v4122_v44 = vpack.c.bf16 %v3478_v36, %v3476_v34  ;;  %v3497_v34 = vld [vmem:[%s5108_s21 + $0xd88] sm:$0xff]  ;;  %v3914_v36 = vpack.c.bf16 %v3270_v30, %v3268_v29  ;;  %v2426_v30 = vrot.slane %v5775_v51, 4 }
 0x4ab   : > { %4105 = vmatprep.subr.bf16.mxu0 %v4104_v48  ;;  %v5772_v48 = vld [vmem:[#allocation2 + $0x8] sm:$0xff] }
 0x4ac   : > { %v2315_v49 = vrot.slane %v5772_v48, 4  ;;  %v1547_v61 = vsel %vm1034_vm3, %v1546_v43, %v1545_v42  ;;  %v3498_v43 = vld [vmem:[%s5108_s21 + $0xd90] sm:$0xff]  ;;  %v2425_v29 = vrot.slane %v5772_v48, 5 }
 0x4ad   : > { %3883 = vmatpush1.bf16.msra.mxu1 %v3882_v55  ;;  %v3482_v55 = vld [vmem:[%s5108_s21 + $0xd10] sm:$0xff] }
 0x4ae   : > { %4107 = vmatpush1.bf16.msra.mxu0 %v4106_v57  ;;  %3885 = vmatprep.subr.bf16.mxu1 %v3884_v58  ;;  %v3261_v57 = vld [vmem:[%s5108_s21 + $0x628] sm:$0xff]  ;;  %v3263_v58 = vld [vmem:[%s5108_s21 + $0x638] sm:$0xff]  ;;  %v2317_v63 = vsel %vm1034_vm3, %v2316_v52, %v2315_v49  ;;  %v4126_v2 = vpack.c.bf16 %v3482_v55, %v3480_v53  ;;  %v3918_v49 = vpack.c.bf16 %v3274_v40, %v3272_v39  ;;  %v3278_v55 = vld [vmem:[%s5108_s21 + $0x6b0] sm:$0xff] }
 0x4af   : > { %4109 = vmatprep.subr.bf16.mxu0 %v4108_v62  ;;  %v3902_v62 = vpack.c.bf16 %v3258_v47, %v3256_v46  ;;  %v3904_v5 = vpack.c.bf16 %v3263_v58, %v3261_v57  ;;  %v3501_v46 = vld [vmem:[%s5108_s21 + $0xda8] sm:$0xff]  ;;  %v3503_v47 = vld [vmem:[%s5108_s21 + $0xdb8] sm:$0xff]  ;;  %v3500_v57 = vld [vmem:[%s5108_s21 + $0xda0] sm:$0xff] }
 0x4b0   : > { %v4144_v58 = vpack.c.bf16 %v3503_v47, %v3501_v46  ;;  %v3523_v39 = vld [vmem:[%s5108_s21 + $0xe58] sm:$0xff] }
 0x4b1   : > { %3887 = vmatpush1.bf16.msra.mxu1 %v3886_v9  ;;  %v3484_v9 = vld [vmem:[%s5108_s21 + $0xd20] sm:$0xff] }
 0x4b2   : > { %4111 = vmatpush1.bf16.msra.mxu0 %v4110_v10  ;;  %3889 = vmatprep.subr.bf16.mxu1 %v3888_v11  ;;  %v4128_v10 = vpack.c.bf16 %v3487_v60, %v3485_v59  ;;  %v3486_v11 = vld [vmem:[%s5108_s21 + $0xd30] sm:$0xff]  ;;  %v3281_v60 = vld [vmem:[%s5108_s21 + $0x6c8] sm:$0xff] }
 0x4b3   : > { %4113 = vmatprep.subr.bf16.mxu0 %v4112_v17  ;;  %v3491_v17 = vld [vmem:[%s5108_s21 + $0xd58] sm:$0xff]  ;;  %v4130_v19 = vpack.c.bf16 %v3486_v11, %v3484_v9  ;;  %v3502_v59 = vld [vmem:[%s5108_s21 + $0xdb0] sm:$0xff] }
 0x4b4   : > { %v3282_v9 = vld [vmem:[%s5108_s21 + $0x6d0] sm:$0xff] }
 0x4b5   : > { %3891 = vmatpush1.bf16.msra.mxu1 %v3890_v1  ;;  %v3488_v1 = vld [vmem:[%s5108_s21 + $0xd40] sm:$0xff] }
 0x4b6   : > { %4115 = vmatpush1.bf16.msra.mxu0 %v4114_v56  ;;  %3893 = vmatprep.subr.bf16.mxu1 %v3892_v23  ;;  %v4132_v56 = vpack.c.bf16 %v3491_v17, %v3489_v15  ;;  %v3490_v23 = vld [vmem:[%s5108_s21 + $0xd50] sm:$0xff]  ;;  %v3287_v15 = vld [vmem:[%s5108_s21 + $0x6f8] sm:$0xff]  ;;  %v3509_v17 = vld [vmem:[%s5108_s21 + $0xde8] sm:$0xff] }
 0x4b7   : > { %4117 = vmatprep.subr.bf16.mxu0 %v4116_v26  ;;  %v3495_v26 = vld [vmem:[%s5108_s21 + $0xd78] sm:$0xff]  ;;  %v4134_v6 = vpack.c.bf16 %v3490_v23, %v3488_v1  ;;  %v3928_v21 = vpack.c.bf16 %v3287_v15, %v3285_v14  ;;  %v3286_v1 = vld [vmem:[%s5108_s21 + $0x6f0] sm:$0xff]  ;;  %v3508_v23 = vld [vmem:[%s5108_s21 + $0xde0] sm:$0xff] }
 0x4b8   : > { %v3541_v14 = vld [vmem:[%s5108_s21 + $0xee8] sm:$0xff]  ;;  %v3543_v15 = vld [vmem:[%s5108_s21 + $0xef8] sm:$0xff] }
 0x4b9   : > { %3895 = vmatpush1.bf16.msra.mxu1 %v3894_v31  ;;  %v3492_v31 = vld [vmem:[%s5108_s21 + $0xd60] sm:$0xff] }
 0x4ba   : > { %4119 = vmatpush1.bf16.msra.mxu0 %v4118_v32  ;;  %3897 = vmatprep.subr.bf16.mxu1 %v3896_v12  ;;  %v4136_v32 = vpack.c.bf16 %v3495_v26, %v3493_v3  ;;  %v3494_v12 = vld [vmem:[%s5108_s21 + $0xd70] sm:$0xff]  ;;  %v3515_v3 = vld [vmem:[%s5108_s21 + $0xe18] sm:$0xff]  ;;  %v3930_v26 = vpack.c.bf16 %v3286_v1, %v3284_v22 }
 0x4bb   : > { %4121 = vmatprep.subr.bf16.mxu0 %v4120_v35  ;;  %v3499_v35 = vld [vmem:[%s5108_s21 + $0xd98] sm:$0xff]  ;;  %v4138_v37 = vpack.c.bf16 %v3494_v12, %v3492_v31  ;;  %v4156_v31 = vpack.c.bf16 %v3515_v3, %v3513_v25  ;;  %v3514_v12 = vld [vmem:[%s5108_s21 + $0xe10] sm:$0xff]  ;;  %v3544_v25 = vld [vmem:[%s5108_s21 + $0xf00] sm:$0xff] }
 0x4bc   : > { %v4140_v42 = vpack.c.bf16 %v3499_v35, %v3497_v34  ;;  %v4160_v35 = vpack.c.bf16 %v3519_v16, %v3517_v33  ;;  %v3547_v22 = vld [vmem:[%s5108_s21 + $0xf18] sm:$0xff]  ;;  %v3546_v3 = vld [vmem:[%s5108_s21 + $0xf10] sm:$0xff] }
 0x4bd   : > { %3899 = vmatpush1.bf16.msra.mxu1 %v3898_v41  ;;  %v3496_v41 = vld [vmem:[%s5108_s21 + $0xd80] sm:$0xff] }
 0x4be   : > { %4123 = vmatpush1.bf16.msra.mxu0 %v4122_v44  ;;  %3901 = vmatprep.subr.bf16.mxu1 %v3900_v45  ;;  %v3277_v44 = vld [vmem:[%s5108_s21 + $0x6a8] sm:$0xff]  ;;  %v3279_v45 = vld [vmem:[%s5108_s21 + $0x6b8] sm:$0xff]  ;;  %v4142_v52 = vpack.c.bf16 %v3498_v43, %v3496_v41  ;;  %v3522_v43 = vld [vmem:[%s5108_s21 + $0xe50] sm:$0xff] }
 0x4bf   : > { %4125 = vmatprep.subr.bf16.mxu0 %v4124_v54  ;;  %v3920_v53 = vpack.c.bf16 %v3279_v45, %v3277_v44  ;;  %v3276_v54 = vld [vmem:[%s5108_s21 + $0x6a0] sm:$0xff]  ;;  %v3525_v44 = vld [vmem:[%s5108_s21 + $0xe68] sm:$0xff]  ;;  %v3527_v45 = vld [vmem:[%s5108_s21 + $0xe78] sm:$0xff] }
 0x4c0   : > { %1614 = vmatmul.mubr.f32.vlgmr.msra.gmra.mrb[0].mxu1 %v1547_v61  ;;  %v3283_v61 = vld [vmem:[%s5108_s21 + $0x6d8] sm:$0xff]  ;;  %v4168_v47 = vpack.c.bf16 %v3527_v45, %v3525_v44  ;;  %v3562_v44 = vld [vmem:[%s5108_s21 + $0xf90] sm:$0xff]  ;;  %v3565_v45 = vld [vmem:[%s5108_s21 + $0xfa8] sm:$0xff] }
 0x4c1   : > { %3903 = vmatpush1.bf16.msra.mxu1 %v3902_v62  ;;  %2384 = vmatmul.mubr.f32.vlgmr.msra.gmra.mrb[0].mxu0 %v2317_v63  ;;  %v3505_v62 = vld [vmem:[%s5108_s21 + $0xdc8] sm:$0xff]  ;;  %v3507_v63 = vld [vmem:[%s5108_s21 + $0xdd8] sm:$0xff]  ;;  %v3924_v7 = vpack.c.bf16 %v3283_v61, %v3281_v60 }
 0x4c2   : > { %4127 = vmatpush1.bf16.msra.mxu0 %v4126_v2  ;;  %3905 = vmatprep.subr.bf16.mxu1 %v3904_v5  ;;  %v3922_v2 = vpack.c.bf16 %v3278_v55, %v3276_v54  ;;  %v4146_v5 = vpack.c.bf16 %v3502_v59, %v3500_v57  ;;  %v4148_v11 = vpack.c.bf16 %v3507_v63, %v3505_v62  ;;  %v3531_v54 = vld [vmem:[%s5108_s21 + $0xe98] sm:$0xff]  ;;  %v3530_v59 = vld [vmem:[%s5108_s21 + $0xe90] sm:$0xff]  ;;  %v3533_v60 = vld [vmem:[%s5108_s21 + $0xea8] sm:$0xff] }
 0x4c3   : > { %4129 = vmatprep.subr.bf16.mxu0 %v4128_v10  ;;  %1723 = vmatprep.mubr.f32.mxu1 %v4760_v50  ;;  %v3504_v10 = vld [vmem:[%s5108_s21 + $0xdc0] sm:$0xff]  ;;  %v3535_v61 = vld [vmem:[%s5108_s21 + $0xeb8] sm:$0xff] }
 0x4c4   : > { %2493 = vmatprep.mubr.f32.mxu0 %v4760_v50  ;;  %v4176_v63 = vpack.c.bf16 %v3535_v61, %v3533_v60  ;;  %v3570_v60 = vld [vmem:[%s5108_s21 + $0xfd0] sm:$0xff]  ;;  %v3573_v61 = vld [vmem:[%s5108_s21 + $0xfe8] sm:$0xff] }
 0x4c5   : > { %3907 = vmatpush1.bf16.msra.mxu1 %v3906_v18  ;;  %v3511_v18 = vld [vmem:[%s5108_s21 + $0xdf8] sm:$0xff] }
 0x4c6   : > { %4131 = vmatpush1.bf16.msra.mxu0 %v4130_v19  ;;  %3909 = vmatprep.subr.bf16.mxu1 %v3908_v20  ;;  %v3926_v19 = vpack.c.bf16 %v3282_v9, %v3280_v8  ;;  %v4150_v20 = vpack.c.bf16 %v3506_v13, %v3504_v10  ;;  %v3539_v8 = vld [vmem:[%s5108_s21 + $0xed8] sm:$0xff]  ;;  %v3538_v13 = vld [vmem:[%s5108_s21 + $0xed0] sm:$0xff] }
 0x4c7   : > { %4133 = vmatprep.subr.bf16.mxu0 %v4132_v56  ;;  %v4152_v56 = vpack.c.bf16 %v3511_v18, %v3509_v17  ;;  %v4184_v18 = vpack.c.bf16 %v3543_v15, %v3541_v14  ;;  %v2756_v14 = vld [vmem:[%s5116_s20 + $0x88] sm:$0xff]  ;;  %v2739_v15 = vld [vmem:[%s5116_s20] sm:$0xff] }
 0x4c9   : > { %3911 = vmatpush1.bf16.msra.mxu1 %v3910_v27  ;;  %v1655_v27 = vrot.slane %v5692_v0, 6 }
 0x4ca   : > { %4135 = vmatpush1.bf16.msra.mxu0 %v4134_v6  ;;  %3913 = vmatprep.subr.bf16.mxu1 %v3912_v28  ;;  %v1656_v6 = vrot.slane %v5695_v4, 5  ;;  %v4154_v28 = vpack.c.bf16 %v3510_v24, %v3508_v23  ;;  %v2427_v4 = vsel %vm1034_vm3, %v2426_v30, %v2425_v29  ;;  %v2536_v23 = vrot.slane %v5775_v51, 5  ;;  %v3548_v30 = vld [vmem:[%s5108_s21 + $0xf20] sm:$0xff] }
 0x4cb   : > { %4137 = vmatprep.subr.bf16.mxu0 %v4136_v32  ;;  %v3512_v32 = vld [vmem:[%s5108_s21 + $0xe00] sm:$0xff] }
 0x4cc   : > { %v1657_v0 = vsel %vm1034_vm3, %v1656_v6, %v1655_v27  ;;  %v4158_v34 = vpack.c.bf16 %v3514_v12, %v3512_v32  ;;  %v3551_v27 = vld [vmem:[%s5108_s21 + $0xf38] sm:$0xff]  ;;  %v3553_v32 = vld [vmem:[%s5108_s21 + $0xf48] sm:$0xff] }
 0x4cd   : > { %3915 = vmatpush1.bf16.msra.mxu1 %v3914_v36  ;;  %v3516_v36 = vld [vmem:[%s5108_s21 + $0xe20] sm:$0xff]  ;;  %v3555_v12 = vld [vmem:[%s5108_s21 + $0xf58] sm:$0xff] }
 0x4ce   : > { %4139 = vmatpush1.bf16.msra.mxu0 %v4138_v37  ;;  %3917 = vmatprep.subr.bf16.mxu1 %v3916_v38  ;;  %v3518_v37 = vld [vmem:[%s5108_s21 + $0xe30] sm:$0xff]  ;;  %v3521_v38 = vld [vmem:[%s5108_s21 + $0xe48] sm:$0xff]  ;;  %v4196_v16 = vpack.c.bf16 %v3555_v12, %v3553_v32 }
 0x4cf   : > { %4141 = vmatprep.subr.bf16.mxu0 %v4140_v42  ;;  %v4162_v40 = vpack.c.bf16 %v3518_v37, %v3516_v36  ;;  %v4164_v41 = vpack.c.bf16 %v3523_v39, %v3521_v38  ;;  %v3520_v42 = vld [vmem:[%s5108_s21 + $0xe40] sm:$0xff]  ;;  %v3558_v39 = vld [vmem:[%s5108_s21 + $0xf70] sm:$0xff] }
 0x4d0   : > { %v4166_v46 = vpack.c.bf16 %v3522_v43, %v3520_v42  ;;  %v3556_v38 = vld [vmem:[%s5108_s21 + $0xf60] sm:$0xff]  ;;  %v2764_v32 = vld [vmem:[%s5116_s20 + $0xc8] sm:$0xff] }
 0x4d1   : > { %3919 = vmatpush1.bf16.msra.mxu1 %v3918_v49  ;;  %v3524_v49 = vld [vmem:[%s5108_s21 + $0xe60] sm:$0xff] }
 0x4d2   : > { %4143 = vmatpush1.bf16.msra.mxu0 %v4142_v52  ;;  %3921 = vmatprep.subr.bf16.mxu1 %v3920_v53  ;;  %v3526_v52 = vld [vmem:[%s5108_s21 + $0xe70] sm:$0xff]  ;;  %v3529_v53 = vld [vmem:[%s5108_s21 + $0xe88] sm:$0xff]  ;;  %v3560_v43 = vld [vmem:[%s5108_s21 + $0xf80] sm:$0xff] }
 0x4d3   : > { %4145 = vmatprep.subr.bf16.mxu0 %v4144_v58  ;;  %v4170_v55 = vpack.c.bf16 %v3526_v52, %v3524_v49  ;;  %v4172_v57 = vpack.c.bf16 %v3531_v54, %v3529_v53  ;;  %v3528_v58 = vld [vmem:[%s5108_s21 + $0xe80] sm:$0xff]  ;;  %v3566_v53 = vld [vmem:[%s5108_s21 + $0xfb0] sm:$0xff]  ;;  %v3569_v54 = vld [vmem:[%s5108_s21 + $0xfc8] sm:$0xff] }
 0x4d4   : > { %v4174_v62 = vpack.c.bf16 %v3530_v59, %v3528_v58  ;;  %v3564_v52 = vld [vmem:[%s5108_s21 + $0xfa0] sm:$0xff] }
 0x4d5   : > { %3923 = vmatpush1.bf16.msra.mxu1 %v3922_v2  ;;  %v3532_v2 = vld [vmem:[%s5108_s21 + $0xea0] sm:$0xff] }
 0x4d6   : > { %4147 = vmatpush1.bf16.msra.mxu0 %v4146_v5  ;;  %3925 = vmatprep.subr.bf16.mxu1 %v3924_v7  ;;  %v3534_v5 = vld [vmem:[%s5108_s21 + $0xeb0] sm:$0xff]  ;;  %v3537_v7 = vld [vmem:[%s5108_s21 + $0xec8] sm:$0xff]  ;;  %v3568_v59 = vld [vmem:[%s5108_s21 + $0xfc0] sm:$0xff] }
 0x4d7   : > { %4149 = vmatprep.subr.bf16.mxu0 %v4148_v11  ;;  %v4178_v9 = vpack.c.bf16 %v3534_v5, %v3532_v2  ;;  %v4180_v10 = vpack.c.bf16 %v3539_v8, %v3537_v7  ;;  %v3536_v11 = vld [vmem:[%s5108_s21 + $0xec0] sm:$0xff]  ;;  %v3574_v7 = vld [vmem:[%s5108_s21 + $0xff0] sm:$0xff] }
 0x4d8   : > { %v4182_v17 = vpack.c.bf16 %v3538_v13, %v3536_v11  ;;  %v3572_v5 = vld [vmem:[%s5108_s21 + $0xfe0] sm:$0xff] }
 0x4d9   : > { %3927 = vmatpush1.bf16.msra.mxu1 %v3926_v19  ;;  %v3540_v19 = vld [vmem:[%s5108_s21 + $0xee0] sm:$0xff]  ;;  %v4218_v8 = vpack.c.bf16 %v3574_v7, %v3572_v5 }
 0x4da   : > { %4151 = vmatpush1.bf16.msra.mxu0 %v4150_v20  ;;  %3929 = vmatprep.subr.bf16.mxu1 %v3928_v21  ;;  %v3542_v20 = vld [vmem:[%s5108_s21 + $0xef0] sm:$0xff]  ;;  %v3545_v21 = vld [vmem:[%s5108_s21 + $0xf08] sm:$0xff] }
 0x4db   : > { %4153 = vmatprep.subr.bf16.mxu0 %v4152_v56  ;;  %v4186_v1 = vpack.c.bf16 %v3542_v20, %v3540_v19  ;;  %v2535_v56 = vrot.slane %v5772_v48, 6  ;;  %v4188_v24 = vpack.c.bf16 %v3547_v22, %v3545_v21  ;;  %v2755_v13 = vld [vmem:[%s5116_s20 + $0x80] sm:$0xff]  ;;  %v2757_v19 = vld [vmem:[%s5116_s20 + $0x90] sm:$0xff]  ;;  %v2742_v22 = vld [vmem:[%s5116_s20 + $0x18] sm:$0xff] }
 0x4dc   : > { %v2741_v21 = vld [vmem:[%s5116_s20 + $0x10] sm:$0xff] }
 0x4dd   : > { %3931 = vmatpush1.bf16.msra.mxu1 %v3930_v26  ;;  %v3549_v26 = vld [vmem:[%s5108_s21 + $0xf28] sm:$0xff]  ;;  %v2537_v6 = vsel %vm1034_vm3, %v2536_v23, %v2535_v56  ;;  %v4226_v23 = vpack.c.bf16 %v2742_v22, %v2741_v21 }
 0x4de   : > { %4155 = vmatpush1.bf16.msra.mxu0 %v4154_v28  ;;  %v4190_v28 = vpack.c.bf16 %v3546_v3, %v3544_v25  ;;  %v4192_v29 = vpack.c.bf16 %v3551_v27, %v3549_v26  ;;  %v2760_v56 = vld [vmem:[%s5116_s20 + $0xa8] sm:$0xff]  ;;  %v2743_v25 = vld [vmem:[%s5116_s20 + $0x20] sm:$0xff]  ;;  %v2761_v26 = vld [vmem:[%s5116_s20 + $0xb0] sm:$0xff] }
 0x4df   : > { %4157 = vmatprep.subr.bf16.mxu0 %v4156_v31  ;;  %v3550_v31 = vld [vmem:[%s5108_s21 + $0xf30] sm:$0xff]  ;;  %v2762_v27 = vld [vmem:[%s5116_s20 + $0xb8] sm:$0xff] }
 0x4e0   : > { %1724 = vmatmul.mubr.f32.vlgmr.msra.gmra.mrb[0].mxu1 %v1657_v0  ;;  %v4194_v33 = vpack.c.bf16 %v3550_v31, %v3548_v30  ;;  %v3552_v0 = vld [vmem:[%s5108_s21 + $0xf40] sm:$0xff]  ;;  %v2744_v3 = vld [vmem:[%s5116_s20 + $0x28] sm:$0xff] }
 0x4e1   : > { %2494 = vmatmul.mubr.f32.vlgmr.msra.gmra.mrb[0].mxu0 %v2427_v4  ;;  %v3554_v4 = vld [vmem:[%s5108_s21 + $0xf50] sm:$0xff]  ;;  %v2746_v30 = vld [vmem:[%s5116_s20 + $0x38] sm:$0xff]  ;;  %v2763_v31 = vld [vmem:[%s5116_s20 + $0xc0] sm:$0xff] }
 0x4e2   : > { %4159 = vmatpush1.bf16.msra.mxu0 %v4158_v34  ;;  %2603 = vmatprep.mubr.f32.mxu0 %v4760_v50  ;;  %v3557_v34 = vld [vmem:[%s5108_s21 + $0xf68] sm:$0xff]  ;;  %v4198_v36 = vpack.c.bf16 %v3554_v4, %v3552_v0  ;;  %v2765_v4 = vld [vmem:[%s5116_s20 + $0xd0] sm:$0xff] }
 0x4e3   : > { %4161 = vmatprep.subr.bf16.mxu0 %v4160_v35  ;;  %v3559_v35 = vld [vmem:[%s5108_s21 + $0xf78] sm:$0xff]  ;;  %v2748_v0 = vld [vmem:[%s5116_s20 + $0x48] sm:$0xff] }
 0x4e4   : > { %v4200_v37 = vpack.c.bf16 %v3559_v35, %v3557_v34  ;;  %v2766_v34 = vld [vmem:[%s5116_s20 + $0xd8] sm:$0xff] }
 0x4e6   : > { %4163 = vmatpush1.bf16.msra.mxu0 %v4162_v40  ;;  %v3561_v40 = vld [vmem:[%s5108_s21 + $0xf88] sm:$0xff] }
 0x4e7   : > { %4165 = vmatprep.subr.bf16.mxu0 %v4164_v41  ;;  %v4202_v41 = vpack.c.bf16 %v3558_v39, %v3556_v38  ;;  %v2750_v38 = vld [vmem:[%s5116_s20 + $0x58] sm:$0xff] }
 0x4ea   : > { %4167 = vmatpush1.bf16.msra.mxu0 %v4166_v46  ;;  %v3567_v46 = vld [vmem:[%s5108_s21 + $0xfb8] sm:$0xff] }
 0x4eb   : > { %4169 = vmatprep.subr.bf16.mxu0 %v4168_v47  ;;  %v4206_v47 = vpack.c.bf16 %v3562_v44, %v3560_v43  ;;  %v4208_v49 = vpack.c.bf16 %v3567_v46, %v3565_v45  ;;  %v2752_v43 = vld [vmem:[%s5116_s20 + $0x68] sm:$0xff]  ;;  %v2769_v45 = vld [vmem:[%s5116_s20 + $0xf0] sm:$0xff]  ;;  %v2770_v46 = vld [vmem:[%s5116_s20 + $0xf8] sm:$0xff] }
 0x4ee   : > { %4171 = vmatpush1.bf16.msra.mxu0 %v4170_v55  ;;  %v3571_v55 = vld [vmem:[%s5108_s21 + $0xfd8] sm:$0xff] }
 0x4ef   : > { %4173 = vmatprep.subr.bf16.mxu0 %v4172_v57  ;;  %v4210_v57 = vpack.c.bf16 %v3566_v53, %v3564_v52  ;;  %v4212_v58 = vpack.c.bf16 %v3571_v55, %v3569_v54  ;;  %v2754_v52 = vld [vmem:[%s5116_s20 + $0x78] sm:$0xff] }
 0x4f2   : > { %4175 = vmatpush1.bf16.msra.mxu0 %v4174_v62  ;;  %v3575_v62 = vld [vmem:[%s5108_s21 + $0xff8] sm:$0xff] }
 0x4f3   : > { %4177 = vmatprep.subr.bf16.mxu0 %v4176_v63  ;;  %v4214_v63 = vpack.c.bf16 %v3570_v60, %v3568_v59  ;;  %v4216_v2 = vpack.c.bf16 %v3575_v62, %v3573_v61  ;;  %v2722_v60 = vld [vmem:[%s5114_s14] sm:$0x3] }
 0x4f6   : > { %4179 = vmatpush1.bf16.msra.mxu0 %v4178_v9  ;;  %v2645_v9 = vrot.slane %v5772_v48, 7  ;;  %v2758_v48 = vld [vmem:[%s5116_s20 + $0x98] sm:$0xff] }
 0x4f7   : > { %4181 = vmatprep.subr.bf16.mxu0 %v4180_v10  ;;  %v2646_v10 = vrot.slane %v5775_v51, 6  ;;  %v4224_v51 = vpack.c.bf16 %v2758_v48, %v2757_v19 }
 0x4f9   : > { %v2647_v11 = vsel %vm1034_vm3, %v2646_v10, %v2645_v9 }
 0x4fa   : > { %4183 = vmatpush1.bf16.msra.mxu0 %v4182_v17  ;;  %v4220_v17 = vpack.c.bf16 %v2756_v14, %v2755_v13 }
 0x4fb   : > { %4185 = vmatprep.subr.bf16.mxu0 %v4184_v18  ;;  %v2740_v18 = vld [vmem:[%s5116_s20 + $0x8] sm:$0xff] }
 0x4fc   : > { %v4222_v20 = vpack.c.bf16 %v2740_v18, %v2739_v15  ;;  %4221 = vmatprep.subr.bf16.mxu1 %v4220_v17  ;;  %v2738_v15 = vld [vmem:[#allocation3] sm:$0x3] }
 0x4fe   : > { %4187 = vmatpush1.bf16.msra.mxu0 %v4186_v1  ;;  %v2759_v1 = vld [vmem:[%s5116_s20 + $0xa0] sm:$0xff]  ;;  %4223 = vmatpush3.bf16.msra.mxu1 %v4222_v20 }
 0x4ff   : > { %4189 = vmatprep.subr.bf16.mxu0 %v4188_v24  ;;  %4225 = vmatprep.subr.bf16.mxu1 %v4224_v51  ;;  %v4228_v24 = vpack.c.bf16 %v2760_v56, %v2759_v1 }
 0x501   : > { %2604 = vmatmul.mubr.f32.vlgmr.msra.gmra.mrb[0].mxu0 %v2537_v6  ;;  %v4230_v6 = vpack.c.bf16 %v2744_v3, %v2743_v25 }
 0x502   : > { %4191 = vmatpush1.bf16.msra.mxu0 %v4190_v28  ;;  %2713 = vmatprep.mubr.f32.mxu0 %v4760_v50  ;;  %v3563_v50 = vld [vmem:[%s5108_s21 + $0xf98] sm:$0xff]  ;;  %v4232_v28 = vpack.c.bf16 %v2762_v27, %v2761_v26  ;;  %s6060_s21 = sld [smem:[#allocation24_spill]] }
 0x503   : > { %4193 = vmatprep.subr.bf16.mxu0 %v4192_v29  ;;  %v4204_v42 = vpack.c.bf16 %v3563_v50, %v3561_v40  ;;  %4227 = vmatpush3.bf16.msra.mxu1 %v4226_v23  ;;  %v2745_v29 = vld [vmem:[%s5116_s20 + $0x30] sm:$0xff]  ;;  %v2767_v40 = vld [vmem:[%s5116_s20 + $0xe0] sm:$0xff]  ;;  %v2768_v50 = vld [vmem:[%s5116_s20 + $0xe8] sm:$0xff] }
 0x504   : > { %4229 = vmatprep.subr.bf16.mxu1 %v4228_v24  ;;  %v4234_v12 = vpack.c.bf16 %v2746_v30, %v2745_v29 }
 0x506   : > { %4195 = vmatpush1.bf16.msra.mxu0 %v4194_v33  ;;  %v4236_v33 = vpack.c.bf16 %v2764_v32, %v2763_v31 }
 0x507   : > { %4197 = vmatprep.subr.bf16.mxu0 %v4196_v16  ;;  %4231 = vmatpush3.bf16.msra.mxu1 %v4230_v6  ;;  %v2747_v16 = vld [vmem:[%s5116_s20 + $0x40] sm:$0xff] }
 0x508   : > { %4233 = vmatprep.subr.bf16.mxu1 %v4232_v28  ;;  %v4238_v35 = vpack.c.bf16 %v2748_v0, %v2747_v16  ;;  %p3576_p10 = scmp.ne.s32.totalorder %s6060_s21, 3 }
 0x509   : > { %v3577_v20 = vld [vmem:[#allocation15] ss:$0 sm:$0xff] (!%p3576_p10) }
 0x50a   : > { %4199 = vmatpush1.bf16.msra.mxu0 %v4198_v36  ;;  %v4240_v36 = vpack.c.bf16 %v2766_v34, %v2765_v4 }
 0x50b   : > { %4201 = vmatprep.subr.bf16.mxu0 %v4200_v37  ;;  %4235 = vmatpush3.bf16.msra.mxu1 %v4234_v12  ;;  %v2749_v37 = vld [vmem:[%s5116_s20 + $0x50] sm:$0xff] }
 0x50c   : > { %4237 = vmatprep.subr.bf16.mxu1 %v4236_v33  ;;  %v4242_v39 = vpack.c.bf16 %v2750_v38, %v2749_v37 }
 0x50e   : > { %4203 = vmatpush1.bf16.msra.mxu0 %v4202_v41  ;;  %v4244_v41 = vpack.c.bf16 %v2768_v50, %v2767_v40 }
 0x50f   : > { %4205 = vmatprep.subr.bf16.mxu0 %v4204_v42  ;;  %4239 = vmatpush3.bf16.msra.mxu1 %v4238_v35  ;;  %v2751_v42 = vld [vmem:[%s5116_s20 + $0x60] sm:$0xff] }
 0x510   : > { %4241 = vmatprep.subr.bf16.mxu1 %v4240_v36  ;;  %v4246_v44 = vpack.c.bf16 %v2752_v43, %v2751_v42 }
 0x512   : > { %4207 = vmatpush1.bf16.msra.mxu0 %v4206_v47  ;;  %v4248_v47 = vpack.c.bf16 %v2770_v46, %v2769_v45 }
 0x513   : > { %4209 = vmatprep.subr.bf16.mxu0 %v4208_v49  ;;  %4243 = vmatpush3.bf16.msra.mxu1 %v4242_v39  ;;  %v2753_v49 = vld [vmem:[%s5116_s20 + $0x70] sm:$0xff] }
 0x514   : > { %4245 = vmatprep.subr.bf16.mxu1 %v4244_v41  ;;  %v4250_v53 = vpack.c.bf16 %v2754_v52, %v2753_v49 }
 0x516   : > { %4211 = vmatpush1.bf16.msra.mxu0 %v4210_v57  ;;  %v2724_v57 = vlaneseq }
 0x517   : > { %4213 = vmatprep.subr.bf16.mxu0 %v4212_v58  ;;  %4247 = vmatpush3.bf16.msra.mxu1 %v4246_v44 }
 0x518   : > { %4249 = vmatprep.subr.bf16.mxu1 %v4248_v47  ;;  %v2725_v58 = vshrl.u32 %v2724_v57, 7 }
 0x51a   : > { %4215 = vmatpush1.bf16.msra.mxu0 %v4214_v63  ;;  %v2726_v59 = vsub.s32 0, %v2725_v58  ;;  %v2730_v61 = vsub.s32 1, %v2725_v58 }
 0x51b   : > { %4217 = vmatprep.subr.bf16.mxu0 %v4216_v2  ;;  %4251 = vmatpush3.bf16.msra.mxu1 %v4250_v53 }
 0x51c   : > { %v2727_v62 = vrot.slane %v2722_v60, %v2726_v59  ;;  %v2731_v2 = vrot.slane %v2722_v60, %v2730_v61 }
 0x51e   : > { %4219 = vmatpush1.bf16.msra.mxu0 %v4218_v8 }
 0x521   : > { %2714 = vmatmul.mubr.f32.vlgmr.msra.gmra.mrb[0].mxu0 %v2647_v11 }
 0x5b3   : > { %v1725_v54 = vpop.f32.mrb[0].mxu1 }
 0x5b4   : > { %v1727_v55 = vpop.f32.mrb[1].mxu1 }
 0x5f4   : > { %v2715_v63 = vpop.f32.mrb[0].mxu0 }
 0x5f5   : > { %v4252_v5 = vadd.f32 %v2715_v63, %v1725_v54  ;;  %v2717_v7 = vpop.f32.mrb[1].mxu0 }
 0x5f6   : > { %v4253_v8 = vadd.f32 %v2717_v7, %v1727_v55 }
 0x5f7   : > { %v2734_v9 = vadd.f32 %v4252_v5, %v2727_v62 }
 0x5f8   : > { %v2735_v10 = vadd.f32 %v4253_v8, %v2731_v2 }
 0x5f9   : > { %v2736_v13 = vmax.f32 %v2734_v9, 0.0 }
 0x5fa   : > { %v2737_v11 = vmax.f32 %v2735_v10, 0.0 }
 0x5fc   : > { %2835 = vmatprep.mubr.f32.mxu1 %v2737_v11 }
 0x5fd   : > { %2836 = vmatmul.mubr.f32.vlgmr.msra.gmra.mrb[2].mxu1 %v2736_v13 }
 0x6d0   : > { %v3623_v14 = vpop.f32.mrb[2].mxu1  ;;  %2846 = sbr.rel (%p3576_p10) target bundleno = 1761 (0x6e1), region = 96 }
 0x6d1   : > { %v3624_v17 = vpop.f32.mrb[3].mxu1 }
 0x6d2   : > { %v3625_v18 = vadd.f32 %v3624_v17, %v3623_v14 }
 0x6d4   : > { %v2841_v19 = vadd.f32 %v3625_v18, %v2738_v15 }
 0x6d6   : > { %2842 = vst [vmem:[#allocation3] sm:$0x3] %v2841_v19 }
 0x6dd   : > { %v2847_v48 = vld [vmem:[#allocation3] sm:$0x3] }
 0x6de   : > { %v2855_v51 = vadd.f32 %v3577_v20, %v2847_v48 }
 0x6e0   : > { %2856 = vst [vmem:[#allocation16] sm:$0x3] %v2855_v51 }
 0x6e1 PF: > { %p4349_p11 = scmp.eq.s32.totalorder %s4841_s15, 3  ;;  %s4761_s14 = smov [#allocation16]  }
 0x6e2   : > { %s2866_s20 = sshll.u32 %s4761_s14, 4  ;;  %s2867_s20 = int_to_ptr.vmem [resolvable:$true] %s2866_s20 }
 0x6e3   : > { %s4647_s11 = scalar_lea.vmem %s2867_s20, 32  ;;  %p4654_p13 = scmp.lt.s32.totalorder %s2867_s20, %s2867_s20 }
 0x6e4   : > { %p4648_p9 = scmp.ne.s32.totalorder %s2867_s20, %s4647_s11  ;;  %p4655_p2 = scmp.lt.s32.totalorder %s4647_s11, %s4647_s11 }
 0x6e6   : > { %p4649_p0 = pnand %p4648_p9, %p4349_p11  ;;  %p4656_p6 = por %p4655_p2, %p4654_p13 }
 0x6e8   : > { %p4650_p8 = pneg %p4649_p0 }
 0x6ea   : > { %p4657_p1 = pnand %p4656_p6, %p4650_p8 }
 0x6ec   : > { %4660 = shalt.err (!%p4657_p1)
}
 0x6ed   : > { %s6061_s9 = sld [smem:[#allocation32_spill]] }
 0x6f3   : > { %s4661_s0 = scalar_lea.hbm %s6061_s9, 32 }
 0x6f4   : > { %p4662_p3 = scmp.ne.s32.totalorder %s6061_s9, %s4661_s0  ;;  %p4667_p4 = scmp.lt.u32.totalorder %s4661_s0, %s6061_s9 }
 0x6f6   : > { %p4663_p12 = pnand %p4662_p3, %p4349_p11 }
 0x6f8   : > { %p4664_p5 = pneg %p4663_p12 }
 0x6fa   : > { %p4669_p7 = pnand %p4667_p4, %p4664_p5 }
 0x6fc   : > { %4672 = shalt.err (!%p4669_p7)
}
 0x6fd   : > { %4309 = dma.vmem_to_hbm [thread:$0]  (%p4349_p11), %s2867_s20, 32, %s6061_s9, [#allocation6]  }
 0x6fe   : > { %4718 = dma.done.wait (%p4349_p11), [#allocation6], 32  }
 0x6ff   : > { %4720 = vsyncadd (%p4349_p11), [#allocation6], 4294967264 }
 0x700 PF: > { %s6062_s12 = sld [smem:[#allocation25_spill]]  ;;  %s6063_s19 = sld [smem:[#allocation23_spill]] }
 0x701   : > { %s6064_s11 = sld [smem:[#allocation27_spill]]  ;;  %s6065_s26 = sld [smem:[#allocation26_spill]] }
 0x702   : > { %s6066_s30 = smov %s4727_s10 }
 0x706   : > { %s23_s14 = sadd.s32 1, %s6062_s12   ;;  %s6067_s10 = smov %s6063_s19 }
 0x707   : > { %p20_p10 = scmp.ge.s32.totalorder %s23_s14, 6   ;;  %s6068_s12 = smov %s4739_s13 }
 0x708   : > { %s6069_s13 = smov %s6065_s26 }
 0x709   :  { %22 = sbr.rel (!%p20_p10) target bundleno = 12 (0xc), region = 163 }
 0x710   :  { %2879 = vsyncpa [#allocation5], 1 }
 0x711   :  { %2881 = vsyncpa [#allocation5 + $0x1], 1 }
 0x712   :  { %2882 = vsyncpa [#allocation8], 1 }
 0x713   :  { %2883 = vsyncpa [#allocation11], 1 }
 0x714   :  { %2884 = vsyncpa [#allocation6], 1 }
 0x715   :  { %2886 = vsyncpa [#allocation6 + $0x1], 1 }

</bundles_post_ra>
